<compile_context>
chip_gen: v5e
topology: v5e:2x2
jax: 0.10.0
libtpu: 0.0.40
codegen_flags: <defaults>
</compile_context>

<pallas_src>
import jax
import jax.numpy as jnp
from jax.experimental import pallas as pl
from jax.experimental.pallas import tpu as pltpu


def _make_kernel(num_heads, head_dim, eps):
    def kernel(tq_ref, vk_ref, vv_ref, mask_ref,
               wq_ref, bq_ref, wk_ref, bk_ref, wv_ref, bv_ref,
               wo_ref, bo_ref, gamma_ref, beta_ref,
               out_ref,
               k_scr, v_scr):
        cdt = wq_ref.dtype                          # MXU compute dtype (e.g. bf16)
        h, hd = num_heads, head_dim

        # ---- K/V projections: depend only on the batch index -> compute once per
        # batch (first query tile) into persistent VMEM scratch, reuse afterwards.
        @pl.when(pl.program_id(1) == 0)
        def _():
            vk = vk_ref[0].astype(cdt)              # (S, V)
            vv = vv_ref[0].astype(cdt)              # (S, V)
            k = jnp.dot(vk, wk_ref[...], preferred_element_type=jnp.float32) + bk_ref[...]
            v = jnp.dot(vv, wv_ref[...], preferred_element_type=jnp.float32) + bv_ref[...]
            src = k.shape[0]
            k_scr[...] = jnp.transpose(k.reshape(src, h, hd), (1, 0, 2)).astype(cdt)
            v_scr[...] = jnp.transpose(v.reshape(src, h, hd), (1, 0, 2)).astype(cdt)

        # ---- Q projection (scale folded into wq/bq) + head split for this tile.
        tq_in = tq_ref[0]                           # (TQ, E) input dtype (residual)
        tq = tq_in.astype(cdt)
        q = jnp.dot(tq, wq_ref[...], preferred_element_type=jnp.float32) + bq_ref[...]
        tgt = q.shape[0]
        qh = jnp.transpose(q.reshape(tgt, h, hd), (1, 0, 2)).astype(cdt)   # (H, TQ, hd)

        # Mask block may be (H, TQ, S), (1, TQ, S), (H, 1, S) or (1, 1, S) ->
        # broadcast against scores; cast to f32 for the softmax math.
        mask = mask_ref[0].astype(jnp.float32)

        # ---- Attention (batched over heads), f32 accumulation on the MXU.
        scores = jnp.einsum("hqd,hkd->hqk", qh, k_scr[...],
                            preferred_element_type=jnp.float32) + mask
        m = jnp.max(scores, axis=-1, keepdims=True)
        e = jnp.exp(scores - m)
        denom = jnp.sum(e, axis=-1, keepdims=True)
        probs = e * pl.reciprocal(denom, approx=True)          # EUP, not VALU div
        # dropout(p = 0.0) -> identity
        ctx = jnp.einsum("hqk,hkd->hqd", probs.astype(cdt), v_scr[...],
                         preferred_element_type=jnp.float32)   # (H, TQ, hd)

        attn = jnp.transpose(ctx, (1, 0, 2)).reshape(tgt, h * hd)   # (TQ, E)

        # ---- Output projection + residual + LayerNorm (all in f32).
        o = jnp.dot(attn.astype(cdt), wo_ref[...],
                    preferred_element_type=jnp.float32) + bo_ref[...]
        resid = o + tq_in.astype(jnp.float32)
        mean = jnp.mean(resid, axis=-1, keepdims=True)
        cent = resid - mean
        var = jnp.mean(cent * cent, axis=-1, keepdims=True)
        normed = cent * jax.lax.rsqrt(var + eps)
        out = normed * gamma_ref[...] + beta_ref[...]
        out_ref[0] = out.astype(out_ref.dtype)

    return kernel


def cross_adapter_i2t(text_query, vision_key, vision_value, attention_mask,
                      params, *, num_heads, eps=1e-5, tq_tile=256,
                      compute_dtype=jnp.bfloat16, single_buffer_weights=True):
    bsz, tgt_len, embed_dim = text_query.shape
    _, src_len, vision_dim = vision_key.shape
    head_dim = embed_dim // num_heads
    scale = head_dim ** (-0.5)

    tq_tile = min(tq_tile, tgt_len)
    assert tgt_len % tq_tile == 0, "tgt_len must be divisible by tq_tile"
    n_tq = tgt_len // tq_tile

    cdt = compute_dtype
    # Host-side, one-time transforms: pre-transpose weights to (in, out), fold the
    # attention scale into the q projection, cast weights to the compute dtype.
    wq_t = (params["wq"].T * scale).astype(cdt)          # (E, E)
    wk_t = params["wk"].T.astype(cdt)                    # (V, E)
    wv_t = params["wv"].T.astype(cdt)                    # (V, E)
    wo_t = params["wo"].T.astype(cdt)                    # (E, E)
    bq = (params["bq"] * scale).astype(jnp.float32)      # (1, E)
    bk = params["bk"].astype(jnp.float32)
    bv = params["bv"].astype(jnp.float32)
    bo = params["bo"].astype(jnp.float32)
    gamma = params["gamma"].astype(jnp.float32)
    beta = params["beta"].astype(jnp.float32)

    # Mask may broadcast over heads and/or query positions:
    #   (B, H, TQ, S), (B, 1, TQ, S), (B, H, 1, S) or (B, 1, 1, S).
    mb, mh, mq, ms = attention_mask.shape
    assert mb == bsz and ms == src_len and mh in (1, num_heads) and mq in (1, tgt_len)
    # In bf16 compute mode ship the mask in bf16 (it is the dominant HBM stream
    # when it is a full (B, H, TQ, S) tensor); it is cast back to f32 in-kernel.
    # TODO(synk): in a real model, produce the bf16 / broadcastable mask upstream
    # so this cast does not cost an extra HBM pass.
    mask_dtype = (jnp.bfloat16 if jnp.dtype(cdt) == jnp.dtype(jnp.bfloat16)
                  else jnp.float32)
    mask = attention_mask.astype(mask_dtype)
    mq_blk = tq_tile if mq == tgt_len else 1
    if mq == tgt_len:
        mask_imap = lambda b, t: (b, 0, t, 0)
    else:
        mask_imap = lambda b, t: (b, 0, 0, 0)

    # ---- Explicit VMEM budget from the actual block sizes (+ headroom).
    def nbytes(shape, dt):
        n = 1
        for s in shape:
            n *= s
        return n * jnp.dtype(dt).itemsize

    est = (
        # resident parameter blocks (single- or double-buffered)
        (1 if single_buffer_weights else 2) * (
            2 * nbytes((embed_dim, embed_dim), cdt)
            + 2 * nbytes((vision_dim, embed_dim), cdt)
            + 6 * nbytes((1, embed_dim), jnp.float32))
        # double-buffered streamed blocks
        + 2 * nbytes((tq_tile, embed_dim), text_query.dtype)
        + 2 * 2 * nbytes((src_len, vision_dim), vision_key.dtype)
        + 2 * nbytes((mh, mq_blk, src_len), mask_dtype)
        + 2 * nbytes((tq_tile, embed_dim), text_query.dtype)          # output
        # persistent K/V scratch
        + 2 * nbytes((num_heads, src_len, head_dim), cdt)
        # f32 working set (scores / exp / probs + projection / LN temporaries)
        + 3 * nbytes((num_heads, tq_tile, src_len), jnp.float32)
        + 4 * nbytes((tq_tile, embed_dim), jnp.float32))
    try:
        phys_vmem = int(pltpu.get_tpu_info().vmem_capacity_bytes)
    except Exception:
        phys_vmem = 64 * 1024 * 1024     # conservative (v7x per-core)
    vmem_limit = int(min(max(2 * est, 32 * 1024 * 1024),
                         phys_vmem - 2 * 1024 * 1024))

    kernel = _make_kernel(num_heads, head_dim, eps)
    _const = lambda b, t: (0, 0)

    def build(single_buffer):
        def resident(shape):
            # Constant-index parameter blocks: double-buffering them only wastes
            # VMEM, so request a single buffer when supported.
            if single_buffer:
                return pl.BlockSpec(shape, _const, pipeline_mode=pl.Buffered(1))
            return pl.BlockSpec(shape, _const)

        return pl.pallas_call(
            kernel,
            out_shape=jax.ShapeDtypeStruct((bsz, tgt_len, embed_dim),
                                           text_query.dtype),
            grid=(bsz, n_tq),
            in_specs=[
                pl.BlockSpec((1, tq_tile, embed_dim), lambda b, t: (b, t, 0)),
                pl.BlockSpec((1, src_len, vision_dim), lambda b, t: (b, 0, 0)),
                pl.BlockSpec((1, src_len, vision_dim), lambda b, t: (b, 0, 0)),
                pl.BlockSpec((1, mh, mq_blk, src_len), mask_imap),
                resident((embed_dim, embed_dim)),     # wq (pre-T, pre-scaled)
                resident((1, embed_dim)),             # bq (pre-scaled)
                resident((vision_dim, embed_dim)),    # wk (pre-T)
                resident((1, embed_dim)),             # bk
                resident((vision_dim, embed_dim)),    # wv (pre-T)
                resident((1, embed_dim)),             # bv
                resident((embed_dim, embed_dim)),     # wo (pre-T)
                resident((1, embed_dim)),             # bo
                resident((1, embed_dim)),             # layernorm gamma
                resident((1, embed_dim)),             # layernorm beta
            ],
            out_specs=pl.BlockSpec((1, tq_tile, embed_dim), lambda b, t: (b, t, 0)),
            scratch_shapes=[
                pltpu.VMEM((num_heads, src_len, head_dim), cdt),   # K (head-split)
                pltpu.VMEM((num_heads, src_len, head_dim), cdt),   # V (head-split)
            ],
            compiler_params=pltpu.CompilerParams(
                # K/V scratch is computed at t == 0 and reused across query tiles,
                # so the t axis must run sequentially -> "arbitrary".
                dimension_semantics=("parallel", "arbitrary"),
                vmem_limit_bytes=vmem_limit),
        )

    args = (text_query, vision_key, vision_value, mask,
            wq_t, bq, wk_t, bk, wv_t, bv, wo_t, bo, gamma, beta)
    try:
        return build(single_buffer_weights)(*args)
    except Exception:
        if not single_buffer_weights:
            raise
        # Fallback for JAX versions without pipeline_mode / Buffered(1) support.
        return build(False)(*args)


def _reference(text_query, vision_key, vision_value, attention_mask, params,
               *, num_heads, eps=1e-5):
    """Pure-JAX reference mirroring the torch forward exactly (f32)."""
    bsz, tgt_len, embed_dim = text_query.shape
    _, src_len, _ = vision_key.shape
    head_dim = embed_dim // num_heads
    scale = head_dim ** (-0.5)

    def lin(x, w, b):
        return x @ w.T + b[0]

    q = lin(text_query, params["wq"], params["bq"]) * scale
    k = lin(vision_key, params["wk"], params["bk"])
    v = lin(vision_value, params["wv"], params["bv"])

    def shape(x, L):
        return x.reshape(bsz, L, num_heads, head_dim).transpose(0, 2, 1, 3)

    q = shape(q, tgt_len).reshape(bsz * num_heads, tgt_len, head_dim)
    k = shape(k, src_len).reshape(bsz * num_heads, src_len, head_dim)
    v = shape(v, src_len).reshape(bsz * num_heads, src_len, head_dim)

    logits = jnp.einsum("bqd,bkd->bqk", q, k) + attention_mask.reshape(
        bsz * num_heads, tgt_len, src_len)
    probs = jax.nn.softmax(logits, axis=-1)
    attn = jnp.einsum("bqk,bkd->bqd", probs, v)
    attn = attn.reshape(bsz, num_heads, tgt_len, head_dim).transpose(0, 2, 1, 3)
    attn = attn.reshape(bsz, tgt_len, embed_dim)
    out = lin(attn, params["wo"], params["bo"]) + text_query
    mean = out.mean(-1, keepdims=True)
    var = ((out - mean) ** 2).mean(-1, keepdims=True)
    return (out - mean) / jnp.sqrt(var + eps) * params["gamma"][0] + params["beta"][0]


def _init_params(key, embed_dim, vision_dim):
    ks = jax.random.split(key, 8)

    def linear(kw, kb, out_dim, in_dim):
        bound = 1.0 / (in_dim ** 0.5)
        w = jax.random.uniform(kw, (out_dim, in_dim), jnp.float32, -bound, bound)
        b = jax.random.uniform(kb, (1, out_dim), jnp.float32, -bound, bound)
        return w, b

    wq, bq = linear(ks[0], ks[1], embed_dim, embed_dim)
    wk, bk = linear(ks[2], ks[3], embed_dim, vision_dim)
    wv, bv = linear(ks[4], ks[5], embed_dim, vision_dim)
    wo, bo = linear(ks[6], ks[7], embed_dim, embed_dim)
    return dict(wq=wq, bq=bq, wk=wk, bk=bk, wv=wv, bv=bv, wo=wo, bo=bo,
                gamma=jnp.ones((1, embed_dim), jnp.float32),
                beta=jnp.zeros((1, embed_dim), jnp.float32))


if __name__ == "__main__":
    bsz, tgt_len, src_len = 2, 8, 16
    embed_dim, vision_dim, num_heads = 128, 64, 4

    root = jax.random.PRNGKey(0)
    k_tq, k_vk, k_vv, k_mask, k_par = jax.random.split(root, 5)

    text_query = jax.random.normal(k_tq, (bsz, tgt_len, embed_dim), jnp.float32)
    vision_key = jax.random.normal(k_vk, (bsz, src_len, vision_dim), jnp.float32)
    vision_value = jax.random.normal(k_vv, (bsz, src_len, vision_dim), jnp.float32)
    # additive attention mask (0 / -1e9 style in real use; small random here)
    attention_mask = 0.1 * jax.random.normal(
        k_mask, (bsz, num_heads, tgt_len, src_len), jnp.float32)

    params = _init_params(k_par, embed_dim, vision_dim)

    ref = _reference(text_query, vision_key, vision_value, attention_mask,
                     params, num_heads=num_heads)

    # f32 compute path (tolerance allows the approx EUP reciprocal in softmax)
    out_f32 = cross_adapter_i2t(text_query, vision_key, vision_value,
                                attention_mask, params, num_heads=num_heads,
                                compute_dtype=jnp.float32)
    out_f32 = jax.block_until_ready(out_f32)
    assert out_f32.shape == (bsz, tgt_len, embed_dim)
    assert jnp.allclose(out_f32, ref, atol=2e-2, rtol=2e-2)

    # bf16 MXU path (f32 accumulation, bf16 mask) -> looser tolerance vs f32 ref
    out_bf16 = cross_adapter_i2t(text_query, vision_key, vision_value,
                                 attention_mask, params, num_heads=num_heads,
                                 compute_dtype=jnp.bfloat16)
    out_bf16 = jax.block_until_ready(out_bf16)
    assert out_bf16.shape == (bsz, tgt_len, embed_dim)
    assert jnp.allclose(out_bf16, ref, atol=6e-2, rtol=6e-2)

    # broadcastable key-padding mask (B, 1, 1, S): batch 1 masks its last 4 keys
    lens = jnp.array([src_len, src_len - 4])
    kp_mask = jnp.where(
        jnp.arange(src_len)[None, None, None, :] < lens[:, None, None, None],
        0.0, -1e9).astype(jnp.float32)
    ref_kp = _reference(
        text_query, vision_key, vision_value,
        jnp.broadcast_to(kp_mask, (bsz, num_heads, tgt_len, src_len)),
        params, num_heads=num_heads)
    out_kp = cross_adapter_i2t(text_query, vision_key, vision_value, kp_mask,
                               params, num_heads=num_heads,
                               compute_dtype=jnp.float32)
    out_kp = jax.block_until_ready(out_kp)
    assert jnp.allclose(out_kp, ref_kp, atol=2e-2, rtol=2e-2)

    print("KERNEL_OK")
</pallas_src>

<mosaic_0001>
module attributes {stable_mosaic.version = 11 : i64} {
  func.func @kernel(%arg0: i32, %arg1: i32, %arg2: memref<1x8x128xf32, #tpu.memory_space<vmem>>, %arg3: memref<1x16x64xf32, #tpu.memory_space<vmem>>, %arg4: memref<1x16x64xf32, #tpu.memory_space<vmem>>, %arg5: memref<1x4x8x16xf32, #tpu.memory_space<vmem>>, %arg6: memref<128x128xf32, #tpu.memory_space<vmem>>, %arg7: memref<1x128xf32, #tpu.memory_space<vmem>>, %arg8: memref<64x128xf32, #tpu.memory_space<vmem>>, %arg9: memref<1x128xf32, #tpu.memory_space<vmem>>, %arg10: memref<64x128xf32, #tpu.memory_space<vmem>>, %arg11: memref<1x128xf32, #tpu.memory_space<vmem>>, %arg12: memref<128x128xf32, #tpu.memory_space<vmem>>, %arg13: memref<1x128xf32, #tpu.memory_space<vmem>>, %arg14: memref<1x128xf32, #tpu.memory_space<vmem>>, %arg15: memref<1x128xf32, #tpu.memory_space<vmem>>, %arg16: memref<1x8x128xf32, #tpu.memory_space<vmem>>, %arg17: memref<4x16x32xf32, #tpu.memory_space<vmem>>, %arg18: memref<4x16x32xf32, #tpu.memory_space<vmem>>) attributes {dimension_semantics = [#tpu.dimension_semantics<parallel>, #tpu.dimension_semantics<arbitrary>], iteration_bounds = array<i64: 2, 1>, scalar_prefetch = 0 : i64, scratch_operands = 2 : i64, tpu.core_type = #tpu.core_type<tc>, window_params = [{transform_indices = @transform_0, window_bounds = array<i64: 1, 8, 128>}, {transform_indices = @transform_1, window_bounds = array<i64: 1, 16, 64>}, {transform_indices = @transform_2, window_bounds = array<i64: 1, 16, 64>}, {transform_indices = @transform_3, window_bounds = array<i64: 1, 4, 8, 16>}, {pipeline_mode = #tpu.pipeline_mode<synchronous>, transform_indices = @transform_4, window_bounds = array<i64: 128, 128>}, {pipeline_mode = #tpu.pipeline_mode<synchronous>, transform_indices = @transform_5, window_bounds = array<i64: 1, 128>}, {pipeline_mode = #tpu.pipeline_mode<synchronous>, transform_indices = @transform_6, window_bounds = array<i64: 64, 128>}, {pipeline_mode = #tpu.pipeline_mode<synchronous>, transform_indices = @transform_7, window_bounds = array<i64: 1, 128>}, {pipeline_mode = #tpu.pipeline_mode<synchronous>, transform_indices = @transform_8, window_bounds = array<i64: 64, 128>}, {pipeline_mode = #tpu.pipeline_mode<synchronous>, transform_indices = @transform_9, window_bounds = array<i64: 1, 128>}, {pipeline_mode = #tpu.pipeline_mode<synchronous>, transform_indices = @transform_10, window_bounds = array<i64: 128, 128>}, {pipeline_mode = #tpu.pipeline_mode<synchronous>, transform_indices = @transform_11, window_bounds = array<i64: 1, 128>}, {pipeline_mode = #tpu.pipeline_mode<synchronous>, transform_indices = @transform_12, window_bounds = array<i64: 1, 128>}, {pipeline_mode = #tpu.pipeline_mode<synchronous>, transform_indices = @transform_13, window_bounds = array<i64: 1, 128>}, {transform_indices = @transform_14, window_bounds = array<i64: 1, 8, 128>}]} {
    %c0_i32 = arith.constant 0 : i32
    %0 = arith.cmpi eq, %arg1, %c0_i32 : i32
    %1 = arith.extui %0 : i1 to i32
    %c0_i32_0 = arith.constant 0 : i32
    %2 = arith.cmpi ne, %1, %c0_i32_0 : i32
    scf.if %2 {
      %c0_38 = arith.constant 0 : index
      %c0_39 = arith.constant 0 : index
      %c0_40 = arith.constant 0 : index
      %62 = vector.load %arg3[%c0_38, %c0_39, %c0_40] : memref<1x16x64xf32, #tpu.memory_space<vmem>>, vector<1x16x64xf32>
      %63 = vector.shape_cast %62 : vector<1x16x64xf32> to vector<16x64xf32>
      %c0_41 = arith.constant 0 : index
      %c0_42 = arith.constant 0 : index
      %c0_43 = arith.constant 0 : index
      %64 = vector.load %arg4[%c0_41, %c0_42, %c0_43] : memref<1x16x64xf32, #tpu.memory_space<vmem>>, vector<1x16x64xf32>
      %65 = vector.shape_cast %64 : vector<1x16x64xf32> to vector<16x64xf32>
      %c0_44 = arith.constant 0 : index
      %c0_45 = arith.constant 0 : index
      %66 = vector.load %arg8[%c0_44, %c0_45] : memref<64x128xf32, #tpu.memory_space<vmem>>, vector<64x128xf32>
      %cst_46 = arith.constant dense<0.000000e+00> : vector<16x128xf32>
      %67 = tpu.matmul %63, %66, %cst_46 {dimension_numbers = #tpu.dot_dimension_numbers<[1], [0], [0], [1], [0, 0, 1, 1], [], []>} : vector<16x64xf32>, vector<64x128xf32>, vector<16x128xf32> -> vector<16x128xf32>
      %c0_47 = arith.constant 0 : index
      %c0_48 = arith.constant 0 : index
      %68 = vector.load %arg9[%c0_47, %c0_48] : memref<1x128xf32, #tpu.memory_space<vmem>>, vector<1x128xf32>
      %69 = vector.broadcast %68 : vector<1x128xf32> to vector<16x128xf32>
      %70 = arith.addf %67, %69 : vector<16x128xf32>
      %c0_49 = arith.constant 0 : index
      %c0_50 = arith.constant 0 : index
      %71 = vector.load %arg10[%c0_49, %c0_50] : memref<64x128xf32, #tpu.memory_space<vmem>>, vector<64x128xf32>
      %cst_51 = arith.constant dense<0.000000e+00> : vector<16x128xf32>
      %72 = tpu.matmul %65, %71, %cst_51 {dimension_numbers = #tpu.dot_dimension_numbers<[1], [0], [0], [1], [0, 0, 1, 1], [], []>} : vector<16x64xf32>, vector<64x128xf32>, vector<16x128xf32> -> vector<16x128xf32>
      %c0_52 = arith.constant 0 : index
      %c0_53 = arith.constant 0 : index
      %73 = vector.load %arg11[%c0_52, %c0_53] : memref<1x128xf32, #tpu.memory_space<vmem>>, vector<1x128xf32>
      %74 = vector.broadcast %73 : vector<1x128xf32> to vector<16x128xf32>
      %75 = arith.addf %72, %74 : vector<16x128xf32>
      %76 = vector.shape_cast %70 : vector<16x128xf32> to vector<16x4x32xf32>
      %77 = tpu.transpose %76, [1, 0, 2] : vector<16x4x32xf32> -> vector<4x16x32xf32>
      %c0_54 = arith.constant 0 : index
      %c0_55 = arith.constant 0 : index
      %c0_56 = arith.constant 0 : index
      %78 = vector.load %arg17[%c0_54, %c0_55, %c0_56] : memref<4x16x32xf32, #tpu.memory_space<vmem>>, vector<4x16x32xf32>
      tpu.vector_store %arg17[%c0_54, %c0_55, %c0_56], %77 {strides = array<i32>} : memref<4x16x32xf32, #tpu.memory_space<vmem>>, vector<4x16x32xf32>,
      %79 = vector.shape_cast %75 : vector<16x128xf32> to vector<16x4x32xf32>
      %80 = tpu.transpose %79, [1, 0, 2] : vector<16x4x32xf32> -> vector<4x16x32xf32>
      %c0_57 = arith.constant 0 : index
      %c0_58 = arith.constant 0 : index
      %c0_59 = arith.constant 0 : index
      %81 = vector.load %arg18[%c0_57, %c0_58, %c0_59] : memref<4x16x32xf32, #tpu.memory_space<vmem>>, vector<4x16x32xf32>
      tpu.vector_store %arg18[%c0_57, %c0_58, %c0_59], %80 {strides = array<i32>} : memref<4x16x32xf32, #tpu.memory_space<vmem>>, vector<4x16x32xf32>,
    } else {
    }
    %c0 = arith.constant 0 : index
    %c0_1 = arith.constant 0 : index
    %c0_2 = arith.constant 0 : index
    %3 = vector.load %arg2[%c0, %c0_1, %c0_2] : memref<1x8x128xf32, #tpu.memory_space<vmem>>, vector<1x8x128xf32>
    %4 = vector.shape_cast %3 : vector<1x8x128xf32> to vector<8x128xf32>
    %c0_3 = arith.constant 0 : index
    %c0_4 = arith.constant 0 : index
    %5 = vector.load %arg6[%c0_3, %c0_4] : memref<128x128xf32, #tpu.memory_space<vmem>>, vector<128x128xf32>
    %cst = arith.constant dense<0.000000e+00> : vector<8x128xf32>
    %6 = tpu.matmul %4, %5, %cst {dimension_numbers = #tpu.dot_dimension_numbers<[1], [0], [0], [1], [0, 0, 1, 1], [], []>} : vector<8x128xf32>, vector<128x128xf32>, vector<8x128xf32> -> vector<8x128xf32>
    %c0_5 = arith.constant 0 : index
    %c0_6 = arith.constant 0 : index
    %7 = vector.load %arg7[%c0_5, %c0_6] : memref<1x128xf32, #tpu.memory_space<vmem>>, vector<1x128xf32>
    %8 = vector.broadcast %7 : vector<1x128xf32> to vector<8x128xf32>
    %9 = arith.addf %6, %8 : vector<8x128xf32>
    %10 = vector.shape_cast %9 : vector<8x128xf32> to vector<8x4x32xf32>
    %11 = tpu.transpose %10, [1, 0, 2] : vector<8x4x32xf32> -> vector<4x8x32xf32>
    %c0_7 = arith.constant 0 : index
    %c0_8 = arith.constant 0 : index
    %c0_9 = arith.constant 0 : index
    %c0_10 = arith.constant 0 : index
    %12 = vector.load %arg5[%c0_7, %c0_8, %c0_9, %c0_10] : memref<1x4x8x16xf32, #tpu.memory_space<vmem>>, vector<1x4x8x16xf32>
    %13 = vector.shape_cast %12 : vector<1x4x8x16xf32> to vector<4x8x16xf32>
    %c0_11 = arith.constant 0 : index
    %c0_12 = arith.constant 0 : index
    %c0_13 = arith.constant 0 : index
    %14 = vector.load %arg17[%c0_11, %c0_12, %c0_13] : memref<4x16x32xf32, #tpu.memory_space<vmem>>, vector<4x16x32xf32>
    "tpu.trace_start"() <{level = 10 : i32, message = "hqd,hkd->hqk"}> : () -> ()
    %cst_14 = arith.constant dense<0.000000e+00> : vector<4x8x16xf32>
    %15 = tpu.matmul %11, %14, %cst_14 {dimension_numbers = #tpu.dot_dimension_numbers<[2], [2], [1], [1], [0, 0, 0, 1, 1, 1], [0], [0]>} : vector<4x8x32xf32>, vector<4x16x32xf32>, vector<4x8x16xf32> -> vector<4x8x16xf32>
    "tpu.trace_stop"() : () -> ()
    %16 = arith.addf %15, %13 : vector<4x8x16xf32>
    %cst_15 = arith.constant dense<0xFF800000> : vector<4x8xf32>
    %17 = vector.multi_reduction <maximumf>, %16, %cst_15 [2] : vector<4x8x16xf32> to vector<4x8xf32>
    %18 = vector.shape_cast %17 : vector<4x8xf32> to vector<4x8x1xf32>
    %19 = vector.broadcast %18 : vector<4x8x1xf32> to vector<4x8x16xf32>
    %20 = arith.subf %16, %19 : vector<4x8x16xf32>
    %21 = math.exp %20 : vector<4x8x16xf32>
    %cst_16 = arith.constant dense<0.000000e+00> : vector<4x8xf32>
    %22 = vector.multi_reduction <add>, %21, %cst_16 [2] : vector<4x8x16xf32> to vector<4x8xf32>
    %23 = vector.shape_cast %22 : vector<4x8xf32> to vector<4x8x1xf32>
    %24 = tpu.reciprocal %23 {approx = true} : vector<4x8x1xf32> -> vector<4x8x1xf32>
    %25 = vector.broadcast %24 : vector<4x8x1xf32> to vector<4x8x16xf32>
    %26 = arith.mulf %21, %25 : vector<4x8x16xf32>
    %c0_17 = arith.constant 0 : index
    %c0_18 = arith.constant 0 : index
    %c0_19 = arith.constant 0 : index
    %27 = vector.load %arg18[%c0_17, %c0_18, %c0_19] : memref<4x16x32xf32, #tpu.memory_space<vmem>>, vector<4x16x32xf32>
    "tpu.trace_start"() <{level = 10 : i32, message = "hqk,hkd->hqd"}> : () -> ()
    %cst_20 = arith.constant dense<0.000000e+00> : vector<4x8x32xf32>
    %28 = tpu.matmul %26, %27, %cst_20 {dimension_numbers = #tpu.dot_dimension_numbers<[2], [1], [1], [2], [0, 0, 0, 1, 1, 2], [0], [0]>} : vector<4x8x16xf32>, vector<4x16x32xf32>, vector<4x8x32xf32> -> vector<4x8x32xf32>
    "tpu.trace_stop"() : () -> ()
    %29 = tpu.transpose %28, [1, 0, 2] : vector<4x8x32xf32> -> vector<8x4x32xf32>
    %30 = vector.shape_cast %29 : vector<8x4x32xf32> to vector<8x128xf32>
    %c0_21 = arith.constant 0 : index
    %c0_22 = arith.constant 0 : index
    %31 = vector.load %arg12[%c0_21, %c0_22] : memref<128x128xf32, #tpu.memory_space<vmem>>, vector<128x128xf32>
    %cst_23 = arith.constant dense<0.000000e+00> : vector<8x128xf32>
    %32 = tpu.matmul %30, %31, %cst_23 {dimension_numbers = #tpu.dot_dimension_numbers<[1], [0], [0], [1], [0, 0, 1, 1], [], []>} : vector<8x128xf32>, vector<128x128xf32>, vector<8x128xf32> -> vector<8x128xf32>
    %c0_24 = arith.constant 0 : index
    %c0_25 = arith.constant 0 : index
    %33 = vector.load %arg13[%c0_24, %c0_25] : memref<1x128xf32, #tpu.memory_space<vmem>>, vector<1x128xf32>
    %34 = vector.broadcast %33 : vector<1x128xf32> to vector<8x128xf32>
    %35 = arith.addf %32, %34 : vector<8x128xf32>
    %36 = arith.addf %35, %4 : vector<8x128xf32>
    %cst_26 = arith.constant dense<0.000000e+00> : vector<8xf32>
    %37 = vector.multi_reduction <add>, %36, %cst_26 [1] : vector<8x128xf32> to vector<8xf32>
    %38 = vector.shape_cast %37 : vector<8xf32> to vector<8x1xf32>
    %cst_27 = arith.constant 1.280000e+02 : f32
    %39 = vector.broadcast %cst_27 : f32 to vector<8x1xf32>
    %40 = arith.divf %38, %39 : vector<8x1xf32>
    %41 = vector.broadcast %40 : vector<8x1xf32> to vector<8x128xf32>
    %42 = arith.subf %36, %41 : vector<8x128xf32>
    %43 = arith.mulf %42, %42 : vector<8x128xf32>
    %cst_28 = arith.constant dense<0.000000e+00> : vector<8xf32>
    %44 = vector.multi_reduction <add>, %43, %cst_28 [1] : vector<8x128xf32> to vector<8xf32>
    %45 = vector.shape_cast %44 : vector<8xf32> to vector<8x1xf32>
    %cst_29 = arith.constant 1.280000e+02 : f32
    %46 = vector.broadcast %cst_29 : f32 to vector<8x1xf32>
    %47 = arith.divf %45, %46 : vector<8x1xf32>
    %cst_30 = arith.constant 9.99999974E-6 : f32
    %48 = vector.broadcast %cst_30 : f32 to vector<8x1xf32>
    %49 = arith.addf %47, %48 : vector<8x1xf32>
    %50 = math.rsqrt %49 : vector<8x1xf32>
    %51 = vector.broadcast %50 : vector<8x1xf32> to vector<8x128xf32>
    %52 = arith.mulf %42, %51 : vector<8x128xf32>
    %c0_31 = arith.constant 0 : index
    %c0_32 = arith.constant 0 : index
    %53 = vector.load %arg14[%c0_31, %c0_32] : memref<1x128xf32, #tpu.memory_space<vmem>>, vector<1x128xf32>
    %54 = vector.broadcast %53 : vector<1x128xf32> to vector<8x128xf32>
    %55 = arith.mulf %52, %54 : vector<8x128xf32>
    %c0_33 = arith.constant 0 : index
    %c0_34 = arith.constant 0 : index
    %56 = vector.load %arg15[%c0_33, %c0_34] : memref<1x128xf32, #tpu.memory_space<vmem>>, vector<1x128xf32>
    %57 = vector.broadcast %56 : vector<1x128xf32> to vector<8x128xf32>
    %58 = arith.addf %55, %57 : vector<8x128xf32>
    %c0_35 = arith.constant 0 : index
    %c0_36 = arith.constant 0 : index
    %c0_37 = arith.constant 0 : index
    %59 = vector.load %arg16[%c0_35, %c0_36, %c0_37] : memref<1x8x128xf32, #tpu.memory_space<vmem>>, vector<1x8x128xf32>
    %60 = vector.shape_cast %59 : vector<1x8x128xf32> to vector<8x128xf32>
    %61 = vector.shape_cast %58 : vector<8x128xf32> to vector<1x8x128xf32>
    tpu.vector_store %arg16[%c0_35, %c0_36, %c0_37], %61 {strides = array<i32>} : memref<1x8x128xf32, #tpu.memory_space<vmem>>, vector<1x8x128xf32>,
    return
  }
  func.func @transform_0(%arg0: i32, %arg1: i32) -> (i32, i32, i32) {
    %c0_i32 = arith.constant 0 : i32
    %c0_i32_0 = arith.constant 0 : i32
    return %arg0, %arg1, %c0_i32 : i32, i32, i32
  }
  func.func @transform_1(%arg0: i32, %arg1: i32) -> (i32, i32, i32) {
    %c0_i32 = arith.constant 0 : i32
    %c0_i32_0 = arith.constant 0 : i32
    %c0_i32_1 = arith.constant 0 : i32
    return %arg0, %c0_i32, %c0_i32_0 : i32, i32, i32
  }
  func.func @transform_2(%arg0: i32, %arg1: i32) -> (i32, i32, i32) {
    %c0_i32 = arith.constant 0 : i32
    %c0_i32_0 = arith.constant 0 : i32
    %c0_i32_1 = arith.constant 0 : i32
    return %arg0, %c0_i32, %c0_i32_0 : i32, i32, i32
  }
  func.func @transform_3(%arg0: i32, %arg1: i32) -> (i32, i32, i32, i32) {
    %c0_i32 = arith.constant 0 : i32
    %c0_i32_0 = arith.constant 0 : i32
    %c0_i32_1 = arith.constant 0 : i32
    return %arg0, %c0_i32, %arg1, %c0_i32_0 : i32, i32, i32, i32
  }
  func.func @transform_4(%arg0: i32, %arg1: i32) -> (i32, i32) {
    %c0_i32 = arith.constant 0 : i32
    %c0_i32_0 = arith.constant 0 : i32
    %c0_i32_1 = arith.constant 0 : i32
    return %c0_i32, %c0_i32_0 : i32, i32
  }
  func.func @transform_5(%arg0: i32, %arg1: i32) -> (i32, i32) {
    %c0_i32 = arith.constant 0 : i32
    %c0_i32_0 = arith.constant 0 : i32
    %c0_i32_1 = arith.constant 0 : i32
    return %c0_i32, %c0_i32_0 : i32, i32
  }
  func.func @transform_6(%arg0: i32, %arg1: i32) -> (i32, i32) {
    %c0_i32 = arith.constant 0 : i32
    %c0_i32_0 = arith.constant 0 : i32
    %c0_i32_1 = arith.constant 0 : i32
    return %c0_i32, %c0_i32_0 : i32, i32
  }
  func.func @transform_7(%arg0: i32, %arg1: i32) -> (i32, i32) {
    %c0_i32 = arith.constant 0 : i32
    %c0_i32_0 = arith.constant 0 : i32
    %c0_i32_1 = arith.constant 0 : i32
    return %c0_i32, %c0_i32_0 : i32, i32
  }
  func.func @transform_8(%arg0: i32, %arg1: i32) -> (i32, i32) {
    %c0_i32 = arith.constant 0 : i32
    %c0_i32_0 = arith.constant 0 : i32
    %c0_i32_1 = arith.constant 0 : i32
    return %c0_i32, %c0_i32_0 : i32, i32
  }
  func.func @transform_9(%arg0: i32, %arg1: i32) -> (i32, i32) {
    %c0_i32 = arith.constant 0 : i32
    %c0_i32_0 = arith.constant 0 : i32
    %c0_i32_1 = arith.constant 0 : i32
    return %c0_i32, %c0_i32_0 : i32, i32
  }
  func.func @transform_10(%arg0: i32, %arg1: i32) -> (i32, i32) {
    %c0_i32 = arith.constant 0 : i32
    %c0_i32_0 = arith.constant 0 : i32
    %c0_i32_1 = arith.constant 0 : i32
    return %c0_i32, %c0_i32_0 : i32, i32
  }
  func.func @transform_11(%arg0: i32, %arg1: i32) -> (i32, i32) {
    %c0_i32 = arith.constant 0 : i32
    %c0_i32_0 = arith.constant 0 : i32
    %c0_i32_1 = arith.constant 0 : i32
    return %c0_i32, %c0_i32_0 : i32, i32
  }
  func.func @transform_12(%arg0: i32, %arg1: i32) -> (i32, i32) {
    %c0_i32 = arith.constant 0 : i32
    %c0_i32_0 = arith.constant 0 : i32
    %c0_i32_1 = arith.constant 0 : i32
    return %c0_i32, %c0_i32_0 : i32, i32
  }
  func.func @transform_13(%arg0: i32, %arg1: i32) -> (i32, i32) {
    %c0_i32 = arith.constant 0 : i32
    %c0_i32_0 = arith.constant 0 : i32
    %c0_i32_1 = arith.constant 0 : i32
    return %c0_i32, %c0_i32_0 : i32, i32
  }
  func.func @transform_14(%arg0: i32, %arg1: i32) -> (i32, i32, i32) {
    %c0_i32 = arith.constant 0 : i32
    %c0_i32_0 = arith.constant 0 : i32
    return %arg0, %arg1, %c0_i32 : i32, i32, i32
  }
}

module attributes {stable_mosaic.version = 11 : i64} {
  func.func @kernel(%arg0: i32, %arg1: i32, %arg2: memref<1x8x128xf32, #tpu.memory_space<vmem>>, %arg3: memref<1x16x64xf32, #tpu.memory_space<vmem>>, %arg4: memref<1x16x64xf32, #tpu.memory_space<vmem>>, %arg5: memref<1x4x8x16xf32, #tpu.memory_space<vmem>>, %arg6: memref<128x128xf32, #tpu.memory_space<vmem>>, %arg7: memref<1x128xf32, #tpu.memory_space<vmem>>, %arg8: memref<64x128xf32, #tpu.memory_space<vmem>>, %arg9: memref<1x128xf32, #tpu.memory_space<vmem>>, %arg10: memref<64x128xf32, #tpu.memory_space<vmem>>, %arg11: memref<1x128xf32, #tpu.memory_space<vmem>>, %arg12: memref<128x128xf32, #tpu.memory_space<vmem>>, %arg13: memref<1x128xf32, #tpu.memory_space<vmem>>, %arg14: memref<1x128xf32, #tpu.memory_space<vmem>>, %arg15: memref<1x128xf32, #tpu.memory_space<vmem>>, %arg16: memref<1x8x128xf32, #tpu.memory_space<vmem>>, %arg17: memref<4x16x32xf32, #tpu.memory_space<vmem>>, %arg18: memref<4x16x32xf32, #tpu.memory_space<vmem>>) attributes {dimension_semantics = [#tpu.dimension_semantics<parallel>, #tpu.dimension_semantics<arbitrary>], iteration_bounds = array<i64: 2, 1>, scalar_prefetch = 0 : i64, scratch_operands = 2 : i64, tpu.core_type = #tpu.core_type<tc>, window_params = [{transform_indices = @transform_0, window_bounds = array<i64: 1, 8, 128>}, {transform_indices = @transform_1, window_bounds = array<i64: 1, 16, 64>}, {transform_indices = @transform_2, window_bounds = array<i64: 1, 16, 64>}, {transform_indices = @transform_3, window_bounds = array<i64: 1, 4, 8, 16>}, {pipeline_mode = #tpu.pipeline_mode<synchronous>, transform_indices = @transform_4, window_bounds = array<i64: 128, 128>}, {pipeline_mode = #tpu.pipeline_mode<synchronous>, transform_indices = @transform_5, window_bounds = array<i64: 1, 128>}, {pipeline_mode = #tpu.pipeline_mode<synchronous>, transform_indices = @transform_6, window_bounds = array<i64: 64, 128>}, {pipeline_mode = #tpu.pipeline_mode<synchronous>, transform_indices = @transform_7, window_bounds = array<i64: 1, 128>}, {pipeline_mode = #tpu.pipeline_mode<synchronous>, transform_indices = @transform_8, window_bounds = array<i64: 64, 128>}, {pipeline_mode = #tpu.pipeline_mode<synchronous>, transform_indices = @transform_9, window_bounds = array<i64: 1, 128>}, {pipeline_mode = #tpu.pipeline_mode<synchronous>, transform_indices = @transform_10, window_bounds = array<i64: 128, 128>}, {pipeline_mode = #tpu.pipeline_mode<synchronous>, transform_indices = @transform_11, window_bounds = array<i64: 1, 128>}, {pipeline_mode = #tpu.pipeline_mode<synchronous>, transform_indices = @transform_12, window_bounds = array<i64: 1, 128>}, {pipeline_mode = #tpu.pipeline_mode<synchronous>, transform_indices = @transform_13, window_bounds = array<i64: 1, 128>}, {transform_indices = @transform_14, window_bounds = array<i64: 1, 8, 128>}]} {
    %c0_i32 = arith.constant 0 : i32
    %0 = arith.cmpi eq, %arg1, %c0_i32 : i32
    %1 = arith.extui %0 : i1 to i32
    %c0_i32_0 = arith.constant 0 : i32
    %2 = arith.cmpi ne, %1, %c0_i32_0 : i32
    scf.if %2 {
      %c0_38 = arith.constant 0 : index
      %c0_39 = arith.constant 0 : index
      %c0_40 = arith.constant 0 : index
      %62 = vector.load %arg3[%c0_38, %c0_39, %c0_40] : memref<1x16x64xf32, #tpu.memory_space<vmem>>, vector<1x16x64xf32>
      %63 = vector.shape_cast %62 : vector<1x16x64xf32> to vector<16x64xf32>
      %c0_41 = arith.constant 0 : index
      %c0_42 = arith.constant 0 : index
      %c0_43 = arith.constant 0 : index
      %64 = vector.load %arg4[%c0_41, %c0_42, %c0_43] : memref<1x16x64xf32, #tpu.memory_space<vmem>>, vector<1x16x64xf32>
      %65 = vector.shape_cast %64 : vector<1x16x64xf32> to vector<16x64xf32>
      %c0_44 = arith.constant 0 : index
      %c0_45 = arith.constant 0 : index
      %66 = vector.load %arg8[%c0_44, %c0_45] : memref<64x128xf32, #tpu.memory_space<vmem>>, vector<64x128xf32>
      %cst_46 = arith.constant dense<0.000000e+00> : vector<16x128xf32>
      %67 = tpu.matmul %63, %66, %cst_46 {dimension_numbers = #tpu.dot_dimension_numbers<[1], [0], [0], [1], [0, 0, 1, 1], [], []>} : vector<16x64xf32>, vector<64x128xf32>, vector<16x128xf32> -> vector<16x128xf32>
      %c0_47 = arith.constant 0 : index
      %c0_48 = arith.constant 0 : index
      %68 = vector.load %arg9[%c0_47, %c0_48] : memref<1x128xf32, #tpu.memory_space<vmem>>, vector<1x128xf32>
      %69 = vector.broadcast %68 : vector<1x128xf32> to vector<16x128xf32>
      %70 = arith.addf %67, %69 : vector<16x128xf32>
      %c0_49 = arith.constant 0 : index
      %c0_50 = arith.constant 0 : index
      %71 = vector.load %arg10[%c0_49, %c0_50] : memref<64x128xf32, #tpu.memory_space<vmem>>, vector<64x128xf32>
      %cst_51 = arith.constant dense<0.000000e+00> : vector<16x128xf32>
      %72 = tpu.matmul %65, %71, %cst_51 {dimension_numbers = #tpu.dot_dimension_numbers<[1], [0], [0], [1], [0, 0, 1, 1], [], []>} : vector<16x64xf32>, vector<64x128xf32>, vector<16x128xf32> -> vector<16x128xf32>
      %c0_52 = arith.constant 0 : index
      %c0_53 = arith.constant 0 : index
      %73 = vector.load %arg11[%c0_52, %c0_53] : memref<1x128xf32, #tpu.memory_space<vmem>>, vector<1x128xf32>
      %74 = vector.broadcast %73 : vector<1x128xf32> to vector<16x128xf32>
      %75 = arith.addf %72, %74 : vector<16x128xf32>
      %76 = vector.shape_cast %70 : vector<16x128xf32> to vector<16x4x32xf32>
      %77 = tpu.transpose %76, [1, 0, 2] : vector<16x4x32xf32> -> vector<4x16x32xf32>
      %c0_54 = arith.constant 0 : index
      %c0_55 = arith.constant 0 : index
      %c0_56 = arith.constant 0 : index
      %78 = vector.load %arg17[%c0_54, %c0_55, %c0_56] : memref<4x16x32xf32, #tpu.memory_space<vmem>>, vector<4x16x32xf32>
      tpu.vector_store %arg17[%c0_54, %c0_55, %c0_56], %77 {strides = array<i32>} : memref<4x16x32xf32, #tpu.memory_space<vmem>>, vector<4x16x32xf32>,
      %79 = vector.shape_cast %75 : vector<16x128xf32> to vector<16x4x32xf32>
      %80 = tpu.transpose %79, [1, 0, 2] : vector<16x4x32xf32> -> vector<4x16x32xf32>
      %c0_57 = arith.constant 0 : index
      %c0_58 = arith.constant 0 : index
      %c0_59 = arith.constant 0 : index
      %81 = vector.load %arg18[%c0_57, %c0_58, %c0_59] : memref<4x16x32xf32, #tpu.memory_space<vmem>>, vector<4x16x32xf32>
      tpu.vector_store %arg18[%c0_57, %c0_58, %c0_59], %80 {strides = array<i32>} : memref<4x16x32xf32, #tpu.memory_space<vmem>>, vector<4x16x32xf32>,
    } else {
    }
    %c0 = arith.constant 0 : index
    %c0_1 = arith.constant 0 : index
    %c0_2 = arith.constant 0 : index
    %3 = vector.load %arg2[%c0, %c0_1, %c0_2] : memref<1x8x128xf32, #tpu.memory_space<vmem>>, vector<1x8x128xf32>
    %4 = vector.shape_cast %3 : vector<1x8x128xf32> to vector<8x128xf32>
    %c0_3 = arith.constant 0 : index
    %c0_4 = arith.constant 0 : index
    %5 = vector.load %arg6[%c0_3, %c0_4] : memref<128x128xf32, #tpu.memory_space<vmem>>, vector<128x128xf32>
    %cst = arith.constant dense<0.000000e+00> : vector<8x128xf32>
    %6 = tpu.matmul %4, %5, %cst {dimension_numbers = #tpu.dot_dimension_numbers<[1], [0], [0], [1], [0, 0, 1, 1], [], []>} : vector<8x128xf32>, vector<128x128xf32>, vector<8x128xf32> -> vector<8x128xf32>
    %c0_5 = arith.constant 0 : index
    %c0_6 = arith.constant 0 : index
    %7 = vector.load %arg7[%c0_5, %c0_6] : memref<1x128xf32, #tpu.memory_space<vmem>>, vector<1x128xf32>
    %8 = vector.broadcast %7 : vector<1x128xf32> to vector<8x128xf32>
    %9 = arith.addf %6, %8 : vector<8x128xf32>
    %10 = vector.shape_cast %9 : vector<8x128xf32> to vector<8x4x32xf32>
    %11 = tpu.transpose %10, [1, 0, 2] : vector<8x4x32xf32> -> vector<4x8x32xf32>
    %c0_7 = arith.constant 0 : index
    %c0_8 = arith.constant 0 : index
    %c0_9 = arith.constant 0 : index
    %c0_10 = arith.constant 0 : index
    %12 = vector.load %arg5[%c0_7, %c0_8, %c0_9, %c0_10] : memref<1x4x8x16xf32, #tpu.memory_space<vmem>>, vector<1x4x8x16xf32>
    %13 = vector.shape_cast %12 : vector<1x4x8x16xf32> to vector<4x8x16xf32>
    %c0_11 = arith.constant 0 : index
    %c0_12 = arith.constant 0 : index
    %c0_13 = arith.constant 0 : index
    %14 = vector.load %arg17[%c0_11, %c0_12, %c0_13] : memref<4x16x32xf32, #tpu.memory_space<vmem>>, vector<4x16x32xf32>
    "tpu.trace_start"() <{level = 10 : i32, message = "hqd,hkd->hqk"}> : () -> ()
    %cst_14 = arith.constant dense<0.000000e+00> : vector<4x8x16xf32>
    %15 = tpu.matmul %11, %14, %cst_14 {dimension_numbers = #tpu.dot_dimension_numbers<[2], [2], [1], [1], [0, 0, 0, 1, 1, 1], [0], [0]>} : vector<4x8x32xf32>, vector<4x16x32xf32>, vector<4x8x16xf32> -> vector<4x8x16xf32>
    "tpu.trace_stop"() : () -> ()
    %16 = arith.addf %15, %13 : vector<4x8x16xf32>
    %cst_15 = arith.constant dense<0xFF800000> : vector<4x8xf32>
    %17 = vector.multi_reduction <maximumf>, %16, %cst_15 [2] : vector<4x8x16xf32> to vector<4x8xf32>
    %18 = vector.shape_cast %17 : vector<4x8xf32> to vector<4x8x1xf32>
    %19 = vector.broadcast %18 : vector<4x8x1xf32> to vector<4x8x16xf32>
    %20 = arith.subf %16, %19 : vector<4x8x16xf32>
    %21 = math.exp %20 : vector<4x8x16xf32>
    %cst_16 = arith.constant dense<0.000000e+00> : vector<4x8xf32>
    %22 = vector.multi_reduction <add>, %21, %cst_16 [2] : vector<4x8x16xf32> to vector<4x8xf32>
    %23 = vector.shape_cast %22 : vector<4x8xf32> to vector<4x8x1xf32>
    %24 = tpu.reciprocal %23 {approx = true} : vector<4x8x1xf32> -> vector<4x8x1xf32>
    %25 = vector.broadcast %24 : vector<4x8x1xf32> to vector<4x8x16xf32>
    %26 = arith.mulf %21, %25 : vector<4x8x16xf32>
    %c0_17 = arith.constant 0 : index
    %c0_18 = arith.constant 0 : index
    %c0_19 = arith.constant 0 : index
    %27 = vector.load %arg18[%c0_17, %c0_18, %c0_19] : memref<4x16x32xf32, #tpu.memory_space<vmem>>, vector<4x16x32xf32>
    "tpu.trace_start"() <{level = 10 : i32, message = "hqk,hkd->hqd"}> : () -> ()
    %cst_20 = arith.constant dense<0.000000e+00> : vector<4x8x32xf32>
    %28 = tpu.matmul %26, %27, %cst_20 {dimension_numbers = #tpu.dot_dimension_numbers<[2], [1], [1], [2], [0, 0, 0, 1, 1, 2], [0], [0]>} : vector<4x8x16xf32>, vector<4x16x32xf32>, vector<4x8x32xf32> -> vector<4x8x32xf32>
    "tpu.trace_stop"() : () -> ()
    %29 = tpu.transpose %28, [1, 0, 2] : vector<4x8x32xf32> -> vector<8x4x32xf32>
    %30 = vector.shape_cast %29 : vector<8x4x32xf32> to vector<8x128xf32>
    %c0_21 = arith.constant 0 : index
    %c0_22 = arith.constant 0 : index
    %31 = vector.load %arg12[%c0_21, %c0_22] : memref<128x128xf32, #tpu.memory_space<vmem>>, vector<128x128xf32>
    %cst_23 = arith.constant dense<0.000000e+00> : vector<8x128xf32>
    %32 = tpu.matmul %30, %31, %cst_23 {dimension_numbers = #tpu.dot_dimension_numbers<[1], [0], [0], [1], [0, 0, 1, 1], [], []>} : vector<8x128xf32>, vector<128x128xf32>, vector<8x128xf32> -> vector<8x128xf32>
    %c0_24 = arith.constant 0 : index
    %c0_25 = arith.constant 0 : index
    %33 = vector.load %arg13[%c0_24, %c0_25] : memref<1x128xf32, #tpu.memory_space<vmem>>, vector<1x128xf32>
    %34 = vector.broadcast %33 : vector<1x128xf32> to vector<8x128xf32>
    %35 = arith.addf %32, %34 : vector<8x128xf32>
    %36 = arith.addf %35, %4 : vector<8x128xf32>
    %cst_26 = arith.constant dense<0.000000e+00> : vector<8xf32>
    %37 = vector.multi_reduction <add>, %36, %cst_26 [1] : vector<8x128xf32> to vector<8xf32>
    %38 = vector.shape_cast %37 : vector<8xf32> to vector<8x1xf32>
    %cst_27 = arith.constant 1.280000e+02 : f32
    %39 = vector.broadcast %cst_27 : f32 to vector<8x1xf32>
    %40 = arith.divf %38, %39 : vector<8x1xf32>
    %41 = vector.broadcast %40 : vector<8x1xf32> to vector<8x128xf32>
    %42 = arith.subf %36, %41 : vector<8x128xf32>
    %43 = arith.mulf %42, %42 : vector<8x128xf32>
    %cst_28 = arith.constant dense<0.000000e+00> : vector<8xf32>
    %44 = vector.multi_reduction <add>, %43, %cst_28 [1] : vector<8x128xf32> to vector<8xf32>
    %45 = vector.shape_cast %44 : vector<8xf32> to vector<8x1xf32>
    %cst_29 = arith.constant 1.280000e+02 : f32
    %46 = vector.broadcast %cst_29 : f32 to vector<8x1xf32>
    %47 = arith.divf %45, %46 : vector<8x1xf32>
    %cst_30 = arith.constant 9.99999974E-6 : f32
    %48 = vector.broadcast %cst_30 : f32 to vector<8x1xf32>
    %49 = arith.addf %47, %48 : vector<8x1xf32>
    %50 = math.rsqrt %49 : vector<8x1xf32>
    %51 = vector.broadcast %50 : vector<8x1xf32> to vector<8x128xf32>
    %52 = arith.mulf %42, %51 : vector<8x128xf32>
    %c0_31 = arith.constant 0 : index
    %c0_32 = arith.constant 0 : index
    %53 = vector.load %arg14[%c0_31, %c0_32] : memref<1x128xf32, #tpu.memory_space<vmem>>, vector<1x128xf32>
    %54 = vector.broadcast %53 : vector<1x128xf32> to vector<8x128xf32>
    %55 = arith.mulf %52, %54 : vector<8x128xf32>
    %c0_33 = arith.constant 0 : index
    %c0_34 = arith.constant 0 : index
    %56 = vector.load %arg15[%c0_33, %c0_34] : memref<1x128xf32, #tpu.memory_space<vmem>>, vector<1x128xf32>
    %57 = vector.broadcast %56 : vector<1x128xf32> to vector<8x128xf32>
    %58 = arith.addf %55, %57 : vector<8x128xf32>
    %c0_35 = arith.constant 0 : index
    %c0_36 = arith.constant 0 : index
    %c0_37 = arith.constant 0 : index
    %59 = vector.load %arg16[%c0_35, %c0_36, %c0_37] : memref<1x8x128xf32, #tpu.memory_space<vmem>>, vector<1x8x128xf32>
    %60 = vector.shape_cast %59 : vector<1x8x128xf32> to vector<8x128xf32>
    %61 = vector.shape_cast %58 : vector<8x128xf32> to vector<1x8x128xf32>
    tpu.vector_store %arg16[%c0_35, %c0_36, %c0_37], %61 {strides = array<i32>} : memref<1x8x128xf32, #tpu.memory_space<vmem>>, vector<1x8x128xf32>,
    return
  }
  func.func @transform_0(%arg0: i32, %arg1: i32) -> (i32, i32, i32) {
    %c0_i32 = arith.constant 0 : i32
    %c0_i32_0 = arith.constant 0 : i32
    return %arg0, %arg1, %c0_i32 : i32, i32, i32
  }
  func.func @transform_1(%arg0: i32, %arg1: i32) -> (i32, i32, i32) {
    %c0_i32 = arith.constant 0 : i32
    %c0_i32_0 = arith.constant 0 : i32
    %c0_i32_1 = arith.constant 0 : i32
    return %arg0, %c0_i32, %c0_i32_0 : i32, i32, i32
  }
  func.func @transform_2(%arg0: i32, %arg1: i32) -> (i32, i32, i32) {
    %c0_i32 = arith.constant 0 : i32
    %c0_i32_0 = arith.constant 0 : i32
    %c0_i32_1 = arith.constant 0 : i32
    return %arg0, %c0_i32, %c0_i32_0 : i32, i32, i32
  }
  func.func @transform_3(%arg0: i32, %arg1: i32) -> (i32, i32, i32, i32) {
    %c0_i32 = arith.constant 0 : i32
    %c0_i32_0 = arith.constant 0 : i32
    %c0_i32_1 = arith.constant 0 : i32
    return %arg0, %c0_i32, %arg1, %c0_i32_0 : i32, i32, i32, i32
  }
  func.func @transform_4(%arg0: i32, %arg1: i32) -> (i32, i32) {
    %c0_i32 = arith.constant 0 : i32
    %c0_i32_0 = arith.constant 0 : i32
    %c0_i32_1 = arith.constant 0 : i32
    return %c0_i32, %c0_i32_0 : i32, i32
  }
  func.func @transform_5(%arg0: i32, %arg1: i32) -> (i32, i32) {
    %c0_i32 = arith.constant 0 : i32
    %c0_i32_0 = arith.constant 0 : i32
    %c0_i32_1 = arith.constant 0 : i32
    return %c0_i32, %c0_i32_0 : i32, i32
  }
  func.func @transform_6(%arg0: i32, %arg1: i32) -> (i32, i32) {
    %c0_i32 = arith.constant 0 : i32
    %c0_i32_0 = arith.constant 0 : i32
    %c0_i32_1 = arith.constant 0 : i32
    return %c0_i32, %c0_i32_0 : i32, i32
  }
  func.func @transform_7(%arg0: i32, %arg1: i32) -> (i32, i32) {
    %c0_i32 = arith.constant 0 : i32
    %c0_i32_0 = arith.constant 0 : i32
    %c0_i32_1 = arith.constant 0 : i32
    return %c0_i32, %c0_i32_0 : i32, i32
  }
  func.func @transform_8(%arg0: i32, %arg1: i32) -> (i32, i32) {
    %c0_i32 = arith.constant 0 : i32
    %c0_i32_0 = arith.constant 0 : i32
    %c0_i32_1 = arith.constant 0 : i32
    return %c0_i32, %c0_i32_0 : i32, i32
  }
  func.func @transform_9(%arg0: i32, %arg1: i32) -> (i32, i32) {
    %c0_i32 = arith.constant 0 : i32
    %c0_i32_0 = arith.constant 0 : i32
    %c0_i32_1 = arith.constant 0 : i32
    return %c0_i32, %c0_i32_0 : i32, i32
  }
  func.func @transform_10(%arg0: i32, %arg1: i32) -> (i32, i32) {
    %c0_i32 = arith.constant 0 : i32
    %c0_i32_0 = arith.constant 0 : i32
    %c0_i32_1 = arith.constant 0 : i32
    return %c0_i32, %c0_i32_0 : i32, i32
  }
  func.func @transform_11(%arg0: i32, %arg1: i32) -> (i32, i32) {
    %c0_i32 = arith.constant 0 : i32
    %c0_i32_0 = arith.constant 0 : i32
    %c0_i32_1 = arith.constant 0 : i32
    return %c0_i32, %c0_i32_0 : i32, i32
  }
  func.func @transform_12(%arg0: i32, %arg1: i32) -> (i32, i32) {
    %c0_i32 = arith.constant 0 : i32
    %c0_i32_0 = arith.constant 0 : i32
    %c0_i32_1 = arith.constant 0 : i32
    return %c0_i32, %c0_i32_0 : i32, i32
  }
  func.func @transform_13(%arg0: i32, %arg1: i32) -> (i32, i32) {
    %c0_i32 = arith.constant 0 : i32
    %c0_i32_0 = arith.constant 0 : i32
    %c0_i32_1 = arith.constant 0 : i32
    return %c0_i32, %c0_i32_0 : i32, i32
  }
  func.func @transform_14(%arg0: i32, %arg1: i32) -> (i32, i32, i32) {
    %c0_i32 = arith.constant 0 : i32
    %c0_i32_0 = arith.constant 0 : i32
    return %arg0, %arg1, %c0_i32 : i32, i32, i32
  }
}

</mosaic_0001>

<bundles_post_ra>
// kernel: tpu_custom_call.1
= control target key start
LH: loop header
LB: loop body
LE: loop exit
PB: predicated region body
PF: predicated region fallthrough
CT: control target
= control target key end

     0   :  { %s3406_s0 = inlined_call_operand.hbm [shape: f32[2,8,128], index: 0, kind: input, shape index: {}]   ;;  %s3407_s1 = inlined_call_operand.hbm [shape: f32[2,16,64], index: 1, kind: input, shape index: {}]   ;;  %s3408_s2 = inlined_call_operand.hbm [shape: f32[2,16,64], index: 2, kind: input, shape index: {}]   ;;  %s3409_s3 = inlined_call_operand.hbm [shape: f32[2,4,8,16], index: 3, kind: input, shape index: {}]   ;;  %s3410_s4 = inlined_call_operand.hbm [shape: f32[128,128], index: 4, kind: input, shape index: {}]   ;;  %s3411_s5 = inlined_call_operand.vmem [shape: f32[1,128], index: 5, kind: input, shape index: {}]   ;;  %s3412_s6 = inlined_call_operand.hbm [shape: f32[64,128], index: 6, kind: input, shape index: {}]   ;;  %s3413_s7 = inlined_call_operand.vmem [shape: f32[1,128], index: 7, kind: input, shape index: {}]   ;;  %s3414_s8 = inlined_call_operand.hbm [shape: f32[64,128], index: 8, kind: input, shape index: {}]   ;;  %s3415_s9 = inlined_call_operand.vmem [shape: f32[1,128], index: 9, kind: input, shape index: {}]   ;;  %s3416_s10 = inlined_call_operand.hbm [shape: f32[128,128], index: 10, kind: input, shape index: {}]   ;;  %s3417_s11 = inlined_call_operand.vmem [shape: f32[1,128], index: 11, kind: input, shape index: {}]   ;;  %s3418_s12 = inlined_call_operand.vmem [shape: f32[1,128], index: 12, kind: input, shape index: {}]   ;;  %s3419_s13 = inlined_call_operand.vmem [shape: f32[1,128], index: 13, kind: input, shape index: {}]   ;;  %s3420_s14 = inlined_call_operand.hbm [shape: f32[2,8,128], index: 14, kind: output, shape index: {}]  }
   0x1   :  { %3433 = sst [smem:[#allocation33_spill]] %s3407_s1 }
   0x2   :  { %3434 = sst [smem:[#allocation34_spill]] %s3410_s4 }
   0x3   :  { %3435 = sst [smem:[#allocation35_spill]] %s3411_s5 }
   0x4   :  { %3436 = sst [smem:[#allocation36_spill]] %s3412_s6 }
   0x5   :  { %3437 = sst [smem:[#allocation37_spill]] %s3413_s7 }
   0x6   :  { %3438 = sst [smem:[#allocation38_spill]] %s3415_s9 }
   0x7   :  { %3439 = sst [smem:[#allocation39_spill]] %s3417_s11 }
   0x8   :  { %3440 = sst [smem:[#allocation40_spill]] %s3418_s12 }
   0x9   :  { %3441 = sst [smem:[#allocation41_spill]] %s3419_s13 }
   0xa   :  { %3442 = sst [smem:[#allocation42_spill]] %s3420_s14 }
   0xb   :  { %19 = vsyncpa [#allocation5], 0 }
   0xc   :  { %21 = vsyncpa [#allocation5 + $0x1], 0 }
   0xd   :  { %22 = vsyncpa [#allocation8], 0 }
   0xe   :  { %24 = vsyncpa [#allocation8 + $0x1], 0 }
   0xf   :  { %25 = vsyncpa [#allocation11], 0 }
  0x10   :  { %27 = vsyncpa [#allocation11 + $0x1], 0 }
  0x11   :  { %28 = vsyncpa [#allocation14], 0 }
  0x12   :  { %29 = vsyncpa [#allocation17], 0 }
  0x13   :  { %30 = vsyncpa [#allocation6], 0 }
  0x14   :  { %32 = vsyncpa [#allocation6 + $0x1], 0  ;;  %s2768_s29 = smov 0   ;;  %s2770_s30 = smov 0  }
  0x15   :  { %s2772_s15 = smov 0   ;;  %s2774_s16 = smov 0  }
  0x16   :  { %s2776_s17 = smov 0   ;;  %s2778_s18 = smov 0  }
  0x17 LB: > { %3443 = sst [smem:[#allocation26_spill]] %s2659_s29  ;;  %s2799_s19 = sadd.s32 4294967295, %s2679_s18   ;;  %s2679_s18 = sphi %s2778_s18, %s38_s18   ;;  %s2675_s17 = sphi %s2776_s17, %s3480_s17   ;;  %s2671_s16 = sphi %s2774_s16, %s3479_s16   ;;  %s2667_s15 = sphi %s2772_s15, %s3475_s15   ;;  %s2663_s30 = sphi %s2770_s30, %s3478_s30   ;;  %s2659_s29 = sphi %s2768_s29, %s3477_s29  }
  0x18   : > { %3444 = sst [smem:[#allocation27_spill]] %s2667_s15  ;;  %s2129_s20 = sadd.s32 4294967294, %s2679_s18  }
  0x19   : > { %3445 = sst [smem:[#allocation28_spill]] %s2671_s16  ;;  %p72_p0 = scmp.ne.s32.totalorder %s2663_s30, %s2659_s29 }
  0x1a   : > { %p73_p1 = scmp.eq.s32.totalorder %s2799_s19, 0  ;;  %p388_p2 = scmp.eq.s32.totalorder %s2799_s19, 1 }
  0x1b   : > { %p394_p3 = scmp.eq.s32.totalorder %s2129_s20, 1  ;;  %p2130_p5 = scmp.ge.s32.totalorder %s2679_s18, 1 }
  0x1c   : > { %p2808_p4 = por %p73_p1, %p72_p0  ;;  %p401_p7 = scmp.lt.s32.totalorder %s2679_s18, 3 }
  0x1d   : > { %p2813_p6 = por %p394_p3, %p72_p0  ;;  %s3449_s4 = sld [smem:[#allocation34_spill]] }
  0x1e   : > { %p2821_p8 = pnand %p2130_p5, %p401_p7  ;;  %s2681_s27 = smov [#allocation12]  }
  0x1f   : > { %s3447_s22 = scalar_select %p2813_p6, 1, 0 }
  0x20   : > { %p2210_p9 = pneg %p2821_p8  ;;  %s414_s28 = sshll.u32 %s2681_s27, 4  ;;  %s415_s28 = int_to_ptr.vmem [resolvable:$true] %s414_s28 }
  0x21   : > { %3448 = sst [smem:[#allocation29_spill]] %s3447_s22  ;;  %s3423_s27 = smov 128  }
  0x22   : > { %p2829_p10 = pnand %p2210_p9, %p73_p1  ;;  %s3452_s6 = sld [smem:[#allocation36_spill]] }
  0x23   : > { %s412_s25 = sshll.u32 %s3449_s4, 4  ;;  %s3425_s22 = smov 8   ;;  %s413_s25 = int_to_ptr.hbm [resolvable:$true] %s412_s25 }
  0x24   : > { %2213 = dma.hbm_to_vmem [thread:$0]  (!%p2829_p10), %s413_s25, 2048, %s415_s28, [#allocation11], %s3423_s27, %s3423_s27, %s3425_s22  }
  0x25   : > { %s2684_s29 = smov [#allocation13]   ;;  %s50_s23 = sadd.s32 1, %s2675_s17 }
  0x26   : > { %s431_s13 = sshll.u32 %s2684_s29, 4  ;;  %s59_s24 = sadd.s32 1, %s2667_s15  ;;  %s432_s13 = int_to_ptr.vmem [resolvable:$true] %s431_s13 }
  0x27   : > { %p52_p12 = scmp.ge.s32.totalorder %s50_s23, 2  ;;  %p66_p13 = scmp.ne.s32.totalorder %s2667_s15, %s2663_s30 }
  0x28   : > { %s429_s4 = sshll.u32 %s3452_s6, 4  ;;  %p67_p0 = scmp.eq.s32.totalorder %s2679_s18, 0  ;;  %s430_s4 = int_to_ptr.hbm [resolvable:$true] %s429_s4 }
  0x29   : > { %2216 = dma.hbm_to_vmem [thread:$0]  (!%p2829_p10), %s430_s4, 1024, %s432_s13, [#allocation14], %s3423_s27, %s3423_s27, %s3425_s22  }
  0x2a   : > { %p2244_p3 = scmp.lt.s32.totalorder %s2679_s18, 2  ;;  %s3482_s23 = smov (%p52_p12, %s50_s23), 0 }
  0x2b   : > { %3453 = sst [smem:[#allocation30_spill]] %s3482_s23  ;;  %p68_p5 = por %p67_p0, %p66_p13 }
  0x2c   : > { %p2857_p7 = por %p388_p2, %p66_p13  ;;  %s54_s25 = ssub.s32 %s2675_s17, %s3482_s23 }
  0x2d   : > { %s2864_s4 = sand.u32 1, %s2667_s15   ;;  %p57_p9 = scmp.eq.s32.totalorder %s54_s25, 0 }
  0x2e   : > { %s3454_s29 = scalar_select %p2857_p7, 1, 0 }
  0x2f   : > { %p2866_p11 = pnand %p2244_p3, %p68_p5  ;;  %s3431_s28 = sand.u32 1, %s2679_s18  }
  0x30   : > { %3455 = sst [smem:[#allocation31_spill]] %s3454_s29  ;;  %s2138_s27 = sshll.u32 %s2864_s4, 4 }
  0x31   : > { %s2873_s22 = scalar_select %p57_p9, %s2667_s15, %s59_s24  }
  0x32   : > { %s2181_s6 = sshll.u32 %s2675_s17, 4  ;;  %s3458_s1 = sld [smem:[#allocation33_spill]] }
  0x33   : > { %3457 = sst [smem:[#allocation32_spill]] %s2873_s22  ;;  %s512_s29 = scalar_lea.vmem [#allocation7], %s2138_s27 }
  0x34   : > { %s520_s23 = sshll.u32 %s512_s29, 4  ;;  %s2881_s25 = scalar_lea.sflag [#allocation8], %s3431_s28  ;;  %s521_s23 = int_to_ptr.vmem [resolvable:$true] %s520_s23 }
  0x35   : > { %s3459_s9 = smov 8   ;;  %s3460_s5 = smov 128  }
  0x36   : > { %s539_s12 = scalar_lea.hbm %s3408_s2, %s2181_s6  ;;  %s534_s14 = scalar_lea.vmem [#allocation9], %s2138_s27 }
  0x37   : > { %s542_s29 = sshll.u32 %s534_s14, 4  ;;  %s446_s15 = sshll.u32 %s3414_s8, 4  ;;  %s2892_s29 = int_to_ptr.vmem [resolvable:$true] %s542_s29  ;;  %s447_s15 = int_to_ptr.hbm [resolvable:$true] %s446_s15 }
  0x38   : > { %s517_s16 = scalar_lea.hbm %s3458_s1, %s2181_s6  ;;  %s2685_s7 = smov [#allocation15]  }
  0x39   : > { %s518_s11 = sshll.u32 %s517_s16, 4  ;;  %s540_s16 = sshll.u32 %s539_s12, 4  ;;  %s519_s11 = int_to_ptr.hbm [resolvable:$true] %s518_s11  ;;  %s541_s16 = int_to_ptr.hbm [resolvable:$true] %s540_s16 }
  0x3a   : > { %2229 = dma.hbm_to_vmem [thread:$0]  (!%p2866_p11), %s519_s11, 256, %s521_s23, %s2881_s25, %s3460_s5, %s3460_s5, %s3459_s9  }
  0x3b   : > { %s448_s11 = sshll.u32 %s2685_s7, 4  ;;  %s463_s6 = sshll.u32 %s3416_s10, 4  ;;  %s449_s11 = int_to_ptr.vmem [resolvable:$true] %s448_s11  ;;  %s464_s6 = int_to_ptr.hbm [resolvable:$true] %s463_s6 }
  0x3c   : > { %2219 = dma.hbm_to_vmem [thread:$0]  (!%p2829_p10), %s447_s15, 1024, %s449_s11, [#allocation14], %s3460_s5, %s3460_s5, %s3459_s9  }
  0x3d   : > { %s2686_s1 = smov [#allocation16]   ;;  %s2136_s27 = sshll.u32 %s2864_s4, 3 }
  0x3e   : > { %s465_s7 = sshll.u32 %s2686_s1, 4  ;;  %s2137_s28 = sshll.u32 %s2675_s17, 3  ;;  %s466_s7 = int_to_ptr.vmem [resolvable:$true] %s465_s7 }
  0x3f   : > { %2222 = dma.hbm_to_vmem [thread:$0]  (!%p2829_p10), %s464_s6, 2048, %s466_s7, [#allocation17], %s3460_s5, %s3460_s5, %s3459_s9  }
  0x40   : > { %s497_s15 = scalar_lea.hbm %s3406_s0, %s2137_s28  ;;  %s492_s14 = scalar_lea.vmem [#allocation4], %s2136_s27 }
  0x41   : > { %s501_s11 = sshll.u32 %s492_s14, 4  ;;  %s499_s23 = sshll.u32 %s497_s15, 4  ;;  %s502_s11 = int_to_ptr.vmem [resolvable:$true] %s501_s11  ;;  %s500_s23 = int_to_ptr.hbm [resolvable:$true] %s499_s23 }
  0x42   : > { %s2144_s22 = sshll.u32 %s2864_s4, 5  ;;  %s489_s1 = scalar_lea.sflag [#allocation5], %s2864_s4 }
  0x43   : > { %2226 = dma.hbm_to_vmem [thread:$0]  (!%p2866_p11), %s500_s23, 128, %s502_s11, %s489_s1  }
  0x44   : > { %2232 = dma.hbm_to_vmem [thread:$0]  (!%p2866_p11), %s541_s16, 256, %s2892_s29, %s2881_s25, %s3460_s5, %s3460_s5, %s3459_s9  }
  0x45   : > { %s2183_s20 = sshll.u32 %s2675_s17, 5  ;;  %s556_s28 = scalar_lea.vmem [#allocation10], %s2144_s22 }
  0x46   : > { %s562_s27 = scalar_lea.hbm %s3409_s3, %s2183_s20  ;;  %s565_s24 = sshll.u32 %s556_s28, 4  ;;  %s566_s24 = int_to_ptr.vmem [resolvable:$true] %s565_s24 }
  0x47   : > { %s563_s12 = sshll.u32 %s562_s27, 4  ;;  %s3461_s15 = sand.u32 1, %s2679_s18   ;;  %s564_s12 = int_to_ptr.hbm [resolvable:$true] %s563_s12 }
  0x48   : > { %s553_s14 = scalar_lea.sflag [#allocation11], %s3461_s15  ;;  %577 = sbr.rel (%p2821_p8) target bundleno = 1497 (0x5d9), region = 76 }
  0x49   : > { %2235 = dma.hbm_to_vmem [thread:$0]  (!%p2866_p11), %s564_s12, 512, %s566_s24, %s553_s14, %s3460_s5, %s3460_s5, %s3459_s9  }
  0x4a   : > { %s2940_s4 = sand.u32 (!%p2821_p8), 1, %s2663_s30  }
  0x4b   : > { %s2148_s25 = sshll.u32 (!%p2821_p8), %s2940_s4, 3  ;;  %s580_s29 = scalar_lea.sflag (!%p2821_p8), [#allocation5], %s2940_s4 }
  0x4c   : > { %s2946_s16 = scalar_lea.vmem (!%p2821_p8), [#allocation4], %s2148_s25 }
  0x4d   : > { %2630 = dma.done.wait (%p2808_p4), %s580_s29, 128  }
  0x4e   : > { %2632 = vsyncadd (%p2808_p4), %s580_s29, 4294967168  ;;  %s589_s5 = sand.u32 1, %s2799_s19   ;;  %s2149_s9 = sshll.u32 %s2940_s4, 4 }
  0x4f   : > { %s590_s26 = scalar_lea.sflag [#allocation8], %s589_s5  ;;  %s2954_s13 = scalar_lea.vmem [#allocation7], %s2149_s9 }
  0x50   : > { %2634 = dma.done.wait (%p2808_p4), %s590_s26, 512  }
  0x51   : > { %2636 = vsyncadd (%p2808_p4), %s590_s26, 4294966784  ;;  %s2151_s11 = sshll.u32 %s2940_s4, 5  ;;  %s2961_s23 = scalar_lea.vmem [#allocation9], %s2149_s9 }
  0x52   : > { %s610_s22 = scalar_lea.sflag [#allocation11], %s589_s5  ;;  %s2963_s1 = scalar_lea.vmem [#allocation10], %s2151_s11 }
  0x53   : > { %2638 = dma.done.wait (%p2808_p4), %s610_s22, 512  }
  0x54   : > { %2640 = vsyncadd (%p2808_p4), %s610_s22, 4294966784 }
  0x55   : > { %2642 = dma.done.wait (%p73_p1), [#allocation11], 2048  }
  0x56   : > { %2644 = vsyncadd (%p73_p1), [#allocation11], 4294965248 }
  0x57   : > { %2646 = dma.done.wait (%p73_p1), [#allocation14], 2048  }
  0x58   : > { %2648 = vsyncadd (%p73_p1), [#allocation14], 4294965248 }
  0x59   : > { %2650 = dma.done.wait (%p73_p1), [#allocation17], 2048  }
  0x5a   : > { %2652 = vsyncadd (%p73_p1), [#allocation17], 4294965248  ;;  %v709_v0 = vld [vmem:[#allocation13 + $0x38] sm:$0xff]  ;;  %v708_v1 = vld [vmem:[#allocation13 + $0x30] sm:$0xff]  ;;  %vm714_vm0 = vcmask 523264   ;;  %s3462_s20 = sld [smem:[#allocation37_spill]] }
  0x5b   : > { %v1299_v2 = vld [vmem:[#allocation12 + $0x78] sm:$0xff]  ;;  %729 = vmatpush.msra.mxu0 %v709_v0  ;;  %v1298_v3 = vld [vmem:[#allocation12 + $0x70] sm:$0xff]  ;;  %v707_v4 = vld [vmem:[#allocation13 + $0x28] sm:$0xff]  ;;  %s2687_s6 = smov 64   ;;  %s2688_s7 = smov 32   ;;  %vm806_vm1 = vcmask 1047556  }
  0x5c   : > { %1304 = vmatpush.msra.mxu2 %v1299_v2  ;;  %v1297_v5 = vld [vmem:[#allocation12 + $0x68] sm:$0xff]  ;;  %v706_v6 = vld [vmem:[#allocation13 + $0x20] sm:$0xff]  ;;  %v705_v8 = vld [vmem:[#allocation13 + $0x18] sm:$0xff]  ;;  %s2689_s27 = smov 96   ;;  %s3463_s12 = sld [smem:[#allocation35_spill]]  ;;  %vm1026_vm2 = vcmask 261120  }
  0x5d   : > { %730 = vmatpush.msra.mxu0 %v708_v1  ;;  %v1296_v7 = vld [vmem:[#allocation12 + $0x60] sm:$0xff]  ;;  %v1295_v9 = vld [vmem:[#allocation12 + $0x58] sm:$0xff]  ;;  %v704_v10 = vld [vmem:[#allocation13 + $0x10] sm:$0xff]  ;;  %v2690_v46 = vmov 1983009808   ;;  %s3464_s29 = sld [smem:[#allocation38_spill]] }
  0x5e   : > { %1305 = vmatpush.msra.mxu2 %v1298_v3  ;;  %v703_v11 = vld [vmem:[#allocation13 + $0x8] sm:$0xff]  ;;  %v1294_v12 = vld [vmem:[#allocation12 + $0x50] sm:$0xff]  ;;  %v702_v14 = vld [vmem:[#allocation13] sm:$0xff]  ;;  %v811_v47 = vunpack.c.l.s4 %v2690_v46  ;;  %v2691_v60 = vmov 1934713408   ;;  %vm1574_vm3 = vcmask 130048  }
  0x5f   : > { %731 = vmatpush.msra.mxu0 %v707_v4  ;;  %v1293_v13 = vld [vmem:[#allocation12 + $0x48] sm:$0xff]  ;;  %v1292_v15 = vld [vmem:[#allocation12 + $0x40] sm:$0xff]  ;;  %v1291_v17 = vld [vmem:[#allocation12 + $0x38] sm:$0xff]  ;;  %v835_v61 = vunpack.c.l.s4 %v2691_v60  ;;  %vm1844_vm4 = vcmask 785408   ;;  %s3465_s26 = sld [smem:[#allocation39_spill]]  ;;  %s693_s24 = scalar_lea.vmem [#allocation18], %s2148_s25 }
  0x60   : > { %1306 = vmatpush.msra.mxu2 %v1297_v5  ;;  %v698_v16 = vld [vmem:[%s2954_s13] sm:$0xff]  ;;  %v1289_v19 = vld [vmem:[#allocation12 + $0x28] sm:$0xff]  ;;  %v1287_v22 = vld [vmem:[#allocation12 + $0x18] sm:$0xff]  ;;  %v3010_v54 = vunpack.c.0.s8 %v811_v47  ;;  %s3467_s22 = sld [smem:[#allocation40_spill]]  ;;  %s1926_s14 = scalar_lea.sflag [#allocation6], %s2940_s4 }
  0x61   : > { %732 = vmatpush.msra.mxu0 %v706_v6  ;;  %v1290_v18 = vld [vmem:[#allocation12 + $0x30] sm:$0xff]  ;;  %v1288_v20 = vld [vmem:[#allocation12 + $0x20] sm:$0xff]  ;;  %v699_v21 = vld [vmem:[%s2954_s13 + $0x8] sm:$0xff]  ;;  %v3020_v4 = vunpack.c.0.s8 %v835_v61  ;;  %s3466_s13 = sld [smem:[#allocation28_spill]] }
  0x62   : > { %1307 = vmatpush.msra.mxu2 %v1296_v7  ;;  %v1286_v23 = vld [vmem:[#allocation12 + $0x10] sm:$0xff]  ;;  %v1285_v24 = vld [vmem:[#allocation12 + $0x8] sm:$0xff]  ;;  %v1284_v25 = vld [vmem:[#allocation12] sm:$0xff]  ;;  %s3468_s21 = sld [smem:[#allocation42_spill]] }
  0x63   : > { %733 = vmatpush.msra.mxu0 %v705_v8  ;;  %v1283_v26 = vld [vmem:[%s2946_s16] sm:$0xff]  ;;  %v749_v29 = vld [vmem:[#allocation15 + $0x28] sm:$0xff]  ;;  %v748_v30 = vld [vmem:[#allocation15 + $0x20] sm:$0xff]  ;;  %s3470_s28 = sld [smem:[#allocation41_spill]] }
  0x64   : > { %1308 = vmatpush.msra.mxu2 %v1295_v9  ;;  %v751_v27 = vld [vmem:[#allocation15 + $0x38] sm:$0xff]  ;;  %v750_v28 = vld [vmem:[#allocation15 + $0x30] sm:$0xff]  ;;  %v745_v33 = vld [vmem:[#allocation15 + $0x8] sm:$0xff] }
  0x65   : > { %734 = vmatpush.msra.mxu0 %v704_v10  ;;  %770 = vmatpush.msra.mxu1 %v751_v27  ;;  %v747_v31 = vld [vmem:[#allocation15 + $0x18] sm:$0xff]  ;;  %v746_v32 = vld [vmem:[#allocation15 + $0x10] sm:$0xff]  ;;  %v744_v34 = vld [vmem:[#allocation15] sm:$0xff] }
  0x66   : > { %1309 = vmatpush.msra.mxu2 %v1294_v12  ;;  %v700_v35 = vld [vmem:[%s2961_s23] sm:$0xff]  ;;  %v701_v37 = vld [vmem:[%s2961_s23 + $0x8] sm:$0xff] }
  0x67   : > { %735 = vmatpush.msra.mxu0 %v703_v11  ;;  %771 = vmatpush.msra.mxu1 %v750_v28  ;;  %v2310_v36 = vld [vmem:[%s3462_s20] ss:$0 sm:$0xff] }
  0x68   : > { %1310 = vmatpush.msra.mxu2 %v1293_v13  ;;  %v2311_v42 = vld [vmem:[%s3463_s12] ss:$0 sm:$0xff]  ;;  %s1939_s12 = sshll.u32 %s693_s24, 4  ;;  %s1940_s12 = int_to_ptr.vmem [resolvable:$true] %s1939_s12 }
  0x69   : > { %736 = vmatpush.msra.mxu0 %v702_v14  ;;  %772 = vmatpush.msra.mxu1 %v749_v29 }
  0x6a   : > { %1311 = vmatpush.msra.mxu2 %v1292_v15  ;;  %2157 = vmatmul.msk.f32.vlgmr.msra.gmra.mxu0 %vm714_vm0, %v698_v16 }
  0x6b   : > { %773 = vmatpush.msra.mxu1 %v748_v30 }
  0x6c   : > { %1312 = vmatpush.msra.mxu2 %v1291_v17 }
  0x6d   : > { %774 = vmatpush.msra.mxu1 %v747_v31 }
  0x6e   : > { %1313 = vmatpush.msra.mxu2 %v1290_v18 }
  0x6f   : > { %775 = vmatpush.msra.mxu1 %v746_v32 }
  0x70   : > { %1314 = vmatpush.msra.mxu2 %v1289_v19 }
  0x71   : > { %776 = vmatpush.msra.mxu1 %v745_v33 }
  0x72   : > { %1315 = vmatpush.msra.mxu2 %v1288_v20  ;;  %2158 = vmatmul.msk.f32.gmra.mxu0 %vm714_vm0, %v699_v21 }
  0x73   : > { %777 = vmatpush.msra.mxu1 %v744_v34 }
  0x74   : > { %1316 = vmatpush.msra.mxu2 %v1287_v22  ;;  %2159 = vmatmul.msk.f32.vlgmr.msra.gmra.mxu1 %vm714_vm0, %v700_v35 }
  0x76   : > { %1317 = vmatpush.msra.mxu2 %v1286_v23 }
  0x78   : > { %1318 = vmatpush.msra.mxu2 %v1285_v24 }
  0x7a   : > { %1319 = vmatpush.msra.mxu2 %v1284_v25 }
  0x7b   : > { %1320 = vmatmul.f32.vlgmr.msra.gmra.mxu2 %v1283_v26 }
  0x7c   : > { %2160 = vmatmul.msk.f32.gmra.mxu1 %vm714_vm0, %v701_v37 }
  0xe7   : > { %v738_v38 = vpop.f32.mrf.mxu0 }
  0xe8   : > { %v739_v39 = vadd.f32 %v2310_v36, %v738_v38 }
  0xea   : > { %793 = vrot.lane.b32.xlu2 %v739_v39, %s2687_s6  ;;  %v808_v51 = vrot.slane %v739_v39, 4 }
  0xef   : > { %v741_v40 = vpop.f32.mrf.mxu0 }
  0xf0   : > { %v742_v41 = vadd.f32 %v2310_v36, %v741_v40 }
  0xf2   : > { %801 = vrot.lane.b32.xlu1 %v742_v41, %s2688_s7  ;;  %789 = vrot.lane.b32.xlu0 %v742_v41, %s2689_s27  ;;  %v864_v3 = vrot.slane %v742_v41, 4 }
  0xf3   : > { %799 = vrot.lane.b32.xlu2 %v739_v39, %s2688_s7 }
  0xfa   : > { %795 = vrot.lane.b32.xlu0 %v742_v41, %s2687_s6  ;;  %787 = vrot.lane.b32.xlu1 %v739_v39, %s2689_s27 }
  0xfe   : > { %v1321_v43 = vpop.f32.mrf.mxu2 }
  0xff   : > { %v3002_v44 = vadd.f32 %v2311_v42, %v1321_v43 }
 0x101   : > { %1331 = vrot.lane.b32.xlu2 %v3002_v44, %s2688_s7  ;;  %v1337_v7 = vrot.slane %v3002_v44, 4 }
 0x102   : > { %1325 = vrot.lane.b32.xlu0 %v3002_v44, %s2689_s27  ;;  %1328 = vrot.lane.b32.xlu1 %v3002_v44, %s2687_s6 }
 0x144   : > { %v794_v45 = vpop.permute.xlu2 %793 }
 0x145   : > { %v805_v48 = vrot.slane %v794_v45, 4  ;;  %v809_v56 = vsel %vm806_vm1, %v794_v45, %v808_v51 }
 0x146   : > { %v817_v62 = vperm.slane %v809_v56, %v3010_v54 }
 0x147   : > { %v807_v58 = vsel %vm806_vm1, %v805_v48, %v739_v39 }
 0x148   : > { %v813_v0 = vperm.slane %v807_v58, %v3010_v54  ;;  %v844_v12 = vrot.slane %v817_v62, 4 }
 0x14a   : > { %v832_v17 = vrot.slane %v813_v0, 4 }
 0x14d   : > { %v800_v55 = vpop.permute.xlu2 %799 }
 0x14e   : > { %v818_v1 = vrot.slane %v800_v55, 4 }
 0x15b   : > { %v3025_v13 = vpop.permute.xlu2 %1331 }
 0x15c   : > { %v1347_v25 = vrot.slane %v3025_v13, 4 }
 0x164   : > { %v802_v49 = vpop.permute.xlu1 %801  ;;  %v790_v50 = vpop.permute.xlu0 %789 }
 0x165   : > { %v874_v52 = vrot.slane %v802_v49, 4  ;;  %v876_v53 = vrot.slane %v790_v50, 4 }
 0x167   : > { %v877_v57 = vsel %vm806_vm1, %v802_v49, %v876_v53  ;;  %v875_v59 = vsel %vm806_vm1, %v874_v52, %v790_v50 }
 0x168   : > { %v885_v63 = vperm.slane %v877_v57, %v3010_v54  ;;  %v881_v2 = vperm.slane %v875_v59, %v3010_v54 }
 0x16a   : > { %v898_v14 = vrot.slane %v885_v63, 4  ;;  %v886_v18 = vrot.slane %v881_v2, 4 }
 0x16c   : > { %v796_v5 = vpop.permute.xlu0 %795  ;;  %v788_v6 = vpop.permute.xlu1 %787 }
 0x16d   : > { %v862_v8 = vrot.slane %v796_v5, 4  ;;  %v865_v9 = vsel %vm806_vm1, %v796_v5, %v864_v3  ;;  %v819_v10 = vsel %vm806_vm1, %v818_v1, %v788_v6  ;;  %v820_v11 = vrot.slane %v788_v6, 4 }
 0x16e   : > { %v873_v15 = vperm.slane %v865_v9, %v3010_v54  ;;  %v825_v16 = vperm.slane %v819_v10, %v3010_v54 }
 0x16f   : > { %v863_v19 = vsel %vm806_vm1, %v862_v8, %v742_v41  ;;  %v821_v20 = vsel %vm806_vm1, %v800_v55, %v820_v11 }
 0x170   : > { %v869_v21 = vperm.slane %v863_v19, %v3010_v54  ;;  %v899_v22 = vsel %vm806_vm1, %v898_v14, %v873_v15  ;;  %v900_v23 = vrot.slane %v873_v15, 4  ;;  %v829_v24 = vperm.slane %v821_v20, %v3010_v54 }
 0x171   : > { %v905_v26 = vperm.slane %v899_v22, %v3020_v4  ;;  %v830_v27 = vrot.slane %v825_v16, 4  ;;  %v833_v28 = vsel %vm806_vm1, %v825_v16, %v832_v17  ;;  %v779_v22 = vpop.f32.mrf.mxu1 }
 0x172   : > { %v887_v29 = vsel %vm806_vm1, %v886_v18, %v869_v21  ;;  %v888_v30 = vrot.slane %v869_v21, 4  ;;  %v901_v31 = vsel %vm806_vm1, %v885_v63, %v900_v23  ;;  %v841_v32 = vperm.slane %v833_v28, %v3020_v4 }
 0x173   : > { %v893_v33 = vperm.slane %v887_v29, %v3020_v4  ;;  %v909_v34 = vperm.slane %v901_v31, %v3020_v4  ;;  %v914_v35 = vrot.slane %v905_v26, 4  ;;  %v831_v36 = vsel %vm806_vm1, %v830_v27, %v813_v0 }
 0x174   : > { %v889_v37 = vsel %vm806_vm1, %v881_v2, %v888_v30  ;;  %v837_v38 = vperm.slane %v831_v36, %v3020_v4  ;;  %v842_v39 = vrot.slane %v829_v24, 4  ;;  %v845_v40 = vsel %vm806_vm1, %v829_v24, %v844_v12 }
 0x175   : > { %v897_v41 = vperm.slane %v889_v37, %v3020_v4  ;;  %v910_v42 = vrot.slane %v893_v33, 4  ;;  %v915_v43 = vsel %vm806_vm1, 0.0, %v914_v35  ;;  %v916_v45 = vrot.slane %v909_v34, 4 }
 0x176   : > { %v843_v46 = vsel %vm806_vm1, %v842_v39, %v817_v62  ;;  %v853_v47 = vperm.slane %v845_v40, %v3020_v4  ;;  %v854_v48 = vrot.slane %v837_v38, 4  ;;  %v856_v49 = vrot.slane %v841_v32, 4  ;;  %v1326_v40 = vpop.permute.xlu0 %1325 }
 0x177   : > { %v911_v50 = vsel %vm806_vm1, 0.0, %v910_v42  ;;  %v912_v51 = vrot.slane %v897_v41, 4  ;;  %v917_v52 = vsel %vm806_vm1, 0.0, %v916_v45  ;;  %v983_v53 = vsel %vm806_vm1, %v916_v45, %v905_v26 }
 0x178   : > { %v987_v55 = vperm.slane %v983_v53, %v3010_v54  ;;  %v988_v56 = vrot.slane %v917_v52, 4  ;;  %v849_v57 = vperm.slane %v843_v46, %v3020_v4  ;;  %v855_v58 = vsel %vm806_vm1, 0.0, %v854_v48 }
 0x179   : > { %v913_v59 = vsel %vm806_vm1, 0.0, %v912_v51  ;;  %v972_v60 = vsel %vm806_vm1, %v912_v51, %v893_v33  ;;  %v857_v61 = vsel %vm806_vm1, 0.0, %v856_v49  ;;  %v860_v62 = vrot.slane %v853_v47, 4 }
 0x17a   : > { %v976_v63 = vperm.slane %v972_v60, %v3010_v54  ;;  %v977_v0 = vrot.slane %v913_v59, 4  ;;  %v989_v1 = vsel %vm806_vm1, %v988_v56, %v915_v43  ;;  %v1008_v2 = vrot.slane %v987_v55, 4 }
 0x17b   : > { %v993_v3 = vperm.slane %v989_v1, %v3010_v54  ;;  %v858_v5 = vrot.slane %v849_v57, 4  ;;  %v861_v6 = vsel %vm806_vm1, 0.0, %v860_v62  ;;  %v918_v8 = vsel %vm806_vm1, %v856_v49, %v837_v38 }
 0x17c   : > { %v978_v9 = vsel %vm806_vm1, %v977_v0, %v911_v50  ;;  %v996_v10 = vrot.slane %v976_v63, 4  ;;  %v922_v11 = vperm.slane %v918_v8, %v3010_v54  ;;  %v923_v12 = vrot.slane %v857_v61, 4  ;;  %v1329_v50 = vpop.permute.xlu1 %1328 }
 0x17d   : > { %v982_v14 = vperm.slane %v978_v9, %v3010_v54  ;;  %v1006_v15 = vrot.slane %v993_v3, 4  ;;  %v1009_v16 = vsel %vm806_vm1, %v993_v3, %v1008_v2  ;;  %v859_v17 = vsel %vm806_vm1, 0.0, %v858_v5  ;;  %v782_v5 = vpop.f32.mrf.mxu1 }
 0x17e   : > { %v1017_v18 = vperm.slane %v1009_v16, %v3020_v4  ;;  %v924_v19 = vsel %vm806_vm1, %v923_v12, %v855_v58  ;;  %v929_v20 = vsel %vm806_vm1, %v860_v62, %v849_v57  ;;  %v934_v21 = vrot.slane %v861_v6, 4 }
 0x17f   : > { %v994_v23 = vrot.slane %v982_v14, 4  ;;  %v997_v24 = vsel %vm806_vm1, %v982_v14, %v996_v10  ;;  %v1007_v26 = vsel %vm806_vm1, %v1006_v15, %v987_v55  ;;  %v928_v27 = vperm.slane %v924_v19, %v3010_v54 }
 0x180   : > { %v1005_v28 = vperm.slane %v997_v24, %v3020_v4  ;;  %v1013_v29 = vperm.slane %v1007_v26, %v3020_v4  ;;  %v1022_v30 = vrot.slane %v1017_v18, 4  ;;  %v933_v31 = vperm.slane %v929_v20, %v3010_v54 }
 0x181   : > { %v995_v32 = vsel %vm806_vm1, %v994_v23, %v976_v63  ;;  %v935_v33 = vsel %vm806_vm1, %v934_v21, %v859_v17  ;;  %v940_v34 = vrot.slane %v928_v27, 4  ;;  %v942_v35 = vrot.slane %v922_v11, 4 }
 0x182   : > { %v1001_v36 = vperm.slane %v995_v32, %v3020_v4  ;;  %v1018_v37 = vrot.slane %v1013_v29, 4  ;;  %v1023_v38 = vsel %vm806_vm1, %v1022_v30, %v1005_v28  ;;  %v1024_v39 = vrot.slane %v1005_v28, 4 }
 0x183   : > { %1032 = vst.msk [vmem:[#allocation2 + $0x28] sm:$0xff] %vm1026_vm2, %v1023_v38  ;;  %v939_v41 = vperm.slane %v935_v33, %v3010_v54  ;;  %v941_v42 = vsel %vm806_vm1, %v940_v34, %v922_v11  ;;  %v943_v43 = vsel %vm806_vm1, %v928_v27, %v942_v35  ;;  %v954_v45 = vrot.slane %v933_v31, 4 }
 0x184   : > { %v1019_v46 = vsel %vm806_vm1, %v1018_v37, %v1001_v36  ;;  %v1020_v47 = vrot.slane %v1001_v36, 4  ;;  %v1025_v48 = vsel %vm806_vm1, %v1017_v18, %v1024_v39  ;;  %v947_v49 = vperm.slane %v941_v42, %v3020_v4 }
 0x185   : > { %1028 = vst.msk [vmem:[#allocation2 + $0x8] sm:$0xff] %vm1026_vm2, %v1019_v46  ;;  %v951_v51 = vperm.slane %v943_v43, %v3020_v4  ;;  %v952_v52 = vrot.slane %v939_v41, 4  ;;  %v955_v53 = vsel %vm806_vm1, %v939_v41, %v954_v45  ;;  %v1348_v55 = vsel %vm806_vm1, %v1347_v25, %v1326_v40  ;;  %v2312_v25 = vld [vmem:[%s3464_s29] ss:$0 sm:$0xff] }
 0x186   : > { %v1021_v56 = vsel %vm806_vm1, %v1013_v29, %v1020_v47  ;;  %1034 = vst.msk [vmem:[#allocation2 + $0x38] sm:$0xff] %vm1026_vm2, %v1025_v48  ;;  %v963_v57 = vperm.slane %v955_v53, %v3020_v4  ;;  %v966_v58 = vrot.slane %v947_v49, 4  ;;  %v1349_v59 = vrot.slane %v1326_v40, 4 }
 0x187   : > { %1030 = vst.msk [vmem:[#allocation2 + $0x18] sm:$0xff] %vm1026_vm2, %v1021_v56  ;;  %v953_v60 = vsel %vm806_vm1, %v952_v52, %v933_v31  ;;  %v970_v61 = vrot.slane %v951_v51, 4  ;;  %v1354_v62 = vperm.slane %v1348_v55, %v3010_v54  ;;  %v1334_v63 = vrot.slane %v1329_v50, 4 }
 0x188   : > { %v959_v0 = vperm.slane %v953_v60, %v3020_v4  ;;  %v968_v1 = vrot.slane %v963_v57, 4  ;;  %v1350_v2 = vsel %vm806_vm1, %v3025_v13, %v1349_v59  ;;  %v1338_v3 = vsel %vm806_vm1, %v1329_v50, %v1337_v7 }
 0x189   : > { %v971_v6 = vsel %vm806_vm1, %v963_v57, %v970_v61  ;;  %v1358_v8 = vperm.slane %v1350_v2, %v3010_v54  ;;  %v1359_v9 = vrot.slane %v1354_v62, 4  ;;  %v1336_v10 = vsel %vm806_vm1, %v1334_v63, %v3002_v44 }
 0x18a   : > { %v964_v11 = vrot.slane %v959_v0, 4  ;;  %v967_v12 = vsel %vm806_vm1, %v959_v0, %v966_v58  ;;  %v969_v14 = vsel %vm806_vm1, %v968_v1, %v951_v51  ;;  %1033 = vst.msk [vmem:[#allocation2 + $0x30] sm:$0xff] %vm1026_vm2, %v971_v6  ;;  %v1342_v13 = vperm.slane %v1336_v10, %v3010_v54 }
 0x18b   : > { %1029 = vst.msk [vmem:[#allocation2 + $0x10] sm:$0xff] %vm1026_vm2, %v967_v12  ;;  %v1371_v7 = vrot.slane %v1358_v8, 4  ;;  %v1346_v15 = vperm.slane %v1338_v3, %v3010_v54  ;;  %v3120_v16 = vadd.f32 %v2312_v25, %v779_v22  ;;  %v3122_v17 = vadd.f32 %v2312_v25, %v782_v5 }
 0x18c   : > { %v965_v44 = vsel %vm806_vm1, %v964_v11, %v947_v49  ;;  %1031 = vst.msk [vmem:[#allocation2 + $0x20] sm:$0xff] %vm1026_vm2, %v969_v14  ;;  %v1360_v18 = vsel %vm806_vm1, %v1359_v9, %v1342_v13  ;;  %v1361_v19 = vrot.slane %v1342_v13, 4  ;;  %v1450_v20 = vld [vmem:[#allocation2 + $0x8] sm:$0xff] }
 0x18d   : > { %1027 = vst.msk [vmem:[#allocation2] sm:$0xff] %vm1026_vm2, %v965_v44  ;;  %v1366_v21 = vperm.slane %v1360_v18, %v3020_v4  ;;  %v1372_v23 = vsel %vm806_vm1, %v1371_v7, %v1346_v15  ;;  %v1373_v24 = vrot.slane %v1346_v15, 4  ;;  %1045 = vrot.lane.b32.xlu1 %v3122_v17, %s2687_s6  ;;  %2161 = vmatpush.xpose.msk.msra.mxu3 %vm1026_vm2, %v1450_v20  ;;  %v1456_v22 = vld [vmem:[#allocation2 + $0x38] sm:$0xff]  ;;  %v1448_v13 = vld [vmem:[%s2963_s1 + $0x18] sm:$0xff]  ;;  %v1445_v18 = vld [vmem:[%s2963_s1] sm:$0xff] }
 0x18e   : > { %v1362_v26 = vsel %vm806_vm1, %v1354_v62, %v1361_v19  ;;  %v1378_v27 = vperm.slane %v1372_v23, %v3020_v4  ;;  %2170 = vmatpush.xpose.msk.msrb.mxu0 %vm1026_vm2, %v1456_v22  ;;  %1039 = vrot.lane.b32.xlu0 %v3122_v17, %s2689_s27  ;;  %v1452_v47 = vld [vmem:[#allocation2 + $0x18] sm:$0xff] }
 0x18f   : > { %v1370_v28 = vperm.slane %v1362_v26, %v3020_v4  ;;  %v1374_v29 = vsel %vm806_vm1, %v1358_v8, %v1373_v24  ;;  %v1383_v32 = vrot.slane %v1366_v21, 4  ;;  %v1454_v8 = vld [vmem:[#allocation2 + $0x28] sm:$0xff]  ;;  %v1446_v23 = vld [vmem:[%s2963_s1 + $0x8] sm:$0xff] }
 0x190   : > { %v1382_v30 = vperm.slane %v1374_v29, %v3020_v4  ;;  %v1387_v31 = vrot.slane %v1378_v27, 4 }
 0x191   : > { %v1385_v33 = vrot.slane %v1370_v28, 4  ;;  %v1455_v34 = vld [vmem:[#allocation2 + $0x30] sm:$0xff]  ;;  %v1384_v45 = vsel %vm806_vm1, 0.0, %v1383_v32 }
 0x192   : > { %v1389_v35 = vrot.slane %v1382_v30, 4  ;;  %2171 = vmatpush.xpose.msk.msrb.mxu0 %vm1026_vm2, %v1455_v34  ;;  %v1388_v37 = vsel %vm806_vm1, 0.0, %v1387_v31  ;;  %v1451_v58 = vld [vmem:[#allocation2 + $0x10] sm:$0xff] }
 0x193   : > { %v1386_v36 = vsel %vm806_vm1, 0.0, %v1385_v33  ;;  %v1391_v38 = vsel %vm806_vm1, %v1385_v33, %v1366_v21  ;;  %v1453_v10 = vld [vmem:[#allocation2 + $0x20] sm:$0xff] }
 0x194   : > { %v1390_v39 = vsel %vm806_vm1, 0.0, %v1389_v35  ;;  %v1396_v40 = vrot.slane %v1386_v36, 4  ;;  %v1402_v41 = vsel %vm806_vm1, %v1389_v35, %v1378_v27  ;;  %v1449_v42 = vld [vmem:[#allocation2] sm:$0xff]  ;;  %v1395_v43 = vperm.slane %v1391_v38, %v3010_v54 }
 0x195   : > { %v1407_v46 = vrot.slane %v1390_v39, 4  ;;  %2162 = vmatpush.xpose.msk.msra.mxu3 %vm1026_vm2, %v1449_v42  ;;  %v1406_v48 = vperm.slane %v1402_v41, %v3010_v54  ;;  %v1447_v27 = vld [vmem:[%s2963_s1 + $0x10] sm:$0xff] }
 0x196   : > { %v1397_v49 = vsel %vm806_vm1, %v1396_v40, %v1384_v45  ;;  %v1415_v50 = vrot.slane %v1395_v43, 4 }
 0x197   : > { %v1408_v51 = vsel %vm806_vm1, %v1407_v46, %v1388_v37  ;;  %v1401_v52 = vperm.slane %v1397_v49, %v3010_v54  ;;  %v1427_v53 = vrot.slane %v1406_v48, 4 }
 0x198   : > { %v1412_v55 = vperm.slane %v1408_v51, %v3010_v54  ;;  %v1057_v51 = vrot.slane %v3120_v16, 4 }
 0x199   : > { %2164 = vmatpush.xpose.msk.msrb.mxu3 %vm1026_vm2, %v1452_v47  ;;  %v1413_v56 = vrot.slane %v1401_v52, 4  ;;  %v1416_v57 = vsel %vm806_vm1, %v1401_v52, %v1415_v50 }
 0x19a   : > { %v1425_v59 = vrot.slane %v1412_v55, 4  ;;  %v1424_v60 = vperm.slane %v1416_v57, %v3020_v4  ;;  %v1428_v61 = vsel %vm806_vm1, %v1412_v55, %v1427_v53 }
 0x19b   : > { %v1414_v62 = vsel %vm806_vm1, %v1413_v56, %v1395_v43  ;;  %v1436_v25 = vperm.slane %v1428_v61, %v3020_v4  ;;  %v1113_v56 = vrot.slane %v3122_v17, 4 }
 0x19c   : > { %v1426_v63 = vsel %vm806_vm1, %v1425_v59, %v1406_v48  ;;  %v1443_v0 = vrot.slane %v1424_v60, 4  ;;  %v1420_v1 = vperm.slane %v1414_v62, %v3020_v4 }
 0x19d   : > { %2165 = vmatpush.xpose.msk.msrb.mxu3 %vm1026_vm2, %v1451_v58  ;;  %v1432_v2 = vperm.slane %v1426_v63, %v3020_v4  ;;  %v1441_v12 = vrot.slane %v1436_v25, 4 }
 0x19e   : > { %v1444_v3 = vsel %vm806_vm1, %v1436_v25, %v1443_v0  ;;  %v1439_v9 = vrot.slane %v1420_v1, 4 }
 0x19f   : > { %v1437_v5 = vrot.slane %v1432_v2, 4  ;;  %2172 = vmatmul.msk.f32.vlgmr.msrb.gmra.mxu0 %vm1026_vm2, %v1444_v3  ;;  %v1442_v14 = vsel %vm806_vm1, %v1441_v12, %v1424_v60 }
 0x1a0   : > { %v1440_v11 = vsel %vm806_vm1, %v1432_v2, %v1439_v9 }
 0x1a1   : > { %v1438_v6 = vsel %vm806_vm1, %v1437_v5, %v1420_v1 }
 0x1a2   : > { %2163 = vmatmul.msk.f32.vlgmr.msra.gmra.mxu3 %vm1026_vm2, %v1438_v6 }
 0x1a3   : > { %2167 = vmatpush.xpose.msk.msra.mxu3 %vm1026_vm2, %v1454_v8 }
 0x1a7   : > { %2168 = vmatpush.xpose.msk.msra.mxu3 %vm1026_vm2, %v1453_v10 }
 0x1aa   : > { %2166 = vmatmul.msk.f32.vlgmr.msrb.gmra.mxu3 %vm1026_vm2, %v1440_v11 }
 0x1b2   : > { %2169 = vmatmul.msk.f32.vlgmr.msra.gmra.mxu3 %vm1026_vm2, %v1442_v14 }
 0x1ff   : > { %v1046_v32 = vpop.permute.xlu1 %1045 }
 0x200   : > { %v3191_v31 = vpop.permute.xlu0 %1039  ;;  %v1111_v58 = vrot.slane %v1046_v32, 4  ;;  %v1114_v61 = vsel %vm806_vm1, %v1046_v32, %v1113_v56 }
 0x201   : > { %v1122_v3 = vperm.slane %v1114_v61, %v3010_v54 }
 0x202   : > { %v1112_v0 = vsel %vm806_vm1, %v1111_v58, %v3122_v17 }
 0x203   : > { %v1118_v10 = vperm.slane %v1112_v0, %v3010_v54 }
 0x21c   : > { %v1571_v7 = vpop.f32.mrf.mxu0 }
 0x21d   : > { %v1572_v15 = vadd.f32 %v1571_v7, %v1448_v13  ;;  %v1149_v7 = vrot.slane %v1122_v3, 4 }
 0x21f   : > { %v1584_v44 = vsel %vm1574_vm3, %v1572_v15, -inf }
 0x220   : > { %1585 = vmax.xlane.f32.xlu2 %v1584_v44 }
 0x225   : > { %v1484_v19 = vpop.f32.mrf.mxu3 }
 0x226   : > { %v1485_v20 = vadd.f32 %v1484_v19, %v1445_v18 }
 0x228   : > { %v1575_v21 = vsel %vm1574_vm3, %v1485_v20, -inf }
 0x229   : > { %1576 = vmax.xlane.f32.xlu0 %v1575_v21 }
 0x22d   : > { %v1513_v24 = vpop.f32.mrf.mxu3 }
 0x22e   : > { %v1514_v22 = vadd.f32 %v1513_v24, %v1446_v23 }
 0x230   : > { %v1578_v26 = vsel %vm1574_vm3, %v1514_v22, -inf }
 0x231   : > { %1579 = vmax.xlane.f32.xlu1 %v1578_v26 }
 0x235   : > { %v1542_v28 = vpop.f32.mrf.mxu3 }
 0x236   : > { %v1543_v29 = vadd.f32 %v1542_v28, %v1447_v27  ;;  %v1137_v28 = vrot.slane %v1118_v10, 4 }
 0x238   : > { %v1581_v30 = vsel %vm1574_vm3, %v1543_v29, -inf }
 0x239   : > { %1582 = vmax.xlane.f32.xlu2 %v1581_v30 }
 0x23d   : > { %1043 = vrot.lane.b32.xlu0 %v3120_v16, %s2687_s6 }
 0x245   : > { %1049 = vrot.lane.b32.xlu0 %v3120_v16, %s2688_s7 }
 0x24a   : > { %1051 = vrot.lane.b32.xlu1 %v3122_v17, %s2688_s7 }
 0x251   : > { %1037 = vrot.lane.b32.xlu2 %v3120_v16, %s2689_s27 }
 0x293   : > { %v1586_v33 = vpop.xlane.xlu2 %1585 }
 0x294   : > { %v1590_v36 = vsub.f32 %v1572_v15, %v1586_v33  ;;  %v1125_v15 = vrot.slane %v3191_v31, 4 }
 0x296   : > { %v1597_v38 = vmul.f32 1.442695, %v1590_v36 }
 0x29c   : > { %v1577_v34 = vpop.xlane.xlu0 %1576 }
 0x29d   : > { %v1587_v35 = vsub.f32 %v1485_v20, %v1577_v34 }
 0x29f   : > { %v1591_v37 = vmul.f32 1.442695, %v1587_v35 }
 0x2a1   : > { %2316 = vpow2.f32 %v1591_v37 }
 0x2a2   : > { %2318 = vpow2.f32 %v1597_v38 }
 0x2a4   : > { %v1580_v39 = vpop.xlane.xlu1 %1579 }
 0x2a5   : > { %v1588_v40 = vsub.f32 %v1514_v22, %v1580_v39 }
 0x2a7   : > { %v3193_v41 = vpop.eup %2316  ;;  %v1593_v42 = vmul.f32 1.442695, %v1588_v40 }
 0x2a8   : > { %v1599_v43 = vsel %vm1574_vm3, %v3193_v41, 0.0  ;;  %v3197_v46 = vpop.eup %2318 }
 0x2a9   : > { %2320 = vpow2.f32 %v1593_v42  ;;  %1600 = vadd.xlane.f32.xlu2 %v1599_v43  ;;  %v1608_v55 = vsel %vm1574_vm3, %v3197_v46, 0.0 }
 0x2ac   : > { %v1583_v45 = vpop.xlane.xlu2 %1582 }
 0x2ad   : > { %v1589_v47 = vsub.f32 %v1543_v29, %v1583_v45 }
 0x2af   : > { %v3199_v48 = vpop.eup %2320  ;;  %v1595_v49 = vmul.f32 1.442695, %v1589_v47  ;;  %v1044_v50 = vpop.permute.xlu0 %1043 }
 0x2b0   : > { %v1055_v52 = vrot.slane %v1044_v50, 4  ;;  %v1602_v53 = vsel %vm1574_vm3, %v3199_v48, 0.0  ;;  %v1058_v57 = vsel %vm806_vm1, %v1044_v50, %v1057_v51 }
 0x2b1   : > { %2322 = vpow2.f32 %v1595_v49  ;;  %1603 = vadd.xlane.f32.xlu1 %v1602_v53  ;;  %1609 = vadd.xlane.f32.xlu2 %v1608_v55  ;;  %v1066_v62 = vperm.slane %v1058_v57, %v3010_v54 }
 0x2b2   : > { %v1056_v59 = vsel %vm806_vm1, %v1055_v52, %v3120_v16 }
 0x2b3   : > { %v1062_v1 = vperm.slane %v1056_v59, %v3010_v54  ;;  %v1093_v8 = vrot.slane %v1066_v62, 4 }
 0x2b4   : > { %v1038_v60 = vpop.permute.xlu2 %1037 }
 0x2b5   : > { %v1069_v63 = vrot.slane %v1038_v60, 4  ;;  %v1081_v17 = vrot.slane %v1062_v1, 4 }
 0x2b7   : > { %v3212_v25 = vpop.eup %2322  ;;  %v1050_v2 = vpop.permute.xlu0 %1049 }
 0x2b8   : > { %v1067_v5 = vrot.slane %v1050_v2, 4  ;;  %v1070_v6 = vsel %vm806_vm1, %v1050_v2, %v1069_v63  ;;  %v1605_v16 = vsel %vm1574_vm3, %v3212_v25, 0.0 }
 0x2b9   : > { %v1078_v9 = vperm.slane %v1070_v6, %v3010_v54  ;;  %1606 = vadd.xlane.f32.xlu0 %v1605_v16 }
 0x2ba   : > { %v1068_v11 = vsel %vm806_vm1, %v1067_v5, %v1038_v60 }
 0x2bb   : > { %v1074_v12 = vperm.slane %v1068_v11, %v3010_v54  ;;  %v1091_v14 = vrot.slane %v1078_v9, 4  ;;  %v1094_v13 = vsel %vm806_vm1, %v1078_v9, %v1093_v8 }
 0x2bc   : > { %v1102_v44 = vperm.slane %v1094_v13, %v3020_v4  ;;  %v1052_v18 = vpop.permute.xlu1 %1051 }
 0x2bd   : > { %v1079_v19 = vrot.slane %v1074_v12, 4  ;;  %v1082_v20 = vsel %vm806_vm1, %v1074_v12, %v1081_v17  ;;  %v1092_v21 = vsel %vm806_vm1, %v1091_v14, %v1066_v62  ;;  %v1123_v23 = vrot.slane %v1052_v18, 4 }
 0x2be   : > { %v1090_v24 = vperm.slane %v1082_v20, %v3020_v4  ;;  %v1098_v22 = vperm.slane %v1092_v21, %v3020_v4  ;;  %v1109_v26 = vrot.slane %v1102_v44, 4  ;;  %v1126_v27 = vsel %vm806_vm1, %v1052_v18, %v1125_v15 }
 0x2bf   : > { %v1080_v29 = vsel %vm806_vm1, %v1079_v19, %v1062_v1  ;;  %v1124_v30 = vsel %vm806_vm1, %v1123_v23, %v3191_v31  ;;  %v1134_v32 = vperm.slane %v1126_v27, %v3010_v54 }
 0x2c0   : > { %v1086_v33 = vperm.slane %v1080_v29, %v3020_v4  ;;  %v1105_v34 = vrot.slane %v1090_v24, 4  ;;  %v1107_v35 = vrot.slane %v1098_v22, 4  ;;  %v1110_v36 = vsel %vm806_vm1, 0.0, %v1109_v26 }
 0x2c1   : > { %v1178_v37 = vsel %vm806_vm1, %v1109_v26, %v1098_v22  ;;  %v1183_v38 = vrot.slane %v1110_v36, 4  ;;  %v1130_v39 = vperm.slane %v1124_v30, %v3010_v54  ;;  %v1147_v40 = vrot.slane %v1134_v32, 4 }
 0x2c2   : > { %v1103_v42 = vrot.slane %v1086_v33, 4  ;;  %v1106_v43 = vsel %vm806_vm1, 0.0, %v1105_v34  ;;  %v1108_v45 = vsel %vm806_vm1, 0.0, %v1107_v35  ;;  %v1167_v31 = vsel %vm806_vm1, %v1105_v34, %v1086_v33 }
 0x2c3   : > { %v1171_v47 = vperm.slane %v1167_v31, %v3010_v54  ;;  %v1172_v49 = vrot.slane %v1106_v43, 4  ;;  %v1182_v50 = vperm.slane %v1178_v37, %v3010_v54  ;;  %v1184_v51 = vsel %vm806_vm1, %v1183_v38, %v1108_v45 }
 0x2c4   : > { %v1104_v52 = vsel %vm806_vm1, 0.0, %v1103_v42  ;;  %v1188_v53 = vperm.slane %v1184_v51, %v3010_v54  ;;  %v1135_v55 = vrot.slane %v1130_v39, 4  ;;  %v1138_v56 = vsel %vm806_vm1, %v1130_v39, %v1137_v28 }
 0x2c5   : > { %v1173_v57 = vsel %vm806_vm1, %v1172_v49, %v1104_v52  ;;  %v1191_v58 = vrot.slane %v1171_v47, 4  ;;  %v1203_v59 = vrot.slane %v1182_v50, 4  ;;  %v1146_v60 = vperm.slane %v1138_v56, %v3020_v4 }
 0x2c6   : > { %v1177_v61 = vperm.slane %v1173_v57, %v3010_v54  ;;  %v1201_v62 = vrot.slane %v1188_v53, 4  ;;  %v1136_v63 = vsel %vm806_vm1, %v1135_v55, %v1118_v10  ;;  %v1148_v0 = vsel %vm806_vm1, %v1147_v40, %v1122_v3 }
 0x2c7   : > { %v1204_v1 = vsel %vm806_vm1, %v1188_v53, %v1203_v59  ;;  %v1142_v2 = vperm.slane %v1136_v63, %v3020_v4  ;;  %v1150_v5 = vsel %vm806_vm1, %v1134_v32, %v1149_v7  ;;  %v1154_v6 = vperm.slane %v1148_v0, %v3020_v4 }
 0x2c8   : > { %v1189_v16 = vrot.slane %v1177_v61, 4  ;;  %v1192_v8 = vsel %vm806_vm1, %v1177_v61, %v1191_v58  ;;  %v1202_v9 = vsel %vm806_vm1, %v1201_v62, %v1182_v50  ;;  %v1212_v11 = vperm.slane %v1204_v1, %v3020_v4 }
 0x2c9   : > { %v1200_v17 = vperm.slane %v1192_v8, %v3020_v4  ;;  %v1208_v10 = vperm.slane %v1202_v9, %v3020_v4  ;;  %v1158_v3 = vperm.slane %v1150_v5, %v3020_v4  ;;  %v1159_v12 = vrot.slane %v1142_v2, 4 }
 0x2ca   : > { %v1190_v14 = vsel %vm806_vm1, %v1189_v16, %v1171_v47  ;;  %v1217_v13 = vrot.slane %v1212_v11, 4  ;;  %v1161_v7 = vrot.slane %v1146_v60, 4  ;;  %v1163_v15 = vrot.slane %v1154_v6, 4 }
 0x2cb   : > { %v1196_v44 = vperm.slane %v1190_v14, %v3020_v4  ;;  %v1213_v18 = vrot.slane %v1208_v10, 4  ;;  %v1219_v19 = vrot.slane %v1200_v17, 4  ;;  %v1160_v20 = vsel %vm806_vm1, 0.0, %v1159_v12 }
 0x2cc   : > { %v1218_v21 = vsel %vm806_vm1, %v1217_v13, %v1200_v17  ;;  %v1162_v23 = vsel %vm806_vm1, 0.0, %v1161_v7  ;;  %v1164_v24 = vsel %vm806_vm1, 0.0, %v1163_v15  ;;  %v1165_v22 = vrot.slane %v1158_v3, 4 }
 0x2cd   : > { %v1214_v26 = vsel %vm806_vm1, %v1213_v18, %v1196_v44  ;;  %v1215_v27 = vrot.slane %v1196_v44, 4  ;;  %v1220_v28 = vsel %vm806_vm1, %v1212_v11, %v1219_v19  ;;  %1279 = vst.msk [vmem:[#allocation3 + $0x20] sm:$0xff] %vm1026_vm2, %v1218_v21  ;;  %v1221_v29 = vsel %vm806_vm1, %v1161_v7, %v1142_v2 }
 0x2ce   : > { %1275 = vst.msk [vmem:[#allocation3] sm:$0xff] %vm1026_vm2, %v1214_v26  ;;  %v1166_v30 = vsel %vm806_vm1, 0.0, %v1165_v22  ;;  %v1225_v32 = vperm.slane %v1221_v29, %v3010_v54  ;;  %v1226_v33 = vrot.slane %v1162_v23, 4  ;;  %v1232_v34 = vsel %vm806_vm1, %v1165_v22, %v1154_v6 }
 0x2cf   : > { %v1216_v35 = vsel %vm806_vm1, %v1208_v10, %v1215_v27  ;;  %1281 = vst.msk [vmem:[#allocation3 + $0x30] sm:$0xff] %vm1026_vm2, %v1220_v28  ;;  %v1236_v36 = vperm.slane %v1232_v34, %v3010_v54  ;;  %v1237_v37 = vrot.slane %v1166_v30, 4 }
 0x2d0   : > { %1277 = vst.msk [vmem:[#allocation3 + $0x10] sm:$0xff] %vm1026_vm2, %v1216_v35  ;;  %v1227_v38 = vsel %vm806_vm1, %v1226_v33, %v1160_v20  ;;  %v1245_v39 = vrot.slane %v1225_v32, 4 }
 0x2d1   : > { %v1231_v40 = vperm.slane %v1227_v38, %v3010_v54  ;;  %v1238_v42 = vsel %vm806_vm1, %v1237_v37, %v1164_v24  ;;  %v1257_v43 = vrot.slane %v1236_v36, 4  ;;  %v1861_v24 = vld [vmem:[#allocation16 + $0x78] sm:$0xff] }
 0x2d2   : > { %v1242_v45 = vperm.slane %v1238_v42, %v3010_v54  ;;  %1866 = vmatpush.msrb.mxu2 %v1861_v24 }
 0x2d3   : > { %v1243_v31 = vrot.slane %v1231_v40, 4  ;;  %v1246_v47 = vsel %vm806_vm1, %v1231_v40, %v1245_v39 }
 0x2d4   : > { %v1254_v49 = vperm.slane %v1246_v47, %v3020_v4  ;;  %v1255_v50 = vrot.slane %v1242_v45, 4  ;;  %v1258_v51 = vsel %vm806_vm1, %v1242_v45, %v1257_v43  ;;  %v1623_v16 = vld [vmem:[#allocation3 + $0x20] sm:$0xff] }
 0x2d5   : > { %v1244_v52 = vsel %vm806_vm1, %v1243_v31, %v1225_v32  ;;  %v1266_v53 = vperm.slane %v1258_v51, %v3020_v4  ;;  %v1619_v9 = vld [vmem:[#allocation3] sm:$0xff] }
 0x2d6   : > { %v1250_v55 = vperm.slane %v1244_v52, %v3020_v4  ;;  %v1256_v56 = vsel %vm806_vm1, %v1255_v50, %v1236_v36  ;;  %v1273_v57 = vrot.slane %v1254_v49, 4  ;;  %v1625_v17 = vld [vmem:[#allocation3 + $0x30] sm:$0xff] }
 0x2d7   : > { %v1262_v58 = vperm.slane %v1256_v56, %v3020_v4  ;;  %v1271_v59 = vrot.slane %v1266_v53, 4  ;;  %v1621_v8 = vld [vmem:[#allocation3 + $0x10] sm:$0xff] }
 0x2d8   : > { %v1269_v60 = vrot.slane %v1250_v55, 4  ;;  %v1274_v61 = vsel %vm806_vm1, %v1266_v53, %v1273_v57 }
 0x2d9   : > { %v1267_v62 = vrot.slane %v1262_v58, 4  ;;  %v1272_v63 = vsel %vm806_vm1, %v1271_v59, %v1254_v49  ;;  %1282 = vst.msk [vmem:[#allocation3 + $0x38] sm:$0xff] %vm1026_vm2, %v1274_v61 }
 0x2da   : > { %v1270_v0 = vsel %vm806_vm1, %v1262_v58, %v1269_v60  ;;  %1280 = vst.msk [vmem:[#allocation3 + $0x28] sm:$0xff] %vm1026_vm2, %v1272_v63 }
 0x2db   : > { %v1268_v1 = vsel %vm806_vm1, %v1267_v62, %v1250_v55  ;;  %1278 = vst.msk [vmem:[#allocation3 + $0x18] sm:$0xff] %vm1026_vm2, %v1270_v0 }
 0x2dc   : > { %1276 = vst.msk [vmem:[#allocation3 + $0x8] sm:$0xff] %vm1026_vm2, %v1268_v1 }
 0x2e0   : > { %v1626_v11 = vld [vmem:[#allocation3 + $0x38] sm:$0xff] }
 0x2e1   : > { %v1624_v2 = vld [vmem:[#allocation3 + $0x28] sm:$0xff] }
 0x2e2   : > { %1690 = vmatpush.msra.mxu0 %v1624_v2  ;;  %v1622_v5 = vld [vmem:[#allocation3 + $0x18] sm:$0xff] }
 0x2e3   : > { %v1620_v6 = vld [vmem:[#allocation3 + $0x8] sm:$0xff]  ;;  %1667 = vmatpush.msrb.mxu3 %v1622_v5 }
 0x2e4   : > { %1644 = vmatpush.msrb.mxu1 %v1620_v6  ;;  %1691 = vmatpush.msra.mxu0 %v1623_v16 }
 0x2e5   : > { %1668 = vmatpush.msrb.mxu3 %v1621_v8 }
 0x2e6   : > { %1645 = vmatpush.msrb.mxu1 %v1619_v9 }
 0x2e8   : > { %1713 = vmatpush.msra.mxu1 %v1626_v11 }
 0x2ea   : > { %1714 = vmatpush.msra.mxu1 %v1625_v17 }
 0x31c   : > { %v1601_v10 = vpop.xlane.xlu2 %1600 }
 0x31d   : > { %2324 = vrcp.f32 %v1601_v10 }
 0x323   : > { %v2325_v3 = vpop.eup %2324 }
 0x324   : > { %v1604_v12 = vpop.xlane.xlu1 %1603  ;;  %v1610_v14 = vpop.xlane.xlu2 %1609  ;;  %v1615_v13 = vmul.f32 %v2325_v3, %v3193_v41 }
 0x325   : > { %2326 = vrcp.f32 %v1604_v12 }
 0x326   : > { %2328 = vrcp.f32 %v1610_v14  ;;  %2173 = vmatmul.msk.f32.vlgmr.msrb.gmra.mxu1 %vm1574_vm3, %v1615_v13 }
 0x32b   : > { %v2327_v7 = vpop.eup %2326 }
 0x32c   : > { %v2329_v15 = vpop.eup %2328  ;;  %v1616_v44 = vmul.f32 %v2327_v7, %v3199_v48  ;;  %v1607_v18 = vpop.xlane.xlu0 %1606 }
 0x32d   : > { %v1618_v19 = vmul.f32 %v2329_v15, %v3197_v46  ;;  %2330 = vrcp.f32 %v1607_v18 }
 0x32e   : > { %2174 = vmatmul.msk.f32.vlgmr.msrb.gmra.mxu3 %vm1574_vm3, %v1616_v44 }
 0x32f   : > { %2176 = vmatmul.msk.f32.vlgmr.msra.gmra.mxu1 %vm1574_vm3, %v1618_v19 }
 0x333   : > { %v2331_v20 = vpop.eup %2330 }
 0x334   : > { %v1617_v21 = vmul.f32 %v2331_v20, %v3212_v25 }
 0x336   : > { %2175 = vmatmul.msk.f32.vlgmr.msra.gmra.mxu0 %vm1574_vm3, %v1617_v21 }
 0x3a3   : > { %v1647_v41 = vpop.f32.mrf.mxu1 }
 0x3a4   : > { %v1721_v48 = vrot.slane %v1647_v41, 4 }
 0x3ac   : > { %v1716_v23 = vpop.f32.mrf.mxu1 }
 0x3ad   : > { %v1731_v22 = vrot.slane %v1716_v23, 4 }
 0x3b1   : > { %v1670_v26 = vpop.f32.mrf.mxu3 }
 0x3b2   : > { %v1732_v27 = vsel %vm806_vm1, %v1731_v22, %v1670_v26  ;;  %v1733_v46 = vrot.slane %v1670_v26, 4  ;;  %v1860_v26 = vld [vmem:[#allocation16 + $0x70] sm:$0xff] }
 0x3b3   : > { %v1738_v28 = vperm.slane %v1732_v27, %v3010_v54  ;;  %v1693_v29 = vpop.f32.mrf.mxu0  ;;  %1867 = vmatpush.msrb.mxu2 %v1860_v26  ;;  %v1858_v27 = vld [vmem:[#allocation16 + $0x60] sm:$0xff] }
 0x3b4   : > { %v1734_v30 = vsel %vm806_vm1, %v1716_v23, %v1733_v46  ;;  %v1719_v32 = vrot.slane %v1693_v29, 4  ;;  %v1722_v25 = vsel %vm806_vm1, %v1693_v29, %v1721_v48  ;;  %v1859_v48 = vld [vmem:[#allocation16 + $0x68] sm:$0xff]  ;;  %v1856_v46 = vld [vmem:[#allocation16 + $0x50] sm:$0xff]  ;;  %v1854_v29 = vld [vmem:[#allocation16 + $0x40] sm:$0xff] }
 0x3b5   : > { %v1742_v33 = vperm.slane %v1734_v30, %v3010_v54  ;;  %v1730_v34 = vperm.slane %v1722_v25, %v3010_v54  ;;  %v1743_v36 = vrot.slane %v1738_v28, 4  ;;  %1868 = vmatpush.msrb.mxu2 %v1859_v48  ;;  %v1853_v30 = vld [vmem:[#allocation16 + $0x38] sm:$0xff]  ;;  %v1851_v25 = vld [vmem:[#allocation16 + $0x28] sm:$0xff] }
 0x3b6   : > { %v1720_v35 = vsel %vm806_vm1, %v1719_v32, %v1647_v41  ;;  %v1852_v32 = vld [vmem:[#allocation16 + $0x30] sm:$0xff] }
 0x3b7   : > { %v1755_v37 = vrot.slane %v1742_v33, 4  ;;  %v1726_v38 = vperm.slane %v1720_v35, %v3010_v54  ;;  %v1757_v39 = vrot.slane %v1730_v34, 4  ;;  %1869 = vmatpush.msrb.mxu2 %v1858_v27  ;;  %v1848_v35 = vld [vmem:[#allocation16 + $0x10] sm:$0xff] }
 0x3b9   : > { %v1744_v40 = vsel %vm806_vm1, %v1743_v36, %v1726_v38  ;;  %v1745_v42 = vrot.slane %v1726_v38, 4  ;;  %v1756_v43 = vsel %vm806_vm1, %v1755_v37, %v1730_v34  ;;  %v1758_v45 = vsel %vm806_vm1, %v1742_v33, %v1757_v39  ;;  %v1850_v33 = vld [vmem:[#allocation16 + $0x20] sm:$0xff]  ;;  %v1849_v34 = vld [vmem:[#allocation16 + $0x18] sm:$0xff]  ;;  %v1847_v36 = vld [vmem:[#allocation16 + $0x8] sm:$0xff] }
 0x3ba   : > { %v1750_v31 = vperm.slane %v1744_v40, %v3020_v4  ;;  %v1762_v47 = vperm.slane %v1756_v43, %v3020_v4  ;;  %v1766_v49 = vperm.slane %v1758_v45, %v3020_v4  ;;  %v1846_v37 = vld [vmem:[#allocation16] sm:$0xff] }
 0x3bb   : > { %v1746_v50 = vsel %vm806_vm1, %v1738_v28, %v1745_v42  ;;  %v1855_v28 = vld [vmem:[#allocation16 + $0x48] sm:$0xff] }
 0x3bc   : > { %v1754_v51 = vperm.slane %v1746_v50, %v3020_v4  ;;  %v1771_v52 = vrot.slane %v1762_v47, 4  ;;  %v1773_v53 = vrot.slane %v1766_v49, 4  ;;  %v1767_v55 = vrot.slane %v1750_v31, 4  ;;  %v2336_v50 = vld [vmem:[%s2946_s16] sm:$0xff]  ;;  %s2178_s16 = sshll.u32 %s3466_s13, 3  ;;  %s2597_s13 = scalar_lea.hbm %s3468_s21, 16 }
 0x3bd   : > { %s1937_s20 = scalar_lea.hbm %s3468_s21, %s2178_s16 }
 0x3be   : > { %v1769_v56 = vrot.slane %v1754_v51, 4  ;;  %v1774_v57 = vsel %vm806_vm1, 0.0, %v1773_v53  ;;  %v1786_v58 = vsel %vm806_vm1, %v1773_v53, %v1762_v47  ;;  %v1772_v62 = vsel %vm806_vm1, 0.0, %v1771_v52  ;;  %s1941_s15 = sshll.u32 %s1937_s20, 4  ;;  %s1942_s15 = int_to_ptr.hbm [resolvable:$true] %s1941_s15 }
 0x3bf   : > { %v1790_v59 = vperm.slane %v1786_v58, %v3010_v54  ;;  %v1791_v60 = vrot.slane %v1774_v57, 4  ;;  %v1768_v6 = vsel %vm806_vm1, 0.0, %v1767_v55  ;;  %v2692_v52 = vmov 128.0   ;;  %s2591_s29 = sshra.s32 %s1942_s15, 4  ;;  %s2592_s29 = int_to_ptr.hbm [resolvable:$true] %s2591_s29 }
 0x3c0   : > { %v1770_v61 = vsel %vm806_vm1, 0.0, %v1769_v56  ;;  %v1775_v63 = vsel %vm806_vm1, %v1769_v56, %v1750_v31  ;;  %v2313_v31 = vld [vmem:[%s3465_s26] ss:$0 sm:$0xff]  ;;  %2332 = vrcp.f32 %v2692_v52  ;;  %s2593_s5 = scalar_lea.hbm %s2592_s29, 8  ;;  %p2598_p8 = scmp.lt.s32.totalorder %s2592_s29, %s3468_s21 }
 0x3c1   : > { %v1780_v0 = vrot.slane %v1770_v61, 4  ;;  %v1792_v1 = vsel %vm806_vm1, %v1791_v60, %v1772_v62  ;;  %v1779_v2 = vperm.slane %v1775_v63, %v3010_v54  ;;  %v1811_v5 = vrot.slane %v1790_v59, 4  ;;  %p2594_p1 = scmp.ne.s32.totalorder %s2592_s29, %s2593_s5  ;;  %p2599_p10 = scmp.lt.s32.totalorder %s2597_s13, %s2593_s5 }
 0x3c2   : > { %v1796_v16 = vperm.slane %v1792_v1, %v3010_v54 }
 0x3c3   : > { %v1781_v8 = vsel %vm806_vm1, %v1780_v0, %v1768_v6  ;;  %v1799_v9 = vrot.slane %v1779_v2, 4  ;;  %p2595_p2 = pnand %p2594_p1, %p2857_p7  ;;  %p2600_p11 = por %p2599_p10, %p2598_p8 }
 0x3c4   : > { %v1785_v11 = vperm.slane %v1781_v8, %v3010_v54  ;;  %v1812_v17 = vsel %vm806_vm1, %v1796_v16, %v1811_v5  ;;  %v1809_v10 = vrot.slane %v1796_v16, 4 }
 0x3c5   : > { %v1820_v3 = vperm.slane %v1812_v17, %v3020_v4  ;;  %v2314_v17 = vld [vmem:[%s3467_s22] ss:$0 sm:$0xff]  ;;  %p2596_p4 = pneg %p2595_p2 }
 0x3c6   : > { %v1800_v12 = vsel %vm806_vm1, %v1785_v11, %v1799_v9  ;;  %v1797_v14 = vrot.slane %v1785_v11, 4  ;;  %v1810_v13 = vsel %vm806_vm1, %v1809_v10, %v1790_v59  ;;  %v2333_v53 = vpop.eup %2332 }
 0x3c7   : > { %v1808_v7 = vperm.slane %v1800_v12, %v3020_v4  ;;  %v1825_v15 = vrot.slane %v1820_v3, 4  ;;  %v1816_v44 = vperm.slane %v1810_v13, %v3020_v4  ;;  %v1890_v55 = vmul.f32 128.0, %v2333_v53  ;;  %v2315_v12 = vld [vmem:[%s3470_s28] ss:$0 sm:$0xff]  ;;  %p2601_p12 = pnand %p2600_p11, %p2596_p4 }
 0x3c8   : > { %v1798_v18 = vsel %vm806_vm1, %v1797_v14, %v1779_v2  ;;  %vm1894_vm5 = vweird.f32 %v2333_v53 }
 0x3c9   : > { %v1826_v19 = vsel %vm806_vm1, %v1825_v15, %v1808_v7  ;;  %v1827_v54 = vrot.slane %v1808_v7, 4  ;;  %v1804_v20 = vperm.slane %v1798_v18, %v3020_v4  ;;  %v1821_v21 = vrot.slane %v1816_v44, 4  ;;  %v1857_v4 = vld [vmem:[#allocation16 + $0x58] sm:$0xff] }
 0x3ca   : > { %1834 = vrot.lane.b32.xlu0 %v1826_v19, %s2687_s6  ;;  %1870 = vmatpush.msrb.mxu2 %v1857_v4  ;;  %v1891_v56 = vsub.f32 1.0, %v1890_v55 }
 0x3cb   : > { %v1828_v41 = vsel %vm806_vm1, %v1820_v3, %v1827_v54  ;;  %v1823_v23 = vrot.slane %v1804_v20, 4  ;;  %v1822_v24 = vsel %vm806_vm1, %v1821_v21, %v1804_v20 }
 0x3cc   : > { %1838 = vrot.lane.b32.xlu2 %v1828_v41, %s2689_s27  ;;  %1871 = vmatpush.msrb.mxu2 %v1856_v46  ;;  %v1892_v57 = vmul.f32 %v2333_v53, %v1891_v56 }
 0x3cd   : > { %v1824_v22 = vsel %vm806_vm1, %v1816_v44, %v1823_v23 }
 0x3ce   : > { %1830 = vrot.lane.b32.xlu1 %v1824_v22, %s2688_s7  ;;  %1872 = vmatpush.msrb.mxu2 %v1855_v28  ;;  %v1893_v58 = vadd.f32 %v2333_v53, %v1892_v57 }
 0x3d0   : > { %1873 = vmatpush.msrb.mxu2 %v1854_v29  ;;  %v1895_v59 = vsel %vm1894_vm5, %v2333_v53, %v1893_v58 }
 0x3d2   : > { %1874 = vmatpush.msrb.mxu2 %v1853_v30 }
 0x3d4   : > { %1875 = vmatpush.msrb.mxu2 %v1852_v32 }
 0x3d6   : > { %1876 = vmatpush.msrb.mxu2 %v1851_v25 }
 0x3d8   : > { %1877 = vmatpush.msrb.mxu2 %v1850_v33 }
 0x3da   : > { %1878 = vmatpush.msrb.mxu2 %v1849_v34 }
 0x3dc   : > { %1879 = vmatpush.msrb.mxu2 %v1848_v35 }
 0x3de   : > { %1880 = vmatpush.msrb.mxu2 %v1847_v36 }
 0x3e0   : > { %1881 = vmatpush.msrb.mxu2 %v1846_v37 }
 0x426   : > { %v1839_v42 = vpop.permute.xlu2 %1838 }
 0x43c   : > { %v1835_v39 = vpop.permute.xlu0 %1834 }
 0x440   : > { %v1831_v38 = vpop.permute.xlu1 %1830 }
 0x441   : > { %v1841_v40 = vsel %vm1026_vm2, %v1822_v24, %v1831_v38 }
 0x442   : > { %v1843_v43 = vsel %vm714_vm0, %v1841_v40, %v1835_v39 }
 0x443   : > { %v1845_v45 = vsel %vm1844_vm4, %v1843_v43, %v1839_v42 }
 0x444   : > { %1882 = vmatmul.f32.vlgmr.msrb.gmra.mxu2 %v1845_v45 }
 0x4c7   : > { %v1883_v47 = vpop.f32.mrf.mxu2 }
 0x4c8   : > { %v1884_v49 = vadd.f32 %v2313_v31, %v1883_v47 }
 0x4ca   : > { %v1886_v51 = vadd.f32 %v2336_v50, %v1884_v49 }
 0x4cc   : > { %1887 = vadd.xlane.f32.xlu0 %v1886_v51 }
 0x53f   : > { %v1888_v60 = vpop.xlane.xlu0 %1887 }
 0x540   : > { %v1896_v61 = vmul.f32 %v1895_v59, %v1888_v60 }
 0x542   : > { %v1897_v62 = vsub.f32 %v1886_v51, %v1896_v61 }
 0x544   : > { %v1898_v63 = vmul.f32 %v1897_v62, %v1897_v62 }
 0x546   : > { %1899 = vadd.xlane.f32.xlu1 %v1898_v63 }
 0x5b9   : > { %v1900_v0 = vpop.xlane.xlu1 %1899 }
 0x5ba   : > { %v1901_v1 = vmul.f32 %v1900_v0, %v1895_v59 }
 0x5bc   : > { %v1902_v2 = vadd.f32 1e-05, %v1901_v1 }
 0x5be   : > { %2334 = vrsqrt.f32 %v1902_v2  ;;  %vm1909_vm7 = vweird.f32 %v1902_v2 }
 0x5c4   : > { %v2335_v5 = vpop.eup %2334 }
 0x5c5   : > { %v1904_v6 = vmul.f32 %v2335_v5, %v1902_v2  ;;  %vm1910_vm6 = vweird.f32 %v2335_v5 }
 0x5c6   : > { %vm1911_vm8 = vmor %vm1909_vm7, %vm1910_vm6 }
 0x5c7   : > { %v1905_v16 = vmul.f32 %v2335_v5, %v1904_v6 }
 0x5c9   : > { %v1906_v8 = vmul.f32 0.5, %v1905_v16 }
 0x5cb   : > { %v1907_v9 = vsub.f32 1.5, %v1906_v8 }
 0x5cd   : > { %v1908_v11 = vmul.f32 %v2335_v5, %v1907_v9 }
 0x5cf   : > { %v1912_v10 = vsel %vm1911_vm8, %v2335_v5, %v1908_v11 }
 0x5d0   : > { %v1913_v3 = vmul.f32 %v1912_v10, %v1897_v62 }
 0x5d2   : > { %v1918_v14 = vmul.f32 %v2314_v17, %v1913_v3 }
 0x5d4   : > { %v1923_v13 = vadd.f32 %v2315_v12, %v1918_v14 }
 0x5d6   : > { %1924 = vst [vmem:[%s693_s24] sm:$0xff] %v1923_v13 }
 0x5d7   : > { %2604 = shalt.err (!%p2601_p12)
}
 0x5d8   : > { %2208 = dma.vmem_to_hbm [thread:$0]  (%p2857_p7), %s1940_s12, 128, %s1942_s15, %s1926_s14  }
 0x5d9 PF: > { %s3471_s4 = sld [smem:[#allocation26_spill]]  ;;  %p3473_p13 = scmp.ge.s32.totalorder %s2679_s18, 2 }
 0x5db   : > { %p2237_p0 = pnand %p3473_p13, %p2813_p6 }
 0x5dd   : > { %p2238_p3 = pneg %p2237_p0 }
 0x5df   : > { %s1953_s23 = sand.u32 1, %s3471_s4  }
 0x5e0   : > { %s1954_s22 = scalar_lea.sflag [#allocation6], %s1953_s23 }
 0x5e1   : > { %2654 = dma.done.wait (%p2238_p3), %s1954_s22, 128  }
 0x5e2   : > { %2656 = vsyncadd (%p2238_p3), %s1954_s22, 4294967168  ;;  %s38_s18 = sadd.s32 1, %s2679_s18   ;;  %s3474_s1 = sld [smem:[#allocation27_spill]] }
 0x5e3   : > { %p35_p5 = scmp.ge.s32.totalorder %s38_s18, 4   ;;  %s3475_s15 = sld [smem:[#allocation32_spill]] }
 0x5e4   : > { %s3476_s19 = sld [smem:[#allocation30_spill]]  ;;  %s3477_s29 = smov %s2663_s30 }
 0x5e5   : > { %s3479_s16 = smov %s2675_s17 }
 0x5e6   :  { %37 = sbr.rel (!%p35_p5) target bundleno = 23 (0x17), region = 178 }
 0x5e8   : > { %s3478_s30 = smov %s3474_s1 }
 0x5ea   : > { %s3480_s17 = smov %s3476_s19 }
 0x5eb   :  { %1960 = vsyncpa [#allocation5], 1 }
 0x5ec   :  { %1962 = vsyncpa [#allocation5 + $0x1], 1 }
 0x5ed   :  { %1963 = vsyncpa [#allocation8], 1 }
 0x5ee   :  { %1965 = vsyncpa [#allocation8 + $0x1], 1 }
 0x5ef   :  { %1966 = vsyncpa [#allocation11], 1 }
 0x5f0   :  { %1968 = vsyncpa [#allocation11 + $0x1], 1 }
 0x5f1   :  { %1969 = vsyncpa [#allocation14], 1 }
 0x5f2   :  { %1970 = vsyncpa [#allocation17], 1 }
 0x5f3   :  { %1971 = vsyncpa [#allocation6], 1 }
 0x5f4   :  { %1973 = vsyncpa [#allocation6 + $0x1], 1 }

// kernel: tpu_custom_call.1
= control target key start
LH: loop header
LB: loop body
LE: loop exit
PB: predicated region body
PF: predicated region fallthrough
CT: control target
= control target key end

     0   :  { %s3406_s0 = inlined_call_operand.hbm [shape: f32[2,8,128], index: 0, kind: input, shape index: {}]   ;;  %s3407_s1 = inlined_call_operand.hbm [shape: f32[2,16,64], index: 1, kind: input, shape index: {}]   ;;  %s3408_s2 = inlined_call_operand.hbm [shape: f32[2,16,64], index: 2, kind: input, shape index: {}]   ;;  %s3409_s3 = inlined_call_operand.hbm [shape: f32[2,4,8,16], index: 3, kind: input, shape index: {}]   ;;  %s3410_s4 = inlined_call_operand.hbm [shape: f32[128,128], index: 4, kind: input, shape index: {}]   ;;  %s3411_s5 = inlined_call_operand.vmem [shape: f32[1,128], index: 5, kind: input, shape index: {}]   ;;  %s3412_s6 = inlined_call_operand.hbm [shape: f32[64,128], index: 6, kind: input, shape index: {}]   ;;  %s3413_s7 = inlined_call_operand.vmem [shape: f32[1,128], index: 7, kind: input, shape index: {}]   ;;  %s3414_s8 = inlined_call_operand.hbm [shape: f32[64,128], index: 8, kind: input, shape index: {}]   ;;  %s3415_s9 = inlined_call_operand.vmem [shape: f32[1,128], index: 9, kind: input, shape index: {}]   ;;  %s3416_s10 = inlined_call_operand.hbm [shape: f32[128,128], index: 10, kind: input, shape index: {}]   ;;  %s3417_s11 = inlined_call_operand.vmem [shape: f32[1,128], index: 11, kind: input, shape index: {}]   ;;  %s3418_s12 = inlined_call_operand.vmem [shape: f32[1,128], index: 12, kind: input, shape index: {}]   ;;  %s3419_s13 = inlined_call_operand.vmem [shape: f32[1,128], index: 13, kind: input, shape index: {}]   ;;  %s3420_s14 = inlined_call_operand.hbm [shape: f32[2,8,128], index: 14, kind: output, shape index: {}]  }
   0x1   :  { %3433 = sst [smem:[#allocation33_spill]] %s3407_s1 }
   0x2   :  { %3434 = sst [smem:[#allocation34_spill]] %s3410_s4 }
   0x3   :  { %3435 = sst [smem:[#allocation35_spill]] %s3411_s5 }
   0x4   :  { %3436 = sst [smem:[#allocation36_spill]] %s3412_s6 }
   0x5   :  { %3437 = sst [smem:[#allocation37_spill]] %s3413_s7 }
   0x6   :  { %3438 = sst [smem:[#allocation38_spill]] %s3415_s9 }
   0x7   :  { %3439 = sst [smem:[#allocation39_spill]] %s3417_s11 }
   0x8   :  { %3440 = sst [smem:[#allocation40_spill]] %s3418_s12 }
   0x9   :  { %3441 = sst [smem:[#allocation41_spill]] %s3419_s13 }
   0xa   :  { %3442 = sst [smem:[#allocation42_spill]] %s3420_s14 }
   0xb   :  { %19 = vsyncpa [#allocation5], 0 }
   0xc   :  { %21 = vsyncpa [#allocation5 + $0x1], 0 }
   0xd   :  { %22 = vsyncpa [#allocation8], 0 }
   0xe   :  { %24 = vsyncpa [#allocation8 + $0x1], 0 }
   0xf   :  { %25 = vsyncpa [#allocation11], 0 }
  0x10   :  { %27 = vsyncpa [#allocation11 + $0x1], 0 }
  0x11   :  { %28 = vsyncpa [#allocation14], 0 }
  0x12   :  { %29 = vsyncpa [#allocation17], 0 }
  0x13   :  { %30 = vsyncpa [#allocation6], 0 }
  0x14   :  { %32 = vsyncpa [#allocation6 + $0x1], 0  ;;  %s2768_s29 = smov 0   ;;  %s2770_s30 = smov 0  }
  0x15   :  { %s2772_s15 = smov 0   ;;  %s2774_s16 = smov 0  }
  0x16   :  { %s2776_s17 = smov 0   ;;  %s2778_s18 = smov 0  }
  0x17 LB: > { %3443 = sst [smem:[#allocation26_spill]] %s2659_s29  ;;  %s2799_s19 = sadd.s32 4294967295, %s2679_s18   ;;  %s2679_s18 = sphi %s2778_s18, %s38_s18   ;;  %s2675_s17 = sphi %s2776_s17, %s3480_s17   ;;  %s2671_s16 = sphi %s2774_s16, %s3479_s16   ;;  %s2667_s15 = sphi %s2772_s15, %s3475_s15   ;;  %s2663_s30 = sphi %s2770_s30, %s3478_s30   ;;  %s2659_s29 = sphi %s2768_s29, %s3477_s29  }
  0x18   : > { %3444 = sst [smem:[#allocation27_spill]] %s2667_s15  ;;  %s2129_s20 = sadd.s32 4294967294, %s2679_s18  }
  0x19   : > { %3445 = sst [smem:[#allocation28_spill]] %s2671_s16  ;;  %p72_p0 = scmp.ne.s32.totalorder %s2663_s30, %s2659_s29 }
  0x1a   : > { %p73_p1 = scmp.eq.s32.totalorder %s2799_s19, 0  ;;  %p388_p2 = scmp.eq.s32.totalorder %s2799_s19, 1 }
  0x1b   : > { %p394_p3 = scmp.eq.s32.totalorder %s2129_s20, 1  ;;  %p2130_p5 = scmp.ge.s32.totalorder %s2679_s18, 1 }
  0x1c   : > { %p2808_p4 = por %p73_p1, %p72_p0  ;;  %p401_p7 = scmp.lt.s32.totalorder %s2679_s18, 3 }
  0x1d   : > { %p2813_p6 = por %p394_p3, %p72_p0  ;;  %s3449_s4 = sld [smem:[#allocation34_spill]] }
  0x1e   : > { %p2821_p8 = pnand %p2130_p5, %p401_p7  ;;  %s2681_s27 = smov [#allocation12]  }
  0x1f   : > { %s3447_s22 = scalar_select %p2813_p6, 1, 0 }
  0x20   : > { %p2210_p9 = pneg %p2821_p8  ;;  %s414_s28 = sshll.u32 %s2681_s27, 4  ;;  %s415_s28 = int_to_ptr.vmem [resolvable:$true] %s414_s28 }
  0x21   : > { %3448 = sst [smem:[#allocation29_spill]] %s3447_s22  ;;  %s3423_s27 = smov 128  }
  0x22   : > { %p2829_p10 = pnand %p2210_p9, %p73_p1  ;;  %s3452_s6 = sld [smem:[#allocation36_spill]] }
  0x23   : > { %s412_s25 = sshll.u32 %s3449_s4, 4  ;;  %s3425_s22 = smov 8   ;;  %s413_s25 = int_to_ptr.hbm [resolvable:$true] %s412_s25 }
  0x24   : > { %2213 = dma.hbm_to_vmem [thread:$0]  (!%p2829_p10), %s413_s25, 2048, %s415_s28, [#allocation11], %s3423_s27, %s3423_s27, %s3425_s22  }
  0x25   : > { %s2684_s29 = smov [#allocation13]   ;;  %s50_s23 = sadd.s32 1, %s2675_s17 }
  0x26   : > { %s431_s13 = sshll.u32 %s2684_s29, 4  ;;  %s59_s24 = sadd.s32 1, %s2667_s15  ;;  %s432_s13 = int_to_ptr.vmem [resolvable:$true] %s431_s13 }
  0x27   : > { %p52_p12 = scmp.ge.s32.totalorder %s50_s23, 2  ;;  %p66_p13 = scmp.ne.s32.totalorder %s2667_s15, %s2663_s30 }
  0x28   : > { %s429_s4 = sshll.u32 %s3452_s6, 4  ;;  %p67_p0 = scmp.eq.s32.totalorder %s2679_s18, 0  ;;  %s430_s4 = int_to_ptr.hbm [resolvable:$true] %s429_s4 }
  0x29   : > { %2216 = dma.hbm_to_vmem [thread:$0]  (!%p2829_p10), %s430_s4, 1024, %s432_s13, [#allocation14], %s3423_s27, %s3423_s27, %s3425_s22  }
  0x2a   : > { %p2244_p3 = scmp.lt.s32.totalorder %s2679_s18, 2  ;;  %s3482_s23 = smov (%p52_p12, %s50_s23), 0 }
  0x2b   : > { %3453 = sst [smem:[#allocation30_spill]] %s3482_s23  ;;  %p68_p5 = por %p67_p0, %p66_p13 }
  0x2c   : > { %p2857_p7 = por %p388_p2, %p66_p13  ;;  %s54_s25 = ssub.s32 %s2675_s17, %s3482_s23 }
  0x2d   : > { %s2864_s4 = sand.u32 1, %s2667_s15   ;;  %p57_p9 = scmp.eq.s32.totalorder %s54_s25, 0 }
  0x2e   : > { %s3454_s29 = scalar_select %p2857_p7, 1, 0 }
  0x2f   : > { %p2866_p11 = pnand %p2244_p3, %p68_p5  ;;  %s3431_s28 = sand.u32 1, %s2679_s18  }
  0x30   : > { %3455 = sst [smem:[#allocation31_spill]] %s3454_s29  ;;  %s2138_s27 = sshll.u32 %s2864_s4, 4 }
  0x31   : > { %s2873_s22 = scalar_select %p57_p9, %s2667_s15, %s59_s24  }
  0x32   : > { %s2181_s6 = sshll.u32 %s2675_s17, 4  ;;  %s3458_s1 = sld [smem:[#allocation33_spill]] }
  0x33   : > { %3457 = sst [smem:[#allocation32_spill]] %s2873_s22  ;;  %s512_s29 = scalar_lea.vmem [#allocation7], %s2138_s27 }
  0x34   : > { %s520_s23 = sshll.u32 %s512_s29, 4  ;;  %s2881_s25 = scalar_lea.sflag [#allocation8], %s3431_s28  ;;  %s521_s23 = int_to_ptr.vmem [resolvable:$true] %s520_s23 }
  0x35   : > { %s3459_s9 = smov 8   ;;  %s3460_s5 = smov 128  }
  0x36   : > { %s539_s12 = scalar_lea.hbm %s3408_s2, %s2181_s6  ;;  %s534_s14 = scalar_lea.vmem [#allocation9], %s2138_s27 }
  0x37   : > { %s542_s29 = sshll.u32 %s534_s14, 4  ;;  %s446_s15 = sshll.u32 %s3414_s8, 4  ;;  %s2892_s29 = int_to_ptr.vmem [resolvable:$true] %s542_s29  ;;  %s447_s15 = int_to_ptr.hbm [resolvable:$true] %s446_s15 }
  0x38   : > { %s517_s16 = scalar_lea.hbm %s3458_s1, %s2181_s6  ;;  %s2685_s7 = smov [#allocation15]  }
  0x39   : > { %s518_s11 = sshll.u32 %s517_s16, 4  ;;  %s540_s16 = sshll.u32 %s539_s12, 4  ;;  %s519_s11 = int_to_ptr.hbm [resolvable:$true] %s518_s11  ;;  %s541_s16 = int_to_ptr.hbm [resolvable:$true] %s540_s16 }
  0x3a   : > { %2229 = dma.hbm_to_vmem [thread:$0]  (!%p2866_p11), %s519_s11, 256, %s521_s23, %s2881_s25, %s3460_s5, %s3460_s5, %s3459_s9  }
  0x3b   : > { %s448_s11 = sshll.u32 %s2685_s7, 4  ;;  %s463_s6 = sshll.u32 %s3416_s10, 4  ;;  %s449_s11 = int_to_ptr.vmem [resolvable:$true] %s448_s11  ;;  %s464_s6 = int_to_ptr.hbm [resolvable:$true] %s463_s6 }
  0x3c   : > { %2219 = dma.hbm_to_vmem [thread:$0]  (!%p2829_p10), %s447_s15, 1024, %s449_s11, [#allocation14], %s3460_s5, %s3460_s5, %s3459_s9  }
  0x3d   : > { %s2686_s1 = smov [#allocation16]   ;;  %s2136_s27 = sshll.u32 %s2864_s4, 3 }
  0x3e   : > { %s465_s7 = sshll.u32 %s2686_s1, 4  ;;  %s2137_s28 = sshll.u32 %s2675_s17, 3  ;;  %s466_s7 = int_to_ptr.vmem [resolvable:$true] %s465_s7 }
  0x3f   : > { %2222 = dma.hbm_to_vmem [thread:$0]  (!%p2829_p10), %s464_s6, 2048, %s466_s7, [#allocation17], %s3460_s5, %s3460_s5, %s3459_s9  }
  0x40   : > { %s497_s15 = scalar_lea.hbm %s3406_s0, %s2137_s28  ;;  %s492_s14 = scalar_lea.vmem [#allocation4], %s2136_s27 }
  0x41   : > { %s501_s11 = sshll.u32 %s492_s14, 4  ;;  %s499_s23 = sshll.u32 %s497_s15, 4  ;;  %s502_s11 = int_to_ptr.vmem [resolvable:$true] %s501_s11  ;;  %s500_s23 = int_to_ptr.hbm [resolvable:$true] %s499_s23 }
  0x42   : > { %s2144_s22 = sshll.u32 %s2864_s4, 5  ;;  %s489_s1 = scalar_lea.sflag [#allocation5], %s2864_s4 }
  0x43   : > { %2226 = dma.hbm_to_vmem [thread:$0]  (!%p2866_p11), %s500_s23, 128, %s502_s11, %s489_s1  }
  0x44   : > { %2232 = dma.hbm_to_vmem [thread:$0]  (!%p2866_p11), %s541_s16, 256, %s2892_s29, %s2881_s25, %s3460_s5, %s3460_s5, %s3459_s9  }
  0x45   : > { %s2183_s20 = sshll.u32 %s2675_s17, 5  ;;  %s556_s28 = scalar_lea.vmem [#allocation10], %s2144_s22 }
  0x46   : > { %s562_s27 = scalar_lea.hbm %s3409_s3, %s2183_s20  ;;  %s565_s24 = sshll.u32 %s556_s28, 4  ;;  %s566_s24 = int_to_ptr.vmem [resolvable:$true] %s565_s24 }
  0x47   : > { %s563_s12 = sshll.u32 %s562_s27, 4  ;;  %s3461_s15 = sand.u32 1, %s2679_s18   ;;  %s564_s12 = int_to_ptr.hbm [resolvable:$true] %s563_s12 }
  0x48   : > { %s553_s14 = scalar_lea.sflag [#allocation11], %s3461_s15  ;;  %577 = sbr.rel (%p2821_p8) target bundleno = 1497 (0x5d9), region = 76 }
  0x49   : > { %2235 = dma.hbm_to_vmem [thread:$0]  (!%p2866_p11), %s564_s12, 512, %s566_s24, %s553_s14, %s3460_s5, %s3460_s5, %s3459_s9  }
  0x4a   : > { %s2940_s4 = sand.u32 (!%p2821_p8), 1, %s2663_s30  }
  0x4b   : > { %s2148_s25 = sshll.u32 (!%p2821_p8), %s2940_s4, 3  ;;  %s580_s29 = scalar_lea.sflag (!%p2821_p8), [#allocation5], %s2940_s4 }
  0x4c   : > { %s2946_s16 = scalar_lea.vmem (!%p2821_p8), [#allocation4], %s2148_s25 }
  0x4d   : > { %2630 = dma.done.wait (%p2808_p4), %s580_s29, 128  }
  0x4e   : > { %2632 = vsyncadd (%p2808_p4), %s580_s29, 4294967168  ;;  %s589_s5 = sand.u32 1, %s2799_s19   ;;  %s2149_s9 = sshll.u32 %s2940_s4, 4 }
  0x4f   : > { %s590_s26 = scalar_lea.sflag [#allocation8], %s589_s5  ;;  %s2954_s13 = scalar_lea.vmem [#allocation7], %s2149_s9 }
  0x50   : > { %2634 = dma.done.wait (%p2808_p4), %s590_s26, 512  }
  0x51   : > { %2636 = vsyncadd (%p2808_p4), %s590_s26, 4294966784  ;;  %s2151_s11 = sshll.u32 %s2940_s4, 5  ;;  %s2961_s23 = scalar_lea.vmem [#allocation9], %s2149_s9 }
  0x52   : > { %s610_s22 = scalar_lea.sflag [#allocation11], %s589_s5  ;;  %s2963_s1 = scalar_lea.vmem [#allocation10], %s2151_s11 }
  0x53   : > { %2638 = dma.done.wait (%p2808_p4), %s610_s22, 512  }
  0x54   : > { %2640 = vsyncadd (%p2808_p4), %s610_s22, 4294966784 }
  0x55   : > { %2642 = dma.done.wait (%p73_p1), [#allocation11], 2048  }
  0x56   : > { %2644 = vsyncadd (%p73_p1), [#allocation11], 4294965248 }
  0x57   : > { %2646 = dma.done.wait (%p73_p1), [#allocation14], 2048  }
  0x58   : > { %2648 = vsyncadd (%p73_p1), [#allocation14], 4294965248 }
  0x59   : > { %2650 = dma.done.wait (%p73_p1), [#allocation17], 2048  }
  0x5a   : > { %2652 = vsyncadd (%p73_p1), [#allocation17], 4294965248  ;;  %v709_v0 = vld [vmem:[#allocation13 + $0x38] sm:$0xff]  ;;  %v708_v1 = vld [vmem:[#allocation13 + $0x30] sm:$0xff]  ;;  %vm714_vm0 = vcmask 523264   ;;  %s3462_s20 = sld [smem:[#allocation37_spill]] }
  0x5b   : > { %v1299_v2 = vld [vmem:[#allocation12 + $0x78] sm:$0xff]  ;;  %729 = vmatpush.msra.mxu0 %v709_v0  ;;  %v1298_v3 = vld [vmem:[#allocation12 + $0x70] sm:$0xff]  ;;  %v707_v4 = vld [vmem:[#allocation13 + $0x28] sm:$0xff]  ;;  %s2687_s6 = smov 64   ;;  %s2688_s7 = smov 32   ;;  %vm806_vm1 = vcmask 1047556  }
  0x5c   : > { %1304 = vmatpush.msra.mxu2 %v1299_v2  ;;  %v1297_v5 = vld [vmem:[#allocation12 + $0x68] sm:$0xff]  ;;  %v706_v6 = vld [vmem:[#allocation13 + $0x20] sm:$0xff]  ;;  %v705_v8 = vld [vmem:[#allocation13 + $0x18] sm:$0xff]  ;;  %s2689_s27 = smov 96   ;;  %s3463_s12 = sld [smem:[#allocation35_spill]]  ;;  %vm1026_vm2 = vcmask 261120  }
  0x5d   : > { %730 = vmatpush.msra.mxu0 %v708_v1  ;;  %v1296_v7 = vld [vmem:[#allocation12 + $0x60] sm:$0xff]  ;;  %v1295_v9 = vld [vmem:[#allocation12 + $0x58] sm:$0xff]  ;;  %v704_v10 = vld [vmem:[#allocation13 + $0x10] sm:$0xff]  ;;  %v2690_v46 = vmov 1983009808   ;;  %s3464_s29 = sld [smem:[#allocation38_spill]] }
  0x5e   : > { %1305 = vmatpush.msra.mxu2 %v1298_v3  ;;  %v703_v11 = vld [vmem:[#allocation13 + $0x8] sm:$0xff]  ;;  %v1294_v12 = vld [vmem:[#allocation12 + $0x50] sm:$0xff]  ;;  %v702_v14 = vld [vmem:[#allocation13] sm:$0xff]  ;;  %v811_v47 = vunpack.c.l.s4 %v2690_v46  ;;  %v2691_v60 = vmov 1934713408   ;;  %vm1574_vm3 = vcmask 130048  }
  0x5f   : > { %731 = vmatpush.msra.mxu0 %v707_v4  ;;  %v1293_v13 = vld [vmem:[#allocation12 + $0x48] sm:$0xff]  ;;  %v1292_v15 = vld [vmem:[#allocation12 + $0x40] sm:$0xff]  ;;  %v1291_v17 = vld [vmem:[#allocation12 + $0x38] sm:$0xff]  ;;  %v835_v61 = vunpack.c.l.s4 %v2691_v60  ;;  %vm1844_vm4 = vcmask 785408   ;;  %s3465_s26 = sld [smem:[#allocation39_spill]]  ;;  %s693_s24 = scalar_lea.vmem [#allocation18], %s2148_s25 }
  0x60   : > { %1306 = vmatpush.msra.mxu2 %v1297_v5  ;;  %v698_v16 = vld [vmem:[%s2954_s13] sm:$0xff]  ;;  %v1289_v19 = vld [vmem:[#allocation12 + $0x28] sm:$0xff]  ;;  %v1287_v22 = vld [vmem:[#allocation12 + $0x18] sm:$0xff]  ;;  %v3010_v54 = vunpack.c.0.s8 %v811_v47  ;;  %s3467_s22 = sld [smem:[#allocation40_spill]]  ;;  %s1926_s14 = scalar_lea.sflag [#allocation6], %s2940_s4 }
  0x61   : > { %732 = vmatpush.msra.mxu0 %v706_v6  ;;  %v1290_v18 = vld [vmem:[#allocation12 + $0x30] sm:$0xff]  ;;  %v1288_v20 = vld [vmem:[#allocation12 + $0x20] sm:$0xff]  ;;  %v699_v21 = vld [vmem:[%s2954_s13 + $0x8] sm:$0xff]  ;;  %v3020_v4 = vunpack.c.0.s8 %v835_v61  ;;  %s3466_s13 = sld [smem:[#allocation28_spill]] }
  0x62   : > { %1307 = vmatpush.msra.mxu2 %v1296_v7  ;;  %v1286_v23 = vld [vmem:[#allocation12 + $0x10] sm:$0xff]  ;;  %v1285_v24 = vld [vmem:[#allocation12 + $0x8] sm:$0xff]  ;;  %v1284_v25 = vld [vmem:[#allocation12] sm:$0xff]  ;;  %s3468_s21 = sld [smem:[#allocation42_spill]] }
  0x63   : > { %733 = vmatpush.msra.mxu0 %v705_v8  ;;  %v1283_v26 = vld [vmem:[%s2946_s16] sm:$0xff]  ;;  %v749_v29 = vld [vmem:[#allocation15 + $0x28] sm:$0xff]  ;;  %v748_v30 = vld [vmem:[#allocation15 + $0x20] sm:$0xff]  ;;  %s3470_s28 = sld [smem:[#allocation41_spill]] }
  0x64   : > { %1308 = vmatpush.msra.mxu2 %v1295_v9  ;;  %v751_v27 = vld [vmem:[#allocation15 + $0x38] sm:$0xff]  ;;  %v750_v28 = vld [vmem:[#allocation15 + $0x30] sm:$0xff]  ;;  %v745_v33 = vld [vmem:[#allocation15 + $0x8] sm:$0xff] }
  0x65   : > { %734 = vmatpush.msra.mxu0 %v704_v10  ;;  %770 = vmatpush.msra.mxu1 %v751_v27  ;;  %v747_v31 = vld [vmem:[#allocation15 + $0x18] sm:$0xff]  ;;  %v746_v32 = vld [vmem:[#allocation15 + $0x10] sm:$0xff]  ;;  %v744_v34 = vld [vmem:[#allocation15] sm:$0xff] }
  0x66   : > { %1309 = vmatpush.msra.mxu2 %v1294_v12  ;;  %v700_v35 = vld [vmem:[%s2961_s23] sm:$0xff]  ;;  %v701_v37 = vld [vmem:[%s2961_s23 + $0x8] sm:$0xff] }
  0x67   : > { %735 = vmatpush.msra.mxu0 %v703_v11  ;;  %771 = vmatpush.msra.mxu1 %v750_v28  ;;  %v2310_v36 = vld [vmem:[%s3462_s20] ss:$0 sm:$0xff] }
  0x68   : > { %1310 = vmatpush.msra.mxu2 %v1293_v13  ;;  %v2311_v42 = vld [vmem:[%s3463_s12] ss:$0 sm:$0xff]  ;;  %s1939_s12 = sshll.u32 %s693_s24, 4  ;;  %s1940_s12 = int_to_ptr.vmem [resolvable:$true] %s1939_s12 }
  0x69   : > { %736 = vmatpush.msra.mxu0 %v702_v14  ;;  %772 = vmatpush.msra.mxu1 %v749_v29 }
  0x6a   : > { %1311 = vmatpush.msra.mxu2 %v1292_v15  ;;  %2157 = vmatmul.msk.f32.vlgmr.msra.gmra.mxu0 %vm714_vm0, %v698_v16 }
  0x6b   : > { %773 = vmatpush.msra.mxu1 %v748_v30 }
  0x6c   : > { %1312 = vmatpush.msra.mxu2 %v1291_v17 }
  0x6d   : > { %774 = vmatpush.msra.mxu1 %v747_v31 }
  0x6e   : > { %1313 = vmatpush.msra.mxu2 %v1290_v18 }
  0x6f   : > { %775 = vmatpush.msra.mxu1 %v746_v32 }
  0x70   : > { %1314 = vmatpush.msra.mxu2 %v1289_v19 }
  0x71   : > { %776 = vmatpush.msra.mxu1 %v745_v33 }
  0x72   : > { %1315 = vmatpush.msra.mxu2 %v1288_v20  ;;  %2158 = vmatmul.msk.f32.gmra.mxu0 %vm714_vm0, %v699_v21 }
  0x73   : > { %777 = vmatpush.msra.mxu1 %v744_v34 }
  0x74   : > { %1316 = vmatpush.msra.mxu2 %v1287_v22  ;;  %2159 = vmatmul.msk.f32.vlgmr.msra.gmra.mxu1 %vm714_vm0, %v700_v35 }
  0x76   : > { %1317 = vmatpush.msra.mxu2 %v1286_v23 }
  0x78   : > { %1318 = vmatpush.msra.mxu2 %v1285_v24 }
  0x7a   : > { %1319 = vmatpush.msra.mxu2 %v1284_v25 }
  0x7b   : > { %1320 = vmatmul.f32.vlgmr.msra.gmra.mxu2 %v1283_v26 }
  0x7c   : > { %2160 = vmatmul.msk.f32.gmra.mxu1 %vm714_vm0, %v701_v37 }
  0xe7   : > { %v738_v38 = vpop.f32.mrf.mxu0 }
  0xe8   : > { %v739_v39 = vadd.f32 %v2310_v36, %v738_v38 }
  0xea   : > { %793 = vrot.lane.b32.xlu2 %v739_v39, %s2687_s6  ;;  %v808_v51 = vrot.slane %v739_v39, 4 }
  0xef   : > { %v741_v40 = vpop.f32.mrf.mxu0 }
  0xf0   : > { %v742_v41 = vadd.f32 %v2310_v36, %v741_v40 }
  0xf2   : > { %801 = vrot.lane.b32.xlu1 %v742_v41, %s2688_s7  ;;  %789 = vrot.lane.b32.xlu0 %v742_v41, %s2689_s27  ;;  %v864_v3 = vrot.slane %v742_v41, 4 }
  0xf3   : > { %799 = vrot.lane.b32.xlu2 %v739_v39, %s2688_s7 }
  0xfa   : > { %795 = vrot.lane.b32.xlu0 %v742_v41, %s2687_s6  ;;  %787 = vrot.lane.b32.xlu1 %v739_v39, %s2689_s27 }
  0xfe   : > { %v1321_v43 = vpop.f32.mrf.mxu2 }
  0xff   : > { %v3002_v44 = vadd.f32 %v2311_v42, %v1321_v43 }
 0x101   : > { %1331 = vrot.lane.b32.xlu2 %v3002_v44, %s2688_s7  ;;  %v1337_v7 = vrot.slane %v3002_v44, 4 }
 0x102   : > { %1325 = vrot.lane.b32.xlu0 %v3002_v44, %s2689_s27  ;;  %1328 = vrot.lane.b32.xlu1 %v3002_v44, %s2687_s6 }
 0x144   : > { %v794_v45 = vpop.permute.xlu2 %793 }
 0x145   : > { %v805_v48 = vrot.slane %v794_v45, 4  ;;  %v809_v56 = vsel %vm806_vm1, %v794_v45, %v808_v51 }
 0x146   : > { %v817_v62 = vperm.slane %v809_v56, %v3010_v54 }
 0x147   : > { %v807_v58 = vsel %vm806_vm1, %v805_v48, %v739_v39 }
 0x148   : > { %v813_v0 = vperm.slane %v807_v58, %v3010_v54  ;;  %v844_v12 = vrot.slane %v817_v62, 4 }
 0x14a   : > { %v832_v17 = vrot.slane %v813_v0, 4 }
 0x14d   : > { %v800_v55 = vpop.permute.xlu2 %799 }
 0x14e   : > { %v818_v1 = vrot.slane %v800_v55, 4 }
 0x15b   : > { %v3025_v13 = vpop.permute.xlu2 %1331 }
 0x15c   : > { %v1347_v25 = vrot.slane %v3025_v13, 4 }
 0x164   : > { %v802_v49 = vpop.permute.xlu1 %801  ;;  %v790_v50 = vpop.permute.xlu0 %789 }
 0x165   : > { %v874_v52 = vrot.slane %v802_v49, 4  ;;  %v876_v53 = vrot.slane %v790_v50, 4 }
 0x167   : > { %v877_v57 = vsel %vm806_vm1, %v802_v49, %v876_v53  ;;  %v875_v59 = vsel %vm806_vm1, %v874_v52, %v790_v50 }
 0x168   : > { %v885_v63 = vperm.slane %v877_v57, %v3010_v54  ;;  %v881_v2 = vperm.slane %v875_v59, %v3010_v54 }
 0x16a   : > { %v898_v14 = vrot.slane %v885_v63, 4  ;;  %v886_v18 = vrot.slane %v881_v2, 4 }
 0x16c   : > { %v796_v5 = vpop.permute.xlu0 %795  ;;  %v788_v6 = vpop.permute.xlu1 %787 }
 0x16d   : > { %v862_v8 = vrot.slane %v796_v5, 4  ;;  %v865_v9 = vsel %vm806_vm1, %v796_v5, %v864_v3  ;;  %v819_v10 = vsel %vm806_vm1, %v818_v1, %v788_v6  ;;  %v820_v11 = vrot.slane %v788_v6, 4 }
 0x16e   : > { %v873_v15 = vperm.slane %v865_v9, %v3010_v54  ;;  %v825_v16 = vperm.slane %v819_v10, %v3010_v54 }
 0x16f   : > { %v863_v19 = vsel %vm806_vm1, %v862_v8, %v742_v41  ;;  %v821_v20 = vsel %vm806_vm1, %v800_v55, %v820_v11 }
 0x170   : > { %v869_v21 = vperm.slane %v863_v19, %v3010_v54  ;;  %v899_v22 = vsel %vm806_vm1, %v898_v14, %v873_v15  ;;  %v900_v23 = vrot.slane %v873_v15, 4  ;;  %v829_v24 = vperm.slane %v821_v20, %v3010_v54 }
 0x171   : > { %v905_v26 = vperm.slane %v899_v22, %v3020_v4  ;;  %v830_v27 = vrot.slane %v825_v16, 4  ;;  %v833_v28 = vsel %vm806_vm1, %v825_v16, %v832_v17  ;;  %v779_v22 = vpop.f32.mrf.mxu1 }
 0x172   : > { %v887_v29 = vsel %vm806_vm1, %v886_v18, %v869_v21  ;;  %v888_v30 = vrot.slane %v869_v21, 4  ;;  %v901_v31 = vsel %vm806_vm1, %v885_v63, %v900_v23  ;;  %v841_v32 = vperm.slane %v833_v28, %v3020_v4 }
 0x173   : > { %v893_v33 = vperm.slane %v887_v29, %v3020_v4  ;;  %v909_v34 = vperm.slane %v901_v31, %v3020_v4  ;;  %v914_v35 = vrot.slane %v905_v26, 4  ;;  %v831_v36 = vsel %vm806_vm1, %v830_v27, %v813_v0 }
 0x174   : > { %v889_v37 = vsel %vm806_vm1, %v881_v2, %v888_v30  ;;  %v837_v38 = vperm.slane %v831_v36, %v3020_v4  ;;  %v842_v39 = vrot.slane %v829_v24, 4  ;;  %v845_v40 = vsel %vm806_vm1, %v829_v24, %v844_v12 }
 0x175   : > { %v897_v41 = vperm.slane %v889_v37, %v3020_v4  ;;  %v910_v42 = vrot.slane %v893_v33, 4  ;;  %v915_v43 = vsel %vm806_vm1, 0.0, %v914_v35  ;;  %v916_v45 = vrot.slane %v909_v34, 4 }
 0x176   : > { %v843_v46 = vsel %vm806_vm1, %v842_v39, %v817_v62  ;;  %v853_v47 = vperm.slane %v845_v40, %v3020_v4  ;;  %v854_v48 = vrot.slane %v837_v38, 4  ;;  %v856_v49 = vrot.slane %v841_v32, 4  ;;  %v1326_v40 = vpop.permute.xlu0 %1325 }
 0x177   : > { %v911_v50 = vsel %vm806_vm1, 0.0, %v910_v42  ;;  %v912_v51 = vrot.slane %v897_v41, 4  ;;  %v917_v52 = vsel %vm806_vm1, 0.0, %v916_v45  ;;  %v983_v53 = vsel %vm806_vm1, %v916_v45, %v905_v26 }
 0x178   : > { %v987_v55 = vperm.slane %v983_v53, %v3010_v54  ;;  %v988_v56 = vrot.slane %v917_v52, 4  ;;  %v849_v57 = vperm.slane %v843_v46, %v3020_v4  ;;  %v855_v58 = vsel %vm806_vm1, 0.0, %v854_v48 }
 0x179   : > { %v913_v59 = vsel %vm806_vm1, 0.0, %v912_v51  ;;  %v972_v60 = vsel %vm806_vm1, %v912_v51, %v893_v33  ;;  %v857_v61 = vsel %vm806_vm1, 0.0, %v856_v49  ;;  %v860_v62 = vrot.slane %v853_v47, 4 }
 0x17a   : > { %v976_v63 = vperm.slane %v972_v60, %v3010_v54  ;;  %v977_v0 = vrot.slane %v913_v59, 4  ;;  %v989_v1 = vsel %vm806_vm1, %v988_v56, %v915_v43  ;;  %v1008_v2 = vrot.slane %v987_v55, 4 }
 0x17b   : > { %v993_v3 = vperm.slane %v989_v1, %v3010_v54  ;;  %v858_v5 = vrot.slane %v849_v57, 4  ;;  %v861_v6 = vsel %vm806_vm1, 0.0, %v860_v62  ;;  %v918_v8 = vsel %vm806_vm1, %v856_v49, %v837_v38 }
 0x17c   : > { %v978_v9 = vsel %vm806_vm1, %v977_v0, %v911_v50  ;;  %v996_v10 = vrot.slane %v976_v63, 4  ;;  %v922_v11 = vperm.slane %v918_v8, %v3010_v54  ;;  %v923_v12 = vrot.slane %v857_v61, 4  ;;  %v1329_v50 = vpop.permute.xlu1 %1328 }
 0x17d   : > { %v982_v14 = vperm.slane %v978_v9, %v3010_v54  ;;  %v1006_v15 = vrot.slane %v993_v3, 4  ;;  %v1009_v16 = vsel %vm806_vm1, %v993_v3, %v1008_v2  ;;  %v859_v17 = vsel %vm806_vm1, 0.0, %v858_v5  ;;  %v782_v5 = vpop.f32.mrf.mxu1 }
 0x17e   : > { %v1017_v18 = vperm.slane %v1009_v16, %v3020_v4  ;;  %v924_v19 = vsel %vm806_vm1, %v923_v12, %v855_v58  ;;  %v929_v20 = vsel %vm806_vm1, %v860_v62, %v849_v57  ;;  %v934_v21 = vrot.slane %v861_v6, 4 }
 0x17f   : > { %v994_v23 = vrot.slane %v982_v14, 4  ;;  %v997_v24 = vsel %vm806_vm1, %v982_v14, %v996_v10  ;;  %v1007_v26 = vsel %vm806_vm1, %v1006_v15, %v987_v55  ;;  %v928_v27 = vperm.slane %v924_v19, %v3010_v54 }
 0x180   : > { %v1005_v28 = vperm.slane %v997_v24, %v3020_v4  ;;  %v1013_v29 = vperm.slane %v1007_v26, %v3020_v4  ;;  %v1022_v30 = vrot.slane %v1017_v18, 4  ;;  %v933_v31 = vperm.slane %v929_v20, %v3010_v54 }
 0x181   : > { %v995_v32 = vsel %vm806_vm1, %v994_v23, %v976_v63  ;;  %v935_v33 = vsel %vm806_vm1, %v934_v21, %v859_v17  ;;  %v940_v34 = vrot.slane %v928_v27, 4  ;;  %v942_v35 = vrot.slane %v922_v11, 4 }
 0x182   : > { %v1001_v36 = vperm.slane %v995_v32, %v3020_v4  ;;  %v1018_v37 = vrot.slane %v1013_v29, 4  ;;  %v1023_v38 = vsel %vm806_vm1, %v1022_v30, %v1005_v28  ;;  %v1024_v39 = vrot.slane %v1005_v28, 4 }
 0x183   : > { %1032 = vst.msk [vmem:[#allocation2 + $0x28] sm:$0xff] %vm1026_vm2, %v1023_v38  ;;  %v939_v41 = vperm.slane %v935_v33, %v3010_v54  ;;  %v941_v42 = vsel %vm806_vm1, %v940_v34, %v922_v11  ;;  %v943_v43 = vsel %vm806_vm1, %v928_v27, %v942_v35  ;;  %v954_v45 = vrot.slane %v933_v31, 4 }
 0x184   : > { %v1019_v46 = vsel %vm806_vm1, %v1018_v37, %v1001_v36  ;;  %v1020_v47 = vrot.slane %v1001_v36, 4  ;;  %v1025_v48 = vsel %vm806_vm1, %v1017_v18, %v1024_v39  ;;  %v947_v49 = vperm.slane %v941_v42, %v3020_v4 }
 0x185   : > { %1028 = vst.msk [vmem:[#allocation2 + $0x8] sm:$0xff] %vm1026_vm2, %v1019_v46  ;;  %v951_v51 = vperm.slane %v943_v43, %v3020_v4  ;;  %v952_v52 = vrot.slane %v939_v41, 4  ;;  %v955_v53 = vsel %vm806_vm1, %v939_v41, %v954_v45  ;;  %v1348_v55 = vsel %vm806_vm1, %v1347_v25, %v1326_v40  ;;  %v2312_v25 = vld [vmem:[%s3464_s29] ss:$0 sm:$0xff] }
 0x186   : > { %v1021_v56 = vsel %vm806_vm1, %v1013_v29, %v1020_v47  ;;  %1034 = vst.msk [vmem:[#allocation2 + $0x38] sm:$0xff] %vm1026_vm2, %v1025_v48  ;;  %v963_v57 = vperm.slane %v955_v53, %v3020_v4  ;;  %v966_v58 = vrot.slane %v947_v49, 4  ;;  %v1349_v59 = vrot.slane %v1326_v40, 4 }
 0x187   : > { %1030 = vst.msk [vmem:[#allocation2 + $0x18] sm:$0xff] %vm1026_vm2, %v1021_v56  ;;  %v953_v60 = vsel %vm806_vm1, %v952_v52, %v933_v31  ;;  %v970_v61 = vrot.slane %v951_v51, 4  ;;  %v1354_v62 = vperm.slane %v1348_v55, %v3010_v54  ;;  %v1334_v63 = vrot.slane %v1329_v50, 4 }
 0x188   : > { %v959_v0 = vperm.slane %v953_v60, %v3020_v4  ;;  %v968_v1 = vrot.slane %v963_v57, 4  ;;  %v1350_v2 = vsel %vm806_vm1, %v3025_v13, %v1349_v59  ;;  %v1338_v3 = vsel %vm806_vm1, %v1329_v50, %v1337_v7 }
 0x189   : > { %v971_v6 = vsel %vm806_vm1, %v963_v57, %v970_v61  ;;  %v1358_v8 = vperm.slane %v1350_v2, %v3010_v54  ;;  %v1359_v9 = vrot.slane %v1354_v62, 4  ;;  %v1336_v10 = vsel %vm806_vm1, %v1334_v63, %v3002_v44 }
 0x18a   : > { %v964_v11 = vrot.slane %v959_v0, 4  ;;  %v967_v12 = vsel %vm806_vm1, %v959_v0, %v966_v58  ;;  %v969_v14 = vsel %vm806_vm1, %v968_v1, %v951_v51  ;;  %1033 = vst.msk [vmem:[#allocation2 + $0x30] sm:$0xff] %vm1026_vm2, %v971_v6  ;;  %v1342_v13 = vperm.slane %v1336_v10, %v3010_v54 }
 0x18b   : > { %1029 = vst.msk [vmem:[#allocation2 + $0x10] sm:$0xff] %vm1026_vm2, %v967_v12  ;;  %v1371_v7 = vrot.slane %v1358_v8, 4  ;;  %v1346_v15 = vperm.slane %v1338_v3, %v3010_v54  ;;  %v3120_v16 = vadd.f32 %v2312_v25, %v779_v22  ;;  %v3122_v17 = vadd.f32 %v2312_v25, %v782_v5 }
 0x18c   : > { %v965_v44 = vsel %vm806_vm1, %v964_v11, %v947_v49  ;;  %1031 = vst.msk [vmem:[#allocation2 + $0x20] sm:$0xff] %vm1026_vm2, %v969_v14  ;;  %v1360_v18 = vsel %vm806_vm1, %v1359_v9, %v1342_v13  ;;  %v1361_v19 = vrot.slane %v1342_v13, 4  ;;  %v1450_v20 = vld [vmem:[#allocation2 + $0x8] sm:$0xff] }
 0x18d   : > { %1027 = vst.msk [vmem:[#allocation2] sm:$0xff] %vm1026_vm2, %v965_v44  ;;  %v1366_v21 = vperm.slane %v1360_v18, %v3020_v4  ;;  %v1372_v23 = vsel %vm806_vm1, %v1371_v7, %v1346_v15  ;;  %v1373_v24 = vrot.slane %v1346_v15, 4  ;;  %1045 = vrot.lane.b32.xlu1 %v3122_v17, %s2687_s6  ;;  %2161 = vmatpush.xpose.msk.msra.mxu3 %vm1026_vm2, %v1450_v20  ;;  %v1456_v22 = vld [vmem:[#allocation2 + $0x38] sm:$0xff]  ;;  %v1448_v13 = vld [vmem:[%s2963_s1 + $0x18] sm:$0xff]  ;;  %v1445_v18 = vld [vmem:[%s2963_s1] sm:$0xff] }
 0x18e   : > { %v1362_v26 = vsel %vm806_vm1, %v1354_v62, %v1361_v19  ;;  %v1378_v27 = vperm.slane %v1372_v23, %v3020_v4  ;;  %2170 = vmatpush.xpose.msk.msrb.mxu0 %vm1026_vm2, %v1456_v22  ;;  %1039 = vrot.lane.b32.xlu0 %v3122_v17, %s2689_s27  ;;  %v1452_v47 = vld [vmem:[#allocation2 + $0x18] sm:$0xff] }
 0x18f   : > { %v1370_v28 = vperm.slane %v1362_v26, %v3020_v4  ;;  %v1374_v29 = vsel %vm806_vm1, %v1358_v8, %v1373_v24  ;;  %v1383_v32 = vrot.slane %v1366_v21, 4  ;;  %v1454_v8 = vld [vmem:[#allocation2 + $0x28] sm:$0xff]  ;;  %v1446_v23 = vld [vmem:[%s2963_s1 + $0x8] sm:$0xff] }
 0x190   : > { %v1382_v30 = vperm.slane %v1374_v29, %v3020_v4  ;;  %v1387_v31 = vrot.slane %v1378_v27, 4 }
 0x191   : > { %v1385_v33 = vrot.slane %v1370_v28, 4  ;;  %v1455_v34 = vld [vmem:[#allocation2 + $0x30] sm:$0xff]  ;;  %v1384_v45 = vsel %vm806_vm1, 0.0, %v1383_v32 }
 0x192   : > { %v1389_v35 = vrot.slane %v1382_v30, 4  ;;  %2171 = vmatpush.xpose.msk.msrb.mxu0 %vm1026_vm2, %v1455_v34  ;;  %v1388_v37 = vsel %vm806_vm1, 0.0, %v1387_v31  ;;  %v1451_v58 = vld [vmem:[#allocation2 + $0x10] sm:$0xff] }
 0x193   : > { %v1386_v36 = vsel %vm806_vm1, 0.0, %v1385_v33  ;;  %v1391_v38 = vsel %vm806_vm1, %v1385_v33, %v1366_v21  ;;  %v1453_v10 = vld [vmem:[#allocation2 + $0x20] sm:$0xff] }
 0x194   : > { %v1390_v39 = vsel %vm806_vm1, 0.0, %v1389_v35  ;;  %v1396_v40 = vrot.slane %v1386_v36, 4  ;;  %v1402_v41 = vsel %vm806_vm1, %v1389_v35, %v1378_v27  ;;  %v1449_v42 = vld [vmem:[#allocation2] sm:$0xff]  ;;  %v1395_v43 = vperm.slane %v1391_v38, %v3010_v54 }
 0x195   : > { %v1407_v46 = vrot.slane %v1390_v39, 4  ;;  %2162 = vmatpush.xpose.msk.msra.mxu3 %vm1026_vm2, %v1449_v42  ;;  %v1406_v48 = vperm.slane %v1402_v41, %v3010_v54  ;;  %v1447_v27 = vld [vmem:[%s2963_s1 + $0x10] sm:$0xff] }
 0x196   : > { %v1397_v49 = vsel %vm806_vm1, %v1396_v40, %v1384_v45  ;;  %v1415_v50 = vrot.slane %v1395_v43, 4 }
 0x197   : > { %v1408_v51 = vsel %vm806_vm1, %v1407_v46, %v1388_v37  ;;  %v1401_v52 = vperm.slane %v1397_v49, %v3010_v54  ;;  %v1427_v53 = vrot.slane %v1406_v48, 4 }
 0x198   : > { %v1412_v55 = vperm.slane %v1408_v51, %v3010_v54  ;;  %v1057_v51 = vrot.slane %v3120_v16, 4 }
 0x199   : > { %2164 = vmatpush.xpose.msk.msrb.mxu3 %vm1026_vm2, %v1452_v47  ;;  %v1413_v56 = vrot.slane %v1401_v52, 4  ;;  %v1416_v57 = vsel %vm806_vm1, %v1401_v52, %v1415_v50 }
 0x19a   : > { %v1425_v59 = vrot.slane %v1412_v55, 4  ;;  %v1424_v60 = vperm.slane %v1416_v57, %v3020_v4  ;;  %v1428_v61 = vsel %vm806_vm1, %v1412_v55, %v1427_v53 }
 0x19b   : > { %v1414_v62 = vsel %vm806_vm1, %v1413_v56, %v1395_v43  ;;  %v1436_v25 = vperm.slane %v1428_v61, %v3020_v4  ;;  %v1113_v56 = vrot.slane %v3122_v17, 4 }
 0x19c   : > { %v1426_v63 = vsel %vm806_vm1, %v1425_v59, %v1406_v48  ;;  %v1443_v0 = vrot.slane %v1424_v60, 4  ;;  %v1420_v1 = vperm.slane %v1414_v62, %v3020_v4 }
 0x19d   : > { %2165 = vmatpush.xpose.msk.msrb.mxu3 %vm1026_vm2, %v1451_v58  ;;  %v1432_v2 = vperm.slane %v1426_v63, %v3020_v4  ;;  %v1441_v12 = vrot.slane %v1436_v25, 4 }
 0x19e   : > { %v1444_v3 = vsel %vm806_vm1, %v1436_v25, %v1443_v0  ;;  %v1439_v9 = vrot.slane %v1420_v1, 4 }
 0x19f   : > { %v1437_v5 = vrot.slane %v1432_v2, 4  ;;  %2172 = vmatmul.msk.f32.vlgmr.msrb.gmra.mxu0 %vm1026_vm2, %v1444_v3  ;;  %v1442_v14 = vsel %vm806_vm1, %v1441_v12, %v1424_v60 }
 0x1a0   : > { %v1440_v11 = vsel %vm806_vm1, %v1432_v2, %v1439_v9 }
 0x1a1   : > { %v1438_v6 = vsel %vm806_vm1, %v1437_v5, %v1420_v1 }
 0x1a2   : > { %2163 = vmatmul.msk.f32.vlgmr.msra.gmra.mxu3 %vm1026_vm2, %v1438_v6 }
 0x1a3   : > { %2167 = vmatpush.xpose.msk.msra.mxu3 %vm1026_vm2, %v1454_v8 }
 0x1a7   : > { %2168 = vmatpush.xpose.msk.msra.mxu3 %vm1026_vm2, %v1453_v10 }
 0x1aa   : > { %2166 = vmatmul.msk.f32.vlgmr.msrb.gmra.mxu3 %vm1026_vm2, %v1440_v11 }
 0x1b2   : > { %2169 = vmatmul.msk.f32.vlgmr.msra.gmra.mxu3 %vm1026_vm2, %v1442_v14 }
 0x1ff   : > { %v1046_v32 = vpop.permute.xlu1 %1045 }
 0x200   : > { %v3191_v31 = vpop.permute.xlu0 %1039  ;;  %v1111_v58 = vrot.slane %v1046_v32, 4  ;;  %v1114_v61 = vsel %vm806_vm1, %v1046_v32, %v1113_v56 }
 0x201   : > { %v1122_v3 = vperm.slane %v1114_v61, %v3010_v54 }
 0x202   : > { %v1112_v0 = vsel %vm806_vm1, %v1111_v58, %v3122_v17 }
 0x203   : > { %v1118_v10 = vperm.slane %v1112_v0, %v3010_v54 }
 0x21c   : > { %v1571_v7 = vpop.f32.mrf.mxu0 }
 0x21d   : > { %v1572_v15 = vadd.f32 %v1571_v7, %v1448_v13  ;;  %v1149_v7 = vrot.slane %v1122_v3, 4 }
 0x21f   : > { %v1584_v44 = vsel %vm1574_vm3, %v1572_v15, -inf }
 0x220   : > { %1585 = vmax.xlane.f32.xlu2 %v1584_v44 }
 0x225   : > { %v1484_v19 = vpop.f32.mrf.mxu3 }
 0x226   : > { %v1485_v20 = vadd.f32 %v1484_v19, %v1445_v18 }
 0x228   : > { %v1575_v21 = vsel %vm1574_vm3, %v1485_v20, -inf }
 0x229   : > { %1576 = vmax.xlane.f32.xlu0 %v1575_v21 }
 0x22d   : > { %v1513_v24 = vpop.f32.mrf.mxu3 }
 0x22e   : > { %v1514_v22 = vadd.f32 %v1513_v24, %v1446_v23 }
 0x230   : > { %v1578_v26 = vsel %vm1574_vm3, %v1514_v22, -inf }
 0x231   : > { %1579 = vmax.xlane.f32.xlu1 %v1578_v26 }
 0x235   : > { %v1542_v28 = vpop.f32.mrf.mxu3 }
 0x236   : > { %v1543_v29 = vadd.f32 %v1542_v28, %v1447_v27  ;;  %v1137_v28 = vrot.slane %v1118_v10, 4 }
 0x238   : > { %v1581_v30 = vsel %vm1574_vm3, %v1543_v29, -inf }
 0x239   : > { %1582 = vmax.xlane.f32.xlu2 %v1581_v30 }
 0x23d   : > { %1043 = vrot.lane.b32.xlu0 %v3120_v16, %s2687_s6 }
 0x245   : > { %1049 = vrot.lane.b32.xlu0 %v3120_v16, %s2688_s7 }
 0x24a   : > { %1051 = vrot.lane.b32.xlu1 %v3122_v17, %s2688_s7 }
 0x251   : > { %1037 = vrot.lane.b32.xlu2 %v3120_v16, %s2689_s27 }
 0x293   : > { %v1586_v33 = vpop.xlane.xlu2 %1585 }
 0x294   : > { %v1590_v36 = vsub.f32 %v1572_v15, %v1586_v33  ;;  %v1125_v15 = vrot.slane %v3191_v31, 4 }
 0x296   : > { %v1597_v38 = vmul.f32 1.442695, %v1590_v36 }
 0x29c   : > { %v1577_v34 = vpop.xlane.xlu0 %1576 }
 0x29d   : > { %v1587_v35 = vsub.f32 %v1485_v20, %v1577_v34 }
 0x29f   : > { %v1591_v37 = vmul.f32 1.442695, %v1587_v35 }
 0x2a1   : > { %2316 = vpow2.f32 %v1591_v37 }
 0x2a2   : > { %2318 = vpow2.f32 %v1597_v38 }
 0x2a4   : > { %v1580_v39 = vpop.xlane.xlu1 %1579 }
 0x2a5   : > { %v1588_v40 = vsub.f32 %v1514_v22, %v1580_v39 }
 0x2a7   : > { %v3193_v41 = vpop.eup %2316  ;;  %v1593_v42 = vmul.f32 1.442695, %v1588_v40 }
 0x2a8   : > { %v1599_v43 = vsel %vm1574_vm3, %v3193_v41, 0.0  ;;  %v3197_v46 = vpop.eup %2318 }
 0x2a9   : > { %2320 = vpow2.f32 %v1593_v42  ;;  %1600 = vadd.xlane.f32.xlu2 %v1599_v43  ;;  %v1608_v55 = vsel %vm1574_vm3, %v3197_v46, 0.0 }
 0x2ac   : > { %v1583_v45 = vpop.xlane.xlu2 %1582 }
 0x2ad   : > { %v1589_v47 = vsub.f32 %v1543_v29, %v1583_v45 }
 0x2af   : > { %v3199_v48 = vpop.eup %2320  ;;  %v1595_v49 = vmul.f32 1.442695, %v1589_v47  ;;  %v1044_v50 = vpop.permute.xlu0 %1043 }
 0x2b0   : > { %v1055_v52 = vrot.slane %v1044_v50, 4  ;;  %v1602_v53 = vsel %vm1574_vm3, %v3199_v48, 0.0  ;;  %v1058_v57 = vsel %vm806_vm1, %v1044_v50, %v1057_v51 }
 0x2b1   : > { %2322 = vpow2.f32 %v1595_v49  ;;  %1603 = vadd.xlane.f32.xlu1 %v1602_v53  ;;  %1609 = vadd.xlane.f32.xlu2 %v1608_v55  ;;  %v1066_v62 = vperm.slane %v1058_v57, %v3010_v54 }
 0x2b2   : > { %v1056_v59 = vsel %vm806_vm1, %v1055_v52, %v3120_v16 }
 0x2b3   : > { %v1062_v1 = vperm.slane %v1056_v59, %v3010_v54  ;;  %v1093_v8 = vrot.slane %v1066_v62, 4 }
 0x2b4   : > { %v1038_v60 = vpop.permute.xlu2 %1037 }
 0x2b5   : > { %v1069_v63 = vrot.slane %v1038_v60, 4  ;;  %v1081_v17 = vrot.slane %v1062_v1, 4 }
 0x2b7   : > { %v3212_v25 = vpop.eup %2322  ;;  %v1050_v2 = vpop.permute.xlu0 %1049 }
 0x2b8   : > { %v1067_v5 = vrot.slane %v1050_v2, 4  ;;  %v1070_v6 = vsel %vm806_vm1, %v1050_v2, %v1069_v63  ;;  %v1605_v16 = vsel %vm1574_vm3, %v3212_v25, 0.0 }
 0x2b9   : > { %v1078_v9 = vperm.slane %v1070_v6, %v3010_v54  ;;  %1606 = vadd.xlane.f32.xlu0 %v1605_v16 }
 0x2ba   : > { %v1068_v11 = vsel %vm806_vm1, %v1067_v5, %v1038_v60 }
 0x2bb   : > { %v1074_v12 = vperm.slane %v1068_v11, %v3010_v54  ;;  %v1091_v14 = vrot.slane %v1078_v9, 4  ;;  %v1094_v13 = vsel %vm806_vm1, %v1078_v9, %v1093_v8 }
 0x2bc   : > { %v1102_v44 = vperm.slane %v1094_v13, %v3020_v4  ;;  %v1052_v18 = vpop.permute.xlu1 %1051 }
 0x2bd   : > { %v1079_v19 = vrot.slane %v1074_v12, 4  ;;  %v1082_v20 = vsel %vm806_vm1, %v1074_v12, %v1081_v17  ;;  %v1092_v21 = vsel %vm806_vm1, %v1091_v14, %v1066_v62  ;;  %v1123_v23 = vrot.slane %v1052_v18, 4 }
 0x2be   : > { %v1090_v24 = vperm.slane %v1082_v20, %v3020_v4  ;;  %v1098_v22 = vperm.slane %v1092_v21, %v3020_v4  ;;  %v1109_v26 = vrot.slane %v1102_v44, 4  ;;  %v1126_v27 = vsel %vm806_vm1, %v1052_v18, %v1125_v15 }
 0x2bf   : > { %v1080_v29 = vsel %vm806_vm1, %v1079_v19, %v1062_v1  ;;  %v1124_v30 = vsel %vm806_vm1, %v1123_v23, %v3191_v31  ;;  %v1134_v32 = vperm.slane %v1126_v27, %v3010_v54 }
 0x2c0   : > { %v1086_v33 = vperm.slane %v1080_v29, %v3020_v4  ;;  %v1105_v34 = vrot.slane %v1090_v24, 4  ;;  %v1107_v35 = vrot.slane %v1098_v22, 4  ;;  %v1110_v36 = vsel %vm806_vm1, 0.0, %v1109_v26 }
 0x2c1   : > { %v1178_v37 = vsel %vm806_vm1, %v1109_v26, %v1098_v22  ;;  %v1183_v38 = vrot.slane %v1110_v36, 4  ;;  %v1130_v39 = vperm.slane %v1124_v30, %v3010_v54  ;;  %v1147_v40 = vrot.slane %v1134_v32, 4 }
 0x2c2   : > { %v1103_v42 = vrot.slane %v1086_v33, 4  ;;  %v1106_v43 = vsel %vm806_vm1, 0.0, %v1105_v34  ;;  %v1108_v45 = vsel %vm806_vm1, 0.0, %v1107_v35  ;;  %v1167_v31 = vsel %vm806_vm1, %v1105_v34, %v1086_v33 }
 0x2c3   : > { %v1171_v47 = vperm.slane %v1167_v31, %v3010_v54  ;;  %v1172_v49 = vrot.slane %v1106_v43, 4  ;;  %v1182_v50 = vperm.slane %v1178_v37, %v3010_v54  ;;  %v1184_v51 = vsel %vm806_vm1, %v1183_v38, %v1108_v45 }
 0x2c4   : > { %v1104_v52 = vsel %vm806_vm1, 0.0, %v1103_v42  ;;  %v1188_v53 = vperm.slane %v1184_v51, %v3010_v54  ;;  %v1135_v55 = vrot.slane %v1130_v39, 4  ;;  %v1138_v56 = vsel %vm806_vm1, %v1130_v39, %v1137_v28 }
 0x2c5   : > { %v1173_v57 = vsel %vm806_vm1, %v1172_v49, %v1104_v52  ;;  %v1191_v58 = vrot.slane %v1171_v47, 4  ;;  %v1203_v59 = vrot.slane %v1182_v50, 4  ;;  %v1146_v60 = vperm.slane %v1138_v56, %v3020_v4 }
 0x2c6   : > { %v1177_v61 = vperm.slane %v1173_v57, %v3010_v54  ;;  %v1201_v62 = vrot.slane %v1188_v53, 4  ;;  %v1136_v63 = vsel %vm806_vm1, %v1135_v55, %v1118_v10  ;;  %v1148_v0 = vsel %vm806_vm1, %v1147_v40, %v1122_v3 }
 0x2c7   : > { %v1204_v1 = vsel %vm806_vm1, %v1188_v53, %v1203_v59  ;;  %v1142_v2 = vperm.slane %v1136_v63, %v3020_v4  ;;  %v1150_v5 = vsel %vm806_vm1, %v1134_v32, %v1149_v7  ;;  %v1154_v6 = vperm.slane %v1148_v0, %v3020_v4 }
 0x2c8   : > { %v1189_v16 = vrot.slane %v1177_v61, 4  ;;  %v1192_v8 = vsel %vm806_vm1, %v1177_v61, %v1191_v58  ;;  %v1202_v9 = vsel %vm806_vm1, %v1201_v62, %v1182_v50  ;;  %v1212_v11 = vperm.slane %v1204_v1, %v3020_v4 }
 0x2c9   : > { %v1200_v17 = vperm.slane %v1192_v8, %v3020_v4  ;;  %v1208_v10 = vperm.slane %v1202_v9, %v3020_v4  ;;  %v1158_v3 = vperm.slane %v1150_v5, %v3020_v4  ;;  %v1159_v12 = vrot.slane %v1142_v2, 4 }
 0x2ca   : > { %v1190_v14 = vsel %vm806_vm1, %v1189_v16, %v1171_v47  ;;  %v1217_v13 = vrot.slane %v1212_v11, 4  ;;  %v1161_v7 = vrot.slane %v1146_v60, 4  ;;  %v1163_v15 = vrot.slane %v1154_v6, 4 }
 0x2cb   : > { %v1196_v44 = vperm.slane %v1190_v14, %v3020_v4  ;;  %v1213_v18 = vrot.slane %v1208_v10, 4  ;;  %v1219_v19 = vrot.slane %v1200_v17, 4  ;;  %v1160_v20 = vsel %vm806_vm1, 0.0, %v1159_v12 }
 0x2cc   : > { %v1218_v21 = vsel %vm806_vm1, %v1217_v13, %v1200_v17  ;;  %v1162_v23 = vsel %vm806_vm1, 0.0, %v1161_v7  ;;  %v1164_v24 = vsel %vm806_vm1, 0.0, %v1163_v15  ;;  %v1165_v22 = vrot.slane %v1158_v3, 4 }
 0x2cd   : > { %v1214_v26 = vsel %vm806_vm1, %v1213_v18, %v1196_v44  ;;  %v1215_v27 = vrot.slane %v1196_v44, 4  ;;  %v1220_v28 = vsel %vm806_vm1, %v1212_v11, %v1219_v19  ;;  %1279 = vst.msk [vmem:[#allocation3 + $0x20] sm:$0xff] %vm1026_vm2, %v1218_v21  ;;  %v1221_v29 = vsel %vm806_vm1, %v1161_v7, %v1142_v2 }
 0x2ce   : > { %1275 = vst.msk [vmem:[#allocation3] sm:$0xff] %vm1026_vm2, %v1214_v26  ;;  %v1166_v30 = vsel %vm806_vm1, 0.0, %v1165_v22  ;;  %v1225_v32 = vperm.slane %v1221_v29, %v3010_v54  ;;  %v1226_v33 = vrot.slane %v1162_v23, 4  ;;  %v1232_v34 = vsel %vm806_vm1, %v1165_v22, %v1154_v6 }
 0x2cf   : > { %v1216_v35 = vsel %vm806_vm1, %v1208_v10, %v1215_v27  ;;  %1281 = vst.msk [vmem:[#allocation3 + $0x30] sm:$0xff] %vm1026_vm2, %v1220_v28  ;;  %v1236_v36 = vperm.slane %v1232_v34, %v3010_v54  ;;  %v1237_v37 = vrot.slane %v1166_v30, 4 }
 0x2d0   : > { %1277 = vst.msk [vmem:[#allocation3 + $0x10] sm:$0xff] %vm1026_vm2, %v1216_v35  ;;  %v1227_v38 = vsel %vm806_vm1, %v1226_v33, %v1160_v20  ;;  %v1245_v39 = vrot.slane %v1225_v32, 4 }
 0x2d1   : > { %v1231_v40 = vperm.slane %v1227_v38, %v3010_v54  ;;  %v1238_v42 = vsel %vm806_vm1, %v1237_v37, %v1164_v24  ;;  %v1257_v43 = vrot.slane %v1236_v36, 4  ;;  %v1861_v24 = vld [vmem:[#allocation16 + $0x78] sm:$0xff] }
 0x2d2   : > { %v1242_v45 = vperm.slane %v1238_v42, %v3010_v54  ;;  %1866 = vmatpush.msrb.mxu2 %v1861_v24 }
 0x2d3   : > { %v1243_v31 = vrot.slane %v1231_v40, 4  ;;  %v1246_v47 = vsel %vm806_vm1, %v1231_v40, %v1245_v39 }
 0x2d4   : > { %v1254_v49 = vperm.slane %v1246_v47, %v3020_v4  ;;  %v1255_v50 = vrot.slane %v1242_v45, 4  ;;  %v1258_v51 = vsel %vm806_vm1, %v1242_v45, %v1257_v43  ;;  %v1623_v16 = vld [vmem:[#allocation3 + $0x20] sm:$0xff] }
 0x2d5   : > { %v1244_v52 = vsel %vm806_vm1, %v1243_v31, %v1225_v32  ;;  %v1266_v53 = vperm.slane %v1258_v51, %v3020_v4  ;;  %v1619_v9 = vld [vmem:[#allocation3] sm:$0xff] }
 0x2d6   : > { %v1250_v55 = vperm.slane %v1244_v52, %v3020_v4  ;;  %v1256_v56 = vsel %vm806_vm1, %v1255_v50, %v1236_v36  ;;  %v1273_v57 = vrot.slane %v1254_v49, 4  ;;  %v1625_v17 = vld [vmem:[#allocation3 + $0x30] sm:$0xff] }
 0x2d7   : > { %v1262_v58 = vperm.slane %v1256_v56, %v3020_v4  ;;  %v1271_v59 = vrot.slane %v1266_v53, 4  ;;  %v1621_v8 = vld [vmem:[#allocation3 + $0x10] sm:$0xff] }
 0x2d8   : > { %v1269_v60 = vrot.slane %v1250_v55, 4  ;;  %v1274_v61 = vsel %vm806_vm1, %v1266_v53, %v1273_v57 }
 0x2d9   : > { %v1267_v62 = vrot.slane %v1262_v58, 4  ;;  %v1272_v63 = vsel %vm806_vm1, %v1271_v59, %v1254_v49  ;;  %1282 = vst.msk [vmem:[#allocation3 + $0x38] sm:$0xff] %vm1026_vm2, %v1274_v61 }
 0x2da   : > { %v1270_v0 = vsel %vm806_vm1, %v1262_v58, %v1269_v60  ;;  %1280 = vst.msk [vmem:[#allocation3 + $0x28] sm:$0xff] %vm1026_vm2, %v1272_v63 }
 0x2db   : > { %v1268_v1 = vsel %vm806_vm1, %v1267_v62, %v1250_v55  ;;  %1278 = vst.msk [vmem:[#allocation3 + $0x18] sm:$0xff] %vm1026_vm2, %v1270_v0 }
 0x2dc   : > { %1276 = vst.msk [vmem:[#allocation3 + $0x8] sm:$0xff] %vm1026_vm2, %v1268_v1 }
 0x2e0   : > { %v1626_v11 = vld [vmem:[#allocation3 + $0x38] sm:$0xff] }
 0x2e1   : > { %v1624_v2 = vld [vmem:[#allocation3 + $0x28] sm:$0xff] }
 0x2e2   : > { %1690 = vmatpush.msra.mxu0 %v1624_v2  ;;  %v1622_v5 = vld [vmem:[#allocation3 + $0x18] sm:$0xff] }
 0x2e3   : > { %v1620_v6 = vld [vmem:[#allocation3 + $0x8] sm:$0xff]  ;;  %1667 = vmatpush.msrb.mxu3 %v1622_v5 }
 0x2e4   : > { %1644 = vmatpush.msrb.mxu1 %v1620_v6  ;;  %1691 = vmatpush.msra.mxu0 %v1623_v16 }
 0x2e5   : > { %1668 = vmatpush.msrb.mxu3 %v1621_v8 }
 0x2e6   : > { %1645 = vmatpush.msrb.mxu1 %v1619_v9 }
 0x2e8   : > { %1713 = vmatpush.msra.mxu1 %v1626_v11 }
 0x2ea   : > { %1714 = vmatpush.msra.mxu1 %v1625_v17 }
 0x31c   : > { %v1601_v10 = vpop.xlane.xlu2 %1600 }
 0x31d   : > { %2324 = vrcp.f32 %v1601_v10 }
 0x323   : > { %v2325_v3 = vpop.eup %2324 }
 0x324   : > { %v1604_v12 = vpop.xlane.xlu1 %1603  ;;  %v1610_v14 = vpop.xlane.xlu2 %1609  ;;  %v1615_v13 = vmul.f32 %v2325_v3, %v3193_v41 }
 0x325   : > { %2326 = vrcp.f32 %v1604_v12 }
 0x326   : > { %2328 = vrcp.f32 %v1610_v14  ;;  %2173 = vmatmul.msk.f32.vlgmr.msrb.gmra.mxu1 %vm1574_vm3, %v1615_v13 }
 0x32b   : > { %v2327_v7 = vpop.eup %2326 }
 0x32c   : > { %v2329_v15 = vpop.eup %2328  ;;  %v1616_v44 = vmul.f32 %v2327_v7, %v3199_v48  ;;  %v1607_v18 = vpop.xlane.xlu0 %1606 }
 0x32d   : > { %v1618_v19 = vmul.f32 %v2329_v15, %v3197_v46  ;;  %2330 = vrcp.f32 %v1607_v18 }
 0x32e   : > { %2174 = vmatmul.msk.f32.vlgmr.msrb.gmra.mxu3 %vm1574_vm3, %v1616_v44 }
 0x32f   : > { %2176 = vmatmul.msk.f32.vlgmr.msra.gmra.mxu1 %vm1574_vm3, %v1618_v19 }
 0x333   : > { %v2331_v20 = vpop.eup %2330 }
 0x334   : > { %v1617_v21 = vmul.f32 %v2331_v20, %v3212_v25 }
 0x336   : > { %2175 = vmatmul.msk.f32.vlgmr.msra.gmra.mxu0 %vm1574_vm3, %v1617_v21 }
 0x3a3   : > { %v1647_v41 = vpop.f32.mrf.mxu1 }
 0x3a4   : > { %v1721_v48 = vrot.slane %v1647_v41, 4 }
 0x3ac   : > { %v1716_v23 = vpop.f32.mrf.mxu1 }
 0x3ad   : > { %v1731_v22 = vrot.slane %v1716_v23, 4 }
 0x3b1   : > { %v1670_v26 = vpop.f32.mrf.mxu3 }
 0x3b2   : > { %v1732_v27 = vsel %vm806_vm1, %v1731_v22, %v1670_v26  ;;  %v1733_v46 = vrot.slane %v1670_v26, 4  ;;  %v1860_v26 = vld [vmem:[#allocation16 + $0x70] sm:$0xff] }
 0x3b3   : > { %v1738_v28 = vperm.slane %v1732_v27, %v3010_v54  ;;  %v1693_v29 = vpop.f32.mrf.mxu0  ;;  %1867 = vmatpush.msrb.mxu2 %v1860_v26  ;;  %v1858_v27 = vld [vmem:[#allocation16 + $0x60] sm:$0xff] }
 0x3b4   : > { %v1734_v30 = vsel %vm806_vm1, %v1716_v23, %v1733_v46  ;;  %v1719_v32 = vrot.slane %v1693_v29, 4  ;;  %v1722_v25 = vsel %vm806_vm1, %v1693_v29, %v1721_v48  ;;  %v1859_v48 = vld [vmem:[#allocation16 + $0x68] sm:$0xff]  ;;  %v1856_v46 = vld [vmem:[#allocation16 + $0x50] sm:$0xff]  ;;  %v1854_v29 = vld [vmem:[#allocation16 + $0x40] sm:$0xff] }
 0x3b5   : > { %v1742_v33 = vperm.slane %v1734_v30, %v3010_v54  ;;  %v1730_v34 = vperm.slane %v1722_v25, %v3010_v54  ;;  %v1743_v36 = vrot.slane %v1738_v28, 4  ;;  %1868 = vmatpush.msrb.mxu2 %v1859_v48  ;;  %v1853_v30 = vld [vmem:[#allocation16 + $0x38] sm:$0xff]  ;;  %v1851_v25 = vld [vmem:[#allocation16 + $0x28] sm:$0xff] }
 0x3b6   : > { %v1720_v35 = vsel %vm806_vm1, %v1719_v32, %v1647_v41  ;;  %v1852_v32 = vld [vmem:[#allocation16 + $0x30] sm:$0xff] }
 0x3b7   : > { %v1755_v37 = vrot.slane %v1742_v33, 4  ;;  %v1726_v38 = vperm.slane %v1720_v35, %v3010_v54  ;;  %v1757_v39 = vrot.slane %v1730_v34, 4  ;;  %1869 = vmatpush.msrb.mxu2 %v1858_v27  ;;  %v1848_v35 = vld [vmem:[#allocation16 + $0x10] sm:$0xff] }
 0x3b9   : > { %v1744_v40 = vsel %vm806_vm1, %v1743_v36, %v1726_v38  ;;  %v1745_v42 = vrot.slane %v1726_v38, 4  ;;  %v1756_v43 = vsel %vm806_vm1, %v1755_v37, %v1730_v34  ;;  %v1758_v45 = vsel %vm806_vm1, %v1742_v33, %v1757_v39  ;;  %v1850_v33 = vld [vmem:[#allocation16 + $0x20] sm:$0xff]  ;;  %v1849_v34 = vld [vmem:[#allocation16 + $0x18] sm:$0xff]  ;;  %v1847_v36 = vld [vmem:[#allocation16 + $0x8] sm:$0xff] }
 0x3ba   : > { %v1750_v31 = vperm.slane %v1744_v40, %v3020_v4  ;;  %v1762_v47 = vperm.slane %v1756_v43, %v3020_v4  ;;  %v1766_v49 = vperm.slane %v1758_v45, %v3020_v4  ;;  %v1846_v37 = vld [vmem:[#allocation16] sm:$0xff] }
 0x3bb   : > { %v1746_v50 = vsel %vm806_vm1, %v1738_v28, %v1745_v42  ;;  %v1855_v28 = vld [vmem:[#allocation16 + $0x48] sm:$0xff] }
 0x3bc   : > { %v1754_v51 = vperm.slane %v1746_v50, %v3020_v4  ;;  %v1771_v52 = vrot.slane %v1762_v47, 4  ;;  %v1773_v53 = vrot.slane %v1766_v49, 4  ;;  %v1767_v55 = vrot.slane %v1750_v31, 4  ;;  %v2336_v50 = vld [vmem:[%s2946_s16] sm:$0xff]  ;;  %s2178_s16 = sshll.u32 %s3466_s13, 3  ;;  %s2597_s13 = scalar_lea.hbm %s3468_s21, 16 }
 0x3bd   : > { %s1937_s20 = scalar_lea.hbm %s3468_s21, %s2178_s16 }
 0x3be   : > { %v1769_v56 = vrot.slane %v1754_v51, 4  ;;  %v1774_v57 = vsel %vm806_vm1, 0.0, %v1773_v53  ;;  %v1786_v58 = vsel %vm806_vm1, %v1773_v53, %v1762_v47  ;;  %v1772_v62 = vsel %vm806_vm1, 0.0, %v1771_v52  ;;  %s1941_s15 = sshll.u32 %s1937_s20, 4  ;;  %s1942_s15 = int_to_ptr.hbm [resolvable:$true] %s1941_s15 }
 0x3bf   : > { %v1790_v59 = vperm.slane %v1786_v58, %v3010_v54  ;;  %v1791_v60 = vrot.slane %v1774_v57, 4  ;;  %v1768_v6 = vsel %vm806_vm1, 0.0, %v1767_v55  ;;  %v2692_v52 = vmov 128.0   ;;  %s2591_s29 = sshra.s32 %s1942_s15, 4  ;;  %s2592_s29 = int_to_ptr.hbm [resolvable:$true] %s2591_s29 }
 0x3c0   : > { %v1770_v61 = vsel %vm806_vm1, 0.0, %v1769_v56  ;;  %v1775_v63 = vsel %vm806_vm1, %v1769_v56, %v1750_v31  ;;  %v2313_v31 = vld [vmem:[%s3465_s26] ss:$0 sm:$0xff]  ;;  %2332 = vrcp.f32 %v2692_v52  ;;  %s2593_s5 = scalar_lea.hbm %s2592_s29, 8  ;;  %p2598_p8 = scmp.lt.s32.totalorder %s2592_s29, %s3468_s21 }
 0x3c1   : > { %v1780_v0 = vrot.slane %v1770_v61, 4  ;;  %v1792_v1 = vsel %vm806_vm1, %v1791_v60, %v1772_v62  ;;  %v1779_v2 = vperm.slane %v1775_v63, %v3010_v54  ;;  %v1811_v5 = vrot.slane %v1790_v59, 4  ;;  %p2594_p1 = scmp.ne.s32.totalorder %s2592_s29, %s2593_s5  ;;  %p2599_p10 = scmp.lt.s32.totalorder %s2597_s13, %s2593_s5 }
 0x3c2   : > { %v1796_v16 = vperm.slane %v1792_v1, %v3010_v54 }
 0x3c3   : > { %v1781_v8 = vsel %vm806_vm1, %v1780_v0, %v1768_v6  ;;  %v1799_v9 = vrot.slane %v1779_v2, 4  ;;  %p2595_p2 = pnand %p2594_p1, %p2857_p7  ;;  %p2600_p11 = por %p2599_p10, %p2598_p8 }
 0x3c4   : > { %v1785_v11 = vperm.slane %v1781_v8, %v3010_v54  ;;  %v1812_v17 = vsel %vm806_vm1, %v1796_v16, %v1811_v5  ;;  %v1809_v10 = vrot.slane %v1796_v16, 4 }
 0x3c5   : > { %v1820_v3 = vperm.slane %v1812_v17, %v3020_v4  ;;  %v2314_v17 = vld [vmem:[%s3467_s22] ss:$0 sm:$0xff]  ;;  %p2596_p4 = pneg %p2595_p2 }
 0x3c6   : > { %v1800_v12 = vsel %vm806_vm1, %v1785_v11, %v1799_v9  ;;  %v1797_v14 = vrot.slane %v1785_v11, 4  ;;  %v1810_v13 = vsel %vm806_vm1, %v1809_v10, %v1790_v59  ;;  %v2333_v53 = vpop.eup %2332 }
 0x3c7   : > { %v1808_v7 = vperm.slane %v1800_v12, %v3020_v4  ;;  %v1825_v15 = vrot.slane %v1820_v3, 4  ;;  %v1816_v44 = vperm.slane %v1810_v13, %v3020_v4  ;;  %v1890_v55 = vmul.f32 128.0, %v2333_v53  ;;  %v2315_v12 = vld [vmem:[%s3470_s28] ss:$0 sm:$0xff]  ;;  %p2601_p12 = pnand %p2600_p11, %p2596_p4 }
 0x3c8   : > { %v1798_v18 = vsel %vm806_vm1, %v1797_v14, %v1779_v2  ;;  %vm1894_vm5 = vweird.f32 %v2333_v53 }
 0x3c9   : > { %v1826_v19 = vsel %vm806_vm1, %v1825_v15, %v1808_v7  ;;  %v1827_v54 = vrot.slane %v1808_v7, 4  ;;  %v1804_v20 = vperm.slane %v1798_v18, %v3020_v4  ;;  %v1821_v21 = vrot.slane %v1816_v44, 4  ;;  %v1857_v4 = vld [vmem:[#allocation16 + $0x58] sm:$0xff] }
 0x3ca   : > { %1834 = vrot.lane.b32.xlu0 %v1826_v19, %s2687_s6  ;;  %1870 = vmatpush.msrb.mxu2 %v1857_v4  ;;  %v1891_v56 = vsub.f32 1.0, %v1890_v55 }
 0x3cb   : > { %v1828_v41 = vsel %vm806_vm1, %v1820_v3, %v1827_v54  ;;  %v1823_v23 = vrot.slane %v1804_v20, 4  ;;  %v1822_v24 = vsel %vm806_vm1, %v1821_v21, %v1804_v20 }
 0x3cc   : > { %1838 = vrot.lane.b32.xlu2 %v1828_v41, %s2689_s27  ;;  %1871 = vmatpush.msrb.mxu2 %v1856_v46  ;;  %v1892_v57 = vmul.f32 %v2333_v53, %v1891_v56 }
 0x3cd   : > { %v1824_v22 = vsel %vm806_vm1, %v1816_v44, %v1823_v23 }
 0x3ce   : > { %1830 = vrot.lane.b32.xlu1 %v1824_v22, %s2688_s7  ;;  %1872 = vmatpush.msrb.mxu2 %v1855_v28  ;;  %v1893_v58 = vadd.f32 %v2333_v53, %v1892_v57 }
 0x3d0   : > { %1873 = vmatpush.msrb.mxu2 %v1854_v29  ;;  %v1895_v59 = vsel %vm1894_vm5, %v2333_v53, %v1893_v58 }
 0x3d2   : > { %1874 = vmatpush.msrb.mxu2 %v1853_v30 }
 0x3d4   : > { %1875 = vmatpush.msrb.mxu2 %v1852_v32 }
 0x3d6   : > { %1876 = vmatpush.msrb.mxu2 %v1851_v25 }
 0x3d8   : > { %1877 = vmatpush.msrb.mxu2 %v1850_v33 }
 0x3da   : > { %1878 = vmatpush.msrb.mxu2 %v1849_v34 }
 0x3dc   : > { %1879 = vmatpush.msrb.mxu2 %v1848_v35 }
 0x3de   : > { %1880 = vmatpush.msrb.mxu2 %v1847_v36 }
 0x3e0   : > { %1881 = vmatpush.msrb.mxu2 %v1846_v37 }
 0x426   : > { %v1839_v42 = vpop.permute.xlu2 %1838 }
 0x43c   : > { %v1835_v39 = vpop.permute.xlu0 %1834 }
 0x440   : > { %v1831_v38 = vpop.permute.xlu1 %1830 }
 0x441   : > { %v1841_v40 = vsel %vm1026_vm2, %v1822_v24, %v1831_v38 }
 0x442   : > { %v1843_v43 = vsel %vm714_vm0, %v1841_v40, %v1835_v39 }
 0x443   : > { %v1845_v45 = vsel %vm1844_vm4, %v1843_v43, %v1839_v42 }
 0x444   : > { %1882 = vmatmul.f32.vlgmr.msrb.gmra.mxu2 %v1845_v45 }
 0x4c7   : > { %v1883_v47 = vpop.f32.mrf.mxu2 }
 0x4c8   : > { %v1884_v49 = vadd.f32 %v2313_v31, %v1883_v47 }
 0x4ca   : > { %v1886_v51 = vadd.f32 %v2336_v50, %v1884_v49 }
 0x4cc   : > { %1887 = vadd.xlane.f32.xlu0 %v1886_v51 }
 0x53f   : > { %v1888_v60 = vpop.xlane.xlu0 %1887 }
 0x540   : > { %v1896_v61 = vmul.f32 %v1895_v59, %v1888_v60 }
 0x542   : > { %v1897_v62 = vsub.f32 %v1886_v51, %v1896_v61 }
 0x544   : > { %v1898_v63 = vmul.f32 %v1897_v62, %v1897_v62 }
 0x546   : > { %1899 = vadd.xlane.f32.xlu1 %v1898_v63 }
 0x5b9   : > { %v1900_v0 = vpop.xlane.xlu1 %1899 }
 0x5ba   : > { %v1901_v1 = vmul.f32 %v1900_v0, %v1895_v59 }
 0x5bc   : > { %v1902_v2 = vadd.f32 1e-05, %v1901_v1 }
 0x5be   : > { %2334 = vrsqrt.f32 %v1902_v2  ;;  %vm1909_vm7 = vweird.f32 %v1902_v2 }
 0x5c4   : > { %v2335_v5 = vpop.eup %2334 }
 0x5c5   : > { %v1904_v6 = vmul.f32 %v2335_v5, %v1902_v2  ;;  %vm1910_vm6 = vweird.f32 %v2335_v5 }
 0x5c6   : > { %vm1911_vm8 = vmor %vm1909_vm7, %vm1910_vm6 }
 0x5c7   : > { %v1905_v16 = vmul.f32 %v2335_v5, %v1904_v6 }
 0x5c9   : > { %v1906_v8 = vmul.f32 0.5, %v1905_v16 }
 0x5cb   : > { %v1907_v9 = vsub.f32 1.5, %v1906_v8 }
 0x5cd   : > { %v1908_v11 = vmul.f32 %v2335_v5, %v1907_v9 }
 0x5cf   : > { %v1912_v10 = vsel %vm1911_vm8, %v2335_v5, %v1908_v11 }
 0x5d0   : > { %v1913_v3 = vmul.f32 %v1912_v10, %v1897_v62 }
 0x5d2   : > { %v1918_v14 = vmul.f32 %v2314_v17, %v1913_v3 }
 0x5d4   : > { %v1923_v13 = vadd.f32 %v2315_v12, %v1918_v14 }
 0x5d6   : > { %1924 = vst [vmem:[%s693_s24] sm:$0xff] %v1923_v13 }
 0x5d7   : > { %2604 = shalt.err (!%p2601_p12)
}
 0x5d8   : > { %2208 = dma.vmem_to_hbm [thread:$0]  (%p2857_p7), %s1940_s12, 128, %s1942_s15, %s1926_s14  }
 0x5d9 PF: > { %s3471_s4 = sld [smem:[#allocation26_spill]]  ;;  %p3473_p13 = scmp.ge.s32.totalorder %s2679_s18, 2 }
 0x5db   : > { %p2237_p0 = pnand %p3473_p13, %p2813_p6 }
 0x5dd   : > { %p2238_p3 = pneg %p2237_p0 }
 0x5df   : > { %s1953_s23 = sand.u32 1, %s3471_s4  }
 0x5e0   : > { %s1954_s22 = scalar_lea.sflag [#allocation6], %s1953_s23 }
 0x5e1   : > { %2654 = dma.done.wait (%p2238_p3), %s1954_s22, 128  }
 0x5e2   : > { %2656 = vsyncadd (%p2238_p3), %s1954_s22, 4294967168  ;;  %s38_s18 = sadd.s32 1, %s2679_s18   ;;  %s3474_s1 = sld [smem:[#allocation27_spill]] }
 0x5e3   : > { %p35_p5 = scmp.ge.s32.totalorder %s38_s18, 4   ;;  %s3475_s15 = sld [smem:[#allocation32_spill]] }
 0x5e4   : > { %s3476_s19 = sld [smem:[#allocation30_spill]]  ;;  %s3477_s29 = smov %s2663_s30 }
 0x5e5   : > { %s3479_s16 = smov %s2675_s17 }
 0x5e6   :  { %37 = sbr.rel (!%p35_p5) target bundleno = 23 (0x17), region = 178 }
 0x5e8   : > { %s3478_s30 = smov %s3474_s1 }
 0x5ea   : > { %s3480_s17 = smov %s3476_s19 }
 0x5eb   :  { %1960 = vsyncpa [#allocation5], 1 }
 0x5ec   :  { %1962 = vsyncpa [#allocation5 + $0x1], 1 }
 0x5ed   :  { %1963 = vsyncpa [#allocation8], 1 }
 0x5ee   :  { %1965 = vsyncpa [#allocation8 + $0x1], 1 }
 0x5ef   :  { %1966 = vsyncpa [#allocation11], 1 }
 0x5f0   :  { %1968 = vsyncpa [#allocation11 + $0x1], 1 }
 0x5f1   :  { %1969 = vsyncpa [#allocation14], 1 }
 0x5f2   :  { %1970 = vsyncpa [#allocation17], 1 }
 0x5f3   :  { %1971 = vsyncpa [#allocation6], 1 }
 0x5f4   :  { %1973 = vsyncpa [#allocation6 + $0x1], 1 }

</bundles_post_ra>
